<compile_context>
chip_gen: v7x
topology: tpu7x:2x2x1
jax: 0.10.0
libtpu: 0.0.40
codegen_flags: <defaults>
</compile_context>

<pallas_src>
import numpy as np
import jax
import jax.numpy as jnp
from jax import lax
from jax.experimental import pallas as pl

# ----------------------------- configuration --------------------------------
NUM_CLASSES = 2
CHANNEL = 3
IM_SIZE = (16, 16)
WIDTH = 32          # conv-net width (net_width)
DEPTH = 3           # conv blocks: 16 -> 8 -> 4 -> 2 spatial
IMG_PC = 4          # synthetic images per class
BATCH_PC = 2        # images per class per inner-loop batch
WINDOW = 2          # inner-loop differentiable steps (curriculum = window)
LR = 0.01
MOMENTUM = 0.9
WEIGHT_DECAY = 5e-4
REAL_BATCH = 2

_PALLAS_MIN_M = 128   # below this a Pallas call's fixed overhead beats the dot


# --------------------------- Pallas kernels ----------------------------------
def _conv_fwd_kernel(a_ref, w_ref, b_ref, o_ref):
    """Fused matmul + bias + ReLU. bf16 MXU operands (cast in-kernel), f32
    accumulate, bf16 activation store."""
    a = a_ref[...].astype(jnp.bfloat16)
    w = w_ref[...].astype(jnp.bfloat16)
    acc = jnp.dot(a, w, preferred_element_type=jnp.float32)
    o_ref[...] = jnp.maximum(acc + b_ref[...], 0.0).astype(o_ref.dtype)


def _conv_bwd_kernel(a_ref, w_ref, out_ref, g_ref, da_ref, dw_ref, db_ref):
    """Fused backward of relu(a@w+b): ReLU mask + dA + dW + db in one kernel.

    dA = gm @ w^T   (transposed dot_general, no materialised w.T)
    dW = a^T @ gm   (transposed dot_general, no materialised a.T)
    db = sum(gm, axis=0)
    bf16 MXU operands, f32 accumulation; the select is VPU work hidden under
    the matmuls.
    """
    g = g_ref[...]
    gm = jnp.where(out_ref[...] > 0, g, jnp.zeros_like(g)).astype(jnp.bfloat16)
    w = w_ref[...].astype(jnp.bfloat16)
    a = a_ref[...].astype(jnp.bfloat16)
    da_ref[...] = lax.dot_general(
        gm, w, dimension_numbers=(((1,), (1,)), ((), ())),
        preferred_element_type=jnp.float32).astype(da_ref.dtype)
    dw_ref[...] = lax.dot_general(
        a, gm, dimension_numbers=(((0,), (0,)), ((), ())),
        preferred_element_type=jnp.float32)
    db_ref[...] = jnp.sum(gm.astype(jnp.float32), axis=0, keepdims=True)


def _conv_fwd_pallas(a, w, b2):
    """relu(a @ w + b): single grid step (tm = M), full-K / full-N blocks."""
    M, K = a.shape
    N = w.shape[1]
    cost = pl.CostEstimate(
        flops=2 * M * K * N,
        transcendentals=0,
        bytes_accessed=M * K * a.dtype.itemsize + K * N * 4 + N * 4 + M * N * 2)
    return pl.pallas_call(
        _conv_fwd_kernel,
        out_shape=jax.ShapeDtypeStruct((M, N), jnp.bfloat16),
        cost_estimate=cost,
    )(a, w, b2)


def _conv_bwd_pallas(a, w, out, g):
    M, K = a.shape
    N = w.shape[1]
    cost = pl.CostEstimate(
        flops=4 * M * K * N + 2 * M * N,
        transcendentals=0,
        bytes_accessed=(M * K + 2 * M * N) * 2 + K * N * 4   # inputs
                       + M * K * 2 + K * N * 4 + N * 4)       # outputs
    return pl.pallas_call(
        _conv_bwd_kernel,
        out_shape=(jax.ShapeDtypeStruct((M, K), a.dtype),      # dA (bf16)
                   jax.ShapeDtypeStruct((K, N), jnp.float32),  # dW
                   jax.ShapeDtypeStruct((1, N), jnp.float32)), # db
        cost_estimate=cost,
    )(a, w, out, g)


# ------------------------ fused conv matmul + custom VJP ---------------------
def _conv_mm_relu_impl(a, w, b):
    M, K = a.shape
    N = w.shape[1]
    b2 = b.reshape(1, N)
    if M >= _PALLAS_MIN_M:
        return _conv_fwd_pallas(a, w, b2)
    # tiny matmul (e.g. the 4x4/2x2 conv layer, M <= 64): plain XLA dot is
    # cheaper than the Pallas call's fixed overhead.
    out = jnp.dot(a.astype(jnp.float32), w, preferred_element_type=jnp.float32)
    return jnp.maximum(out + b2, 0.0).astype(jnp.bfloat16)


@jax.custom_vjp
def conv_mm_relu(a, w, b):
    return _conv_mm_relu_impl(a, w, b)


def _conv_mm_relu_fwd(a, w, b):
    out = _conv_mm_relu_impl(a, w, b)
    return out, (a, w, out)


def _conv_mm_relu_bwd(res, g):
    a, w, out = res
    M, K = a.shape
    N = w.shape[1]
    g = g.astype(out.dtype)
    if M >= _PALLAS_MIN_M:
        da, dw, db2 = _conv_bwd_pallas(a, w, out, g)
        db = db2.reshape(N)
    else:
        gm = jnp.where(out > 0, g, jnp.zeros_like(g)).astype(jnp.bfloat16)
        da = lax.dot_general(gm, w.astype(jnp.bfloat16),
                             dimension_numbers=(((1,), (1,)), ((), ())),
                             preferred_element_type=jnp.float32).astype(a.dtype)
        dw = lax.dot_general(a.astype(jnp.bfloat16), gm,
                             dimension_numbers=(((0,), (0,)), ((), ())),
                             preferred_element_type=jnp.float32)
        db = jnp.sum(gm.astype(jnp.float32), axis=0)
    return da, dw, db


conv_mm_relu.defvjp(_conv_mm_relu_fwd, _conv_mm_relu_bwd)


# ------------------------------ ConvNet (get_arch) ---------------------------
def conv3x3_relu(x_nhwc, w, b):
    """3x3 conv, stride 1, pad 1, + ReLU. im2col (bf16, fused by XLA inside the
    jit) + fused Pallas matmul/bias/ReLU.
    TODO(synk): fuse the 9-tap gather into the kernel (VMEM-resident taps)."""
    N, H, W_, Cin = x_nhwc.shape
    Cout = w.shape[-1]
    xp = jnp.pad(x_nhwc, ((0, 0), (1, 1), (1, 1), (0, 0)))
    patches = [xp[:, kh:kh + H, kw:kw + W_, :]
               for kh in range(3) for kw in range(3)]
    pat = jnp.concatenate(patches, axis=-1)              # (N,H,W,9*Cin) bf16
    a = pat.reshape(N * H * W_, 9 * Cin)
    wm = w.reshape(9 * Cin, Cout)                        # (kh,kw,Cin) major
    out = conv_mm_relu(a, wm, b)                         # fused mm+bias+ReLU
    return out.reshape(N, H, W_, Cout)


def avgpool2(x):
    N, H, W_, C = x.shape
    return x.reshape(N, H // 2, 2, W_ // 2, 2, C).mean(axis=(2, 4))


def net_forward(params, x_nhwc):
    h = x_nhwc
    for i in range(DEPTH):
        h = conv3x3_relu(h, params[f'conv{i}_w'], params[f'conv{i}_b'])
        h = avgpool2(h)
    N = h.shape[0]
    # flatten in NCHW order to match PyTorch's feature ordering
    pres = jnp.transpose(h, (0, 3, 1, 2)).reshape(N, -1).astype(jnp.float32)
    # classifier: M <= 8 rows -> plain dot (Pallas call would be pure overhead)
    out = jnp.dot(pres, params['fc_w'],
                  preferred_element_type=jnp.float32) + params['fc_b']
    return out, pres


def init_net(key):
    # TODO(synk): deterministic He-init stand-in for torch's default conv init.
    params = {}
    widths = [CHANNEL] + [WIDTH] * DEPTH
    keys = jax.random.split(key, DEPTH + 1)
    for i in range(DEPTH):
        fan_in = 9 * widths[i]
        params[f'conv{i}_w'] = (jax.random.normal(
            keys[i], (3, 3, widths[i], widths[i + 1]), jnp.float32)
            * jnp.sqrt(2.0 / fan_in))
        params[f'conv{i}_b'] = jnp.zeros((widths[i + 1],), jnp.float32)
    feat = WIDTH * (IM_SIZE[0] // (2 ** DEPTH)) * (IM_SIZE[1] // (2 ** DEPTH))
    params['fc_w'] = (jax.random.normal(keys[-1], (feat, NUM_CLASSES),
                                        jnp.float32) * jnp.sqrt(1.0 / feat))
    params['fc_b'] = jnp.zeros((NUM_CLASSES,), jnp.float32)
    return params


# ------------------------------ training helpers -----------------------------
def cross_entropy(logits, labels):
    logz = jax.nn.logsumexp(logits, axis=-1)
    ll = jnp.take_along_axis(logits, labels[:, None], axis=-1)[:, 0]
    return jnp.mean(logz - ll)


def loss_fn(params, imgs, labels):
    out, _ = net_forward(params, imgs)
    return cross_entropy(out, labels)


def sgd_step(params, momentum, grads):
    # matches torch.optim.SGD(momentum=0.9, weight_decay=5e-4), single group
    new_p, new_m = {}, {}
    for k in params:
        d = grads[k] + WEIGHT_DECAY * params[k]
        m = MOMENTUM * momentum[k] + d
        new_m[k] = m
        new_p[k] = params[k] - LR * m
    return new_p, new_m


# ------------------------ single jitted forward graph -------------------------
def _distill_forward_impl(net_key, data, labels, step_idx, x_nchw):
    params = init_net(net_key)
    momentum = jax.tree_util.tree_map(jnp.zeros_like, params)

    # curriculum (plain SGD) and 'higher' window phases are identical plain SGD
    # updates for the forward-only semantics -> one scanned loop, one graph.
    def sgd_scan_step(carry, idx):
        params, momentum = carry
        imgs = data[idx].reshape(-1, CHANNEL, IM_SIZE[0], IM_SIZE[1])
        imgs = jnp.transpose(imgs, (0, 2, 3, 1)).astype(jnp.bfloat16)  # NHWC bf16
        grads = jax.grad(loss_fn)(params, imgs, labels[idx])
        params, momentum = sgd_step(params, momentum, grads)
        return (params, momentum), None

    (params, _), _ = lax.scan(sgd_scan_step, (params, momentum), step_idx)

    # ---- evaluate on real batch ----
    x_nhwc = jnp.transpose(x_nchw, (0, 2, 3, 1)).astype(jnp.bfloat16)
    return net_forward(params, x_nhwc)                   # (out, pres)


_distill_forward = jax.jit(_distill_forward_impl)


# --------------------------------- Distill -----------------------------------
class DistillPallas:
    def __init__(self, key):
        k_data, self.k_net = jax.random.split(key)
        # nn.Embedding(img_pc*num_classes, C*H*W) default init: N(0,1)
        self.data = jax.random.normal(
            k_data, (IMG_PC * NUM_CLASSES, CHANNEL * IM_SIZE[0] * IM_SIZE[1]),
            jnp.float32)
        # train_y=False -> label is y_init (integer class labels)
        self.label = jnp.asarray(
            np.repeat(np.arange(NUM_CLASSES), IMG_PC), jnp.int32)
        self.window = WINDOW
        self.curriculum = WINDOW
        self.dd_type = 'curriculum'
        # persistent RNG: successive forward() calls see different batches,
        # mirroring torch.randperm semantics across calls.
        self._rng = np.random.RandomState(0)

    def _make_step_indices(self, n_steps):
        steps = []
        for _ in range(n_steps):
            inds = []
            for c in range(NUM_CLASSES):
                perm = np.sort(self._rng.permutation(IMG_PC)[:BATCH_PC])
                inds.append(perm + IMG_PC * c)
            steps.append(np.concatenate(inds))
        return jnp.asarray(np.stack(steps), jnp.int32)

    def forward(self, x_nchw):
        step_idx = self._make_step_indices(self.curriculum + self.window)
        return _distill_forward(self.k_net, self.data, self.label,
                                step_idx, x_nchw)


# ----------------------------------- main -------------------------------------
if __name__ == "__main__":
    key = jax.random.PRNGKey(0)
    k_model, k_x = jax.random.split(key)
    model = DistillPallas(k_model)

    x = jax.random.normal(
        k_x, (REAL_BATCH, CHANNEL, IM_SIZE[0], IM_SIZE[1]), jnp.float32)

    out, pres = model.forward(x)
    jax.block_until_ready(out)
    jax.block_until_ready(pres)

    assert out.shape == (REAL_BATCH, NUM_CLASSES)
    feat = WIDTH * (IM_SIZE[0] // (2 ** DEPTH)) * (IM_SIZE[1] // (2 ** DEPTH))
    assert pres.shape == (REAL_BATCH, feat)
    assert jnp.all(jnp.isfinite(out)) and jnp.all(jnp.isfinite(pres))
    print("KERNEL_OK")
</pallas_src>

<mosaic_0001>
module attributes {stable_mosaic.version = 11 : i64} {
  func.func @_conv_fwd_kernel(%arg0: memref<1024x27xbf16, #tpu.memory_space<vmem>>, %arg1: memref<27x32xf32, #tpu.memory_space<vmem>>, %arg2: memref<1x32xf32, #tpu.memory_space<vmem>>, %arg3: memref<1024x32xbf16, #tpu.memory_space<vmem>>) attributes {dimension_semantics = [], scalar_prefetch = 0 : i64, scratch_operands = 0 : i64, tpu.core_type = #tpu.core_type<tc>} {
    %c0 = arith.constant 0 : index
    %c0_0 = arith.constant 0 : index
    %0 = vector.load %arg0[%c0, %c0_0] : memref<1024x27xbf16, #tpu.memory_space<vmem>>, vector<1024x27xbf16>
    %c0_1 = arith.constant 0 : index
    %c0_2 = arith.constant 0 : index
    %1 = vector.load %arg1[%c0_1, %c0_2] : memref<27x32xf32, #tpu.memory_space<vmem>>, vector<27x32xf32>
    %2 = arith.truncf %1 : vector<27x32xf32> to vector<27x32xbf16>
    %cst = arith.constant dense<0.000000e+00> : vector<1024x32xf32>
    %3 = tpu.matmul %0, %2, %cst {dimension_numbers = #tpu.dot_dimension_numbers<[1], [0], [0], [1], [0, 0, 1, 1], [], []>} : vector<1024x27xbf16>, vector<27x32xbf16>, vector<1024x32xf32> -> vector<1024x32xf32>
    %c0_3 = arith.constant 0 : index
    %c0_4 = arith.constant 0 : index
    %4 = vector.load %arg2[%c0_3, %c0_4] : memref<1x32xf32, #tpu.memory_space<vmem>>, vector<1x32xf32>
    %5 = vector.broadcast %4 : vector<1x32xf32> to vector<1024x32xf32>
    %6 = arith.addf %3, %5 : vector<1024x32xf32>
    %cst_5 = arith.constant 0.000000e+00 : f32
    %7 = vector.broadcast %cst_5 : f32 to vector<1024x32xf32>
    %8 = arith.maximumf %6, %7 : vector<1024x32xf32>
    %9 = arith.truncf %8 : vector<1024x32xf32> to vector<1024x32xbf16>
    %c0_6 = arith.constant 0 : index
    %c0_7 = arith.constant 0 : index
    %10 = vector.load %arg3[%c0_6, %c0_7] : memref<1024x32xbf16, #tpu.memory_space<vmem>>, vector<1024x32xbf16>
    tpu.vector_store %arg3[%c0_6, %c0_7], %9 {strides = array<i32>} : memref<1024x32xbf16, #tpu.memory_space<vmem>>, vector<1024x32xbf16>,
    return
  }
}

module attributes {stable_mosaic.version = 11 : i64} {
  func.func @_conv_fwd_kernel(%arg0: memref<256x288xbf16, #tpu.memory_space<vmem>>, %arg1: memref<288x32xf32, #tpu.memory_space<vmem>>, %arg2: memref<1x32xf32, #tpu.memory_space<vmem>>, %arg3: memref<256x32xbf16, #tpu.memory_space<vmem>>) attributes {dimension_semantics = [], scalar_prefetch = 0 : i64, scratch_operands = 0 : i64, tpu.core_type = #tpu.core_type<tc>} {
    %c0 = arith.constant 0 : index
    %c0_0 = arith.constant 0 : index
    %0 = vector.load %arg0[%c0, %c0_0] : memref<256x288xbf16, #tpu.memory_space<vmem>>, vector<256x288xbf16>
    %c0_1 = arith.constant 0 : index
    %c0_2 = arith.constant 0 : index
    %1 = vector.load %arg1[%c0_1, %c0_2] : memref<288x32xf32, #tpu.memory_space<vmem>>, vector<288x32xf32>
    %2 = arith.truncf %1 : vector<288x32xf32> to vector<288x32xbf16>
    %cst = arith.constant dense<0.000000e+00> : vector<256x32xf32>
    %3 = tpu.matmul %0, %2, %cst {dimension_numbers = #tpu.dot_dimension_numbers<[1], [0], [0], [1], [0, 0, 1, 1], [], []>} : vector<256x288xbf16>, vector<288x32xbf16>, vector<256x32xf32> -> vector<256x32xf32>
    %c0_3 = arith.constant 0 : index
    %c0_4 = arith.constant 0 : index
    %4 = vector.load %arg2[%c0_3, %c0_4] : memref<1x32xf32, #tpu.memory_space<vmem>>, vector<1x32xf32>
    %5 = vector.broadcast %4 : vector<1x32xf32> to vector<256x32xf32>
    %6 = arith.addf %3, %5 : vector<256x32xf32>
    %cst_5 = arith.constant 0.000000e+00 : f32
    %7 = vector.broadcast %cst_5 : f32 to vector<256x32xf32>
    %8 = arith.maximumf %6, %7 : vector<256x32xf32>
    %9 = arith.truncf %8 : vector<256x32xf32> to vector<256x32xbf16>
    %c0_6 = arith.constant 0 : index
    %c0_7 = arith.constant 0 : index
    %10 = vector.load %arg3[%c0_6, %c0_7] : memref<256x32xbf16, #tpu.memory_space<vmem>>, vector<256x32xbf16>
    tpu.vector_store %arg3[%c0_6, %c0_7], %9 {strides = array<i32>} : memref<256x32xbf16, #tpu.memory_space<vmem>>, vector<256x32xbf16>,
    return
  }
}

module attributes {stable_mosaic.version = 11 : i64} {
  func.func @_conv_bwd_kernel(%arg0: memref<256x288xbf16, #tpu.memory_space<vmem>>, %arg1: memref<288x32xf32, #tpu.memory_space<vmem>>, %arg2: memref<256x32xbf16, #tpu.memory_space<vmem>>, %arg3: memref<256x32xbf16, #tpu.memory_space<vmem>>, %arg4: memref<256x288xbf16, #tpu.memory_space<vmem>>, %arg5: memref<288x32xf32, #tpu.memory_space<vmem>>, %arg6: memref<1x32xf32, #tpu.memory_space<vmem>>) attributes {dimension_semantics = [], scalar_prefetch = 0 : i64, scratch_operands = 0 : i64, tpu.core_type = #tpu.core_type<tc>} {
    %c0 = arith.constant 0 : index
    %c0_0 = arith.constant 0 : index
    %0 = vector.load %arg3[%c0, %c0_0] : memref<256x32xbf16, #tpu.memory_space<vmem>>, vector<256x32xbf16>
    %c0_1 = arith.constant 0 : index
    %c0_2 = arith.constant 0 : index
    %1 = vector.load %arg2[%c0_1, %c0_2] : memref<256x32xbf16, #tpu.memory_space<vmem>>, vector<256x32xbf16>
    %cst = arith.constant 0.000000e+00 : bf16
    %2 = vector.broadcast %cst : bf16 to vector<256x32xbf16>
    %3 = arith.cmpf ogt, %1, %2 : vector<256x32xbf16>
    %cst_3 = arith.constant 0.000000e+00 : bf16
    %4 = vector.broadcast %cst_3 : bf16 to vector<256x32xbf16>
    %5 = arith.select %3, %0, %4 : vector<256x32xi1>, vector<256x32xbf16>
    %c0_4 = arith.constant 0 : index
    %c0_5 = arith.constant 0 : index
    %6 = vector.load %arg1[%c0_4, %c0_5] : memref<288x32xf32, #tpu.memory_space<vmem>>, vector<288x32xf32>
    %7 = arith.truncf %6 : vector<288x32xf32> to vector<288x32xbf16>
    %c0_6 = arith.constant 0 : index
    %c0_7 = arith.constant 0 : index
    %8 = vector.load %arg0[%c0_6, %c0_7] : memref<256x288xbf16, #tpu.memory_space<vmem>>, vector<256x288xbf16>
    %cst_8 = arith.constant dense<0.000000e+00> : vector<256x288xf32>
    %9 = tpu.matmul %5, %7, %cst_8 {dimension_numbers = #tpu.dot_dimension_numbers<[1], [1], [0], [0], [0, 0, 1, 0], [], []>} : vector<256x32xbf16>, vector<288x32xbf16>, vector<256x288xf32> -> vector<256x288xf32>
    %10 = arith.truncf %9 : vector<256x288xf32> to vector<256x288xbf16>
    %c0_9 = arith.constant 0 : index
    %c0_10 = arith.constant 0 : index
    %11 = vector.load %arg4[%c0_9, %c0_10] : memref<256x288xbf16, #tpu.memory_space<vmem>>, vector<256x288xbf16>
    tpu.vector_store %arg4[%c0_9, %c0_10], %10 {strides = array<i32>} : memref<256x288xbf16, #tpu.memory_space<vmem>>, vector<256x288xbf16>,
    %cst_11 = arith.constant dense<0.000000e+00> : vector<288x32xf32>
    %12 = tpu.matmul %8, %5, %cst_11 {dimension_numbers = #tpu.dot_dimension_numbers<[0], [0], [1], [1], [0, 1, 1, 1], [], []>} : vector<256x288xbf16>, vector<256x32xbf16>, vector<288x32xf32> -> vector<288x32xf32>
    %c0_12 = arith.constant 0 : index
    %c0_13 = arith.constant 0 : index
    %13 = vector.load %arg5[%c0_12, %c0_13] : memref<288x32xf32, #tpu.memory_space<vmem>>, vector<288x32xf32>
    tpu.vector_store %arg5[%c0_12, %c0_13], %12 {strides = array<i32>} : memref<288x32xf32, #tpu.memory_space<vmem>>, vector<288x32xf32>,
    %14 = arith.extf %5 : vector<256x32xbf16> to vector<256x32xf32>
    %cst_14 = arith.constant dense<0.000000e+00> : vector<32xf32>
    %15 = vector.multi_reduction <add>, %14, %cst_14 [0] : vector<256x32xf32> to vector<32xf32>
    %16 = vector.shape_cast %15 : vector<32xf32> to vector<1x32xf32>
    %c0_15 = arith.constant 0 : index
    %c0_16 = arith.constant 0 : index
    %17 = vector.load %arg6[%c0_15, %c0_16] : memref<1x32xf32, #tpu.memory_space<vmem>>, vector<1x32xf32>
    tpu.vector_store %arg6[%c0_15, %c0_16], %16 {strides = array<i32>} : memref<1x32xf32, #tpu.memory_space<vmem>>, vector<1x32xf32>,
    return
  }
}

module attributes {stable_mosaic.version = 11 : i64} {
  func.func @_conv_bwd_kernel(%arg0: memref<1024x27xbf16, #tpu.memory_space<vmem>>, %arg1: memref<27x32xf32, #tpu.memory_space<vmem>>, %arg2: memref<1024x32xbf16, #tpu.memory_space<vmem>>, %arg3: memref<1024x32xbf16, #tpu.memory_space<vmem>>, %arg4: memref<1024x27xbf16, #tpu.memory_space<vmem>>, %arg5: memref<27x32xf32, #tpu.memory_space<vmem>>, %arg6: memref<1x32xf32, #tpu.memory_space<vmem>>) attributes {dimension_semantics = [], scalar_prefetch = 0 : i64, scratch_operands = 0 : i64, tpu.core_type = #tpu.core_type<tc>} {
    %c0 = arith.constant 0 : index
    %c0_0 = arith.constant 0 : index
    %0 = vector.load %arg3[%c0, %c0_0] : memref<1024x32xbf16, #tpu.memory_space<vmem>>, vector<1024x32xbf16>
    %c0_1 = arith.constant 0 : index
    %c0_2 = arith.constant 0 : index
    %1 = vector.load %arg2[%c0_1, %c0_2] : memref<1024x32xbf16, #tpu.memory_space<vmem>>, vector<1024x32xbf16>
    %cst = arith.constant 0.000000e+00 : bf16
    %2 = vector.broadcast %cst : bf16 to vector<1024x32xbf16>
    %3 = arith.cmpf ogt, %1, %2 : vector<1024x32xbf16>
    %cst_3 = arith.constant 0.000000e+00 : bf16
    %4 = vector.broadcast %cst_3 : bf16 to vector<1024x32xbf16>
    %5 = arith.select %3, %0, %4 : vector<1024x32xi1>, vector<1024x32xbf16>
    %c0_4 = arith.constant 0 : index
    %c0_5 = arith.constant 0 : index
    %6 = vector.load %arg1[%c0_4, %c0_5] : memref<27x32xf32, #tpu.memory_space<vmem>>, vector<27x32xf32>
    %7 = arith.truncf %6 : vector<27x32xf32> to vector<27x32xbf16>
    %c0_6 = arith.constant 0 : index
    %c0_7 = arith.constant 0 : index
    %8 = vector.load %arg0[%c0_6, %c0_7] : memref<1024x27xbf16, #tpu.memory_space<vmem>>, vector<1024x27xbf16>
    %cst_8 = arith.constant dense<0.000000e+00> : vector<1024x27xf32>
    %9 = tpu.matmul %5, %7, %cst_8 {dimension_numbers = #tpu.dot_dimension_numbers<[1], [1], [0], [0], [0, 0, 1, 0], [], []>} : vector<1024x32xbf16>, vector<27x32xbf16>, vector<1024x27xf32> -> vector<1024x27xf32>
    %10 = arith.truncf %9 : vector<1024x27xf32> to vector<1024x27xbf16>
    %c0_9 = arith.constant 0 : index
    %c0_10 = arith.constant 0 : index
    %11 = vector.load %arg4[%c0_9, %c0_10] : memref<1024x27xbf16, #tpu.memory_space<vmem>>, vector<1024x27xbf16>
    tpu.vector_store %arg4[%c0_9, %c0_10], %10 {strides = array<i32>} : memref<1024x27xbf16, #tpu.memory_space<vmem>>, vector<1024x27xbf16>,
    %cst_11 = arith.constant dense<0.000000e+00> : vector<27x32xf32>
    %12 = tpu.matmul %8, %5, %cst_11 {dimension_numbers = #tpu.dot_dimension_numbers<[0], [0], [1], [1], [0, 1, 1, 1], [], []>} : vector<1024x27xbf16>, vector<1024x32xbf16>, vector<27x32xf32> -> vector<27x32xf32>
    %c0_12 = arith.constant 0 : index
    %c0_13 = arith.constant 0 : index
    %13 = vector.load %arg5[%c0_12, %c0_13] : memref<27x32xf32, #tpu.memory_space<vmem>>, vector<27x32xf32>
    tpu.vector_store %arg5[%c0_12, %c0_13], %12 {strides = array<i32>} : memref<27x32xf32, #tpu.memory_space<vmem>>, vector<27x32xf32>,
    %14 = arith.extf %5 : vector<1024x32xbf16> to vector<1024x32xf32>
    %cst_14 = arith.constant dense<0.000000e+00> : vector<32xf32>
    %15 = vector.multi_reduction <add>, %14, %cst_14 [0] : vector<1024x32xf32> to vector<32xf32>
    %16 = vector.shape_cast %15 : vector<32xf32> to vector<1x32xf32>
    %c0_15 = arith.constant 0 : index
    %c0_16 = arith.constant 0 : index
    %17 = vector.load %arg6[%c0_15, %c0_16] : memref<1x32xf32, #tpu.memory_space<vmem>>, vector<1x32xf32>
    tpu.vector_store %arg6[%c0_15, %c0_16], %16 {strides = array<i32>} : memref<1x32xf32, #tpu.memory_space<vmem>>, vector<1x32xf32>,
    return
  }
}

module attributes {stable_mosaic.version = 11 : i64} {
  func.func @_conv_fwd_kernel(%arg0: memref<512x27xbf16, #tpu.memory_space<vmem>>, %arg1: memref<27x32xf32, #tpu.memory_space<vmem>>, %arg2: memref<1x32xf32, #tpu.memory_space<vmem>>, %arg3: memref<512x32xbf16, #tpu.memory_space<vmem>>) attributes {dimension_semantics = [], scalar_prefetch = 0 : i64, scratch_operands = 0 : i64, tpu.core_type = #tpu.core_type<tc>} {
    %c0 = arith.constant 0 : index
    %c0_0 = arith.constant 0 : index
    %0 = vector.load %arg0[%c0, %c0_0] : memref<512x27xbf16, #tpu.memory_space<vmem>>, vector<512x27xbf16>
    %c0_1 = arith.constant 0 : index
    %c0_2 = arith.constant 0 : index
    %1 = vector.load %arg1[%c0_1, %c0_2] : memref<27x32xf32, #tpu.memory_space<vmem>>, vector<27x32xf32>
    %2 = arith.truncf %1 : vector<27x32xf32> to vector<27x32xbf16>
    %cst = arith.constant dense<0.000000e+00> : vector<512x32xf32>
    %3 = tpu.matmul %0, %2, %cst {dimension_numbers = #tpu.dot_dimension_numbers<[1], [0], [0], [1], [0, 0, 1, 1], [], []>} : vector<512x27xbf16>, vector<27x32xbf16>, vector<512x32xf32> -> vector<512x32xf32>
    %c0_3 = arith.constant 0 : index
    %c0_4 = arith.constant 0 : index
    %4 = vector.load %arg2[%c0_3, %c0_4] : memref<1x32xf32, #tpu.memory_space<vmem>>, vector<1x32xf32>
    %5 = vector.broadcast %4 : vector<1x32xf32> to vector<512x32xf32>
    %6 = arith.addf %3, %5 : vector<512x32xf32>
    %cst_5 = arith.constant 0.000000e+00 : f32
    %7 = vector.broadcast %cst_5 : f32 to vector<512x32xf32>
    %8 = arith.maximumf %6, %7 : vector<512x32xf32>
    %9 = arith.truncf %8 : vector<512x32xf32> to vector<512x32xbf16>
    %c0_6 = arith.constant 0 : index
    %c0_7 = arith.constant 0 : index
    %10 = vector.load %arg3[%c0_6, %c0_7] : memref<512x32xbf16, #tpu.memory_space<vmem>>, vector<512x32xbf16>
    tpu.vector_store %arg3[%c0_6, %c0_7], %9 {strides = array<i32>} : memref<512x32xbf16, #tpu.memory_space<vmem>>, vector<512x32xbf16>,
    return
  }
}

module attributes {stable_mosaic.version = 11 : i64} {
  func.func @_conv_fwd_kernel(%arg0: memref<128x288xbf16, #tpu.memory_space<vmem>>, %arg1: memref<288x32xf32, #tpu.memory_space<vmem>>, %arg2: memref<1x32xf32, #tpu.memory_space<vmem>>, %arg3: memref<128x32xbf16, #tpu.memory_space<vmem>>) attributes {dimension_semantics = [], scalar_prefetch = 0 : i64, scratch_operands = 0 : i64, tpu.core_type = #tpu.core_type<tc>} {
    %c0 = arith.constant 0 : index
    %c0_0 = arith.constant 0 : index
    %0 = vector.load %arg0[%c0, %c0_0] : memref<128x288xbf16, #tpu.memory_space<vmem>>, vector<128x288xbf16>
    %c0_1 = arith.constant 0 : index
    %c0_2 = arith.constant 0 : index
    %1 = vector.load %arg1[%c0_1, %c0_2] : memref<288x32xf32, #tpu.memory_space<vmem>>, vector<288x32xf32>
    %2 = arith.truncf %1 : vector<288x32xf32> to vector<288x32xbf16>
    %cst = arith.constant dense<0.000000e+00> : vector<128x32xf32>
    %3 = tpu.matmul %0, %2, %cst {dimension_numbers = #tpu.dot_dimension_numbers<[1], [0], [0], [1], [0, 0, 1, 1], [], []>} : vector<128x288xbf16>, vector<288x32xbf16>, vector<128x32xf32> -> vector<128x32xf32>
    %c0_3 = arith.constant 0 : index
    %c0_4 = arith.constant 0 : index
    %4 = vector.load %arg2[%c0_3, %c0_4] : memref<1x32xf32, #tpu.memory_space<vmem>>, vector<1x32xf32>
    %5 = vector.broadcast %4 : vector<1x32xf32> to vector<128x32xf32>
    %6 = arith.addf %3, %5 : vector<128x32xf32>
    %cst_5 = arith.constant 0.000000e+00 : f32
    %7 = vector.broadcast %cst_5 : f32 to vector<128x32xf32>
    %8 = arith.maximumf %6, %7 : vector<128x32xf32>
    %9 = arith.truncf %8 : vector<128x32xf32> to vector<128x32xbf16>
    %c0_6 = arith.constant 0 : index
    %c0_7 = arith.constant 0 : index
    %10 = vector.load %arg3[%c0_6, %c0_7] : memref<128x32xbf16, #tpu.memory_space<vmem>>, vector<128x32xbf16>
    tpu.vector_store %arg3[%c0_6, %c0_7], %9 {strides = array<i32>} : memref<128x32xbf16, #tpu.memory_space<vmem>>, vector<128x32xbf16>,
    return
  }
}

</mosaic_0001>

<bundles_post_ra>
// kernel: custom-call.7
= control target key start
LH: loop header
LB: loop body
LE: loop exit
PB: predicated region body
PF: predicated region fallthrough
CT: control target
= control target key end

     0   :  { %s6_s0 = inlined_call_operand.vmem [shape: f32[3,3,32,32], index: 0, kind: output, shape index: {}]  }

// kernel: custom-call.5
= control target key start
LH: loop header
LB: loop body
LE: loop exit
PB: predicated region body
PF: predicated region fallthrough
CT: control target
= control target key end

     0   :  { %s6_s0 = inlined_call_operand.vmem [shape: f32[3,3,3,32], index: 0, kind: output, shape index: {}]  }

// kernel: custom-call.11
= control target key start
LH: loop header
LB: loop body
LE: loop exit
PB: predicated region body
PF: predicated region fallthrough
CT: control target
= control target key end

     0   :  { %s6_s0 = inlined_call_operand.vmem [shape: f32[128,2], index: 0, kind: output, shape index: {}]  }

// kernel: custom-call
= control target key start
LH: loop header
LB: loop body
LE: loop exit
PB: predicated region body
PF: predicated region fallthrough
CT: control target
= control target key end

     0   :  { %s6_s0 = inlined_call_operand.vmem [shape: f32[32], index: 0, kind: output, shape index: {}]  }

// kernel: custom-call.10
= control target key start
LH: loop header
LB: loop body
LE: loop exit
PB: predicated region body
PF: predicated region fallthrough
CT: control target
= control target key end

     0   :  { %s6_s0 = inlined_call_operand.vmem [shape: f32[2], index: 0, kind: output, shape index: {}]  }

// kernel: jvp__.14
= control target key start
LH: loop header
LB: loop body
LE: loop exit
PB: predicated region body
PF: predicated region fallthrough
CT: control target
= control target key end

     0   :  { %vm669_vm0 = vcmask 1044480   ;;  %vm670_vm1 = vcmask 1045504   ;;  %v2647_v3 = vmov 65535   ;;  %vm476_vm2 = vcmask 220160   ;;  %s3586_s1 = inlined_call_operand.vmem [shape: f32[27,32], index: 1, kind: input, shape index: {}]   ;;  %s3587_s0 = inlined_call_operand.vmem [shape: bf16[1024,27], index: 0, kind: input, shape index: {}]   ;;  %s3588_s2 = inlined_call_operand.vmem [shape: f32[1,32], index: 2, kind: input, shape index: {}]   ;;  %s3589_s3 = inlined_call_operand.vmem [shape: bf16[1024,32], index: 3, kind: output, shape index: {}]  }
   0x1   :  { %v143_v0 = vld [vmem:[%s3586_s1] sm:$0xff]  ;;  %v144_v1 = vld [vmem:[%s3586_s1 + $0x8] sm:$0xff]  ;;  %v145_v2 = vld [vmem:[%s3586_s1 + $0x10] sm:$0xff]  ;;  %v671_v4 = vsel %vm669_vm0, 4294967295, %v2647_v3  ;;  %vm1861_vm3 = vcmask 257024  }
   0x2   :  { %v147_v5 = vpack.c.bf16 %v144_v1, %v143_v0  ;;  %v146_v6 = vld [vmem:[%s3586_s1 + $0x18] sm:$0x7]  ;;  %v672_v7 = vsel %vm670_vm1, %v671_v4, 0  ;;  %v2582_v8 = vld [vmem:[%s3587_s0] sm:$0xff]   ;;  %v2584_v12 = vld [vmem:[%s3587_s0 + $0x8] sm:$0xff]  }
   0x3   :  { %v148_v9 = vpack.c.bf16 %v146_v6, %v145_v2  ;;  %v2583_v10 = vld [vmem:[%s3587_s0 + $0x100] sm:$0xff]   ;;  %2449 = vmatprep.mubr.msk.bf16.mxu0 %vm476_vm2, %v2582_v8  ;;  %v2585_v13 = vld [vmem:[%s3587_s0 + $0x108] sm:$0xff]   ;;  %v2586_v14 = vld [vmem:[%s3587_s0 + $0x10] sm:$0xff]  }
   0x4   :  { %2445 = vmatprep.subr.bf16.mxu0 %v147_v5  ;;  %2577 = vmatprep.subr.bf16.mxu1 %v147_v5  ;;  %v2587_v15 = vld [vmem:[%s3587_s0 + $0x110] sm:$0xff]   ;;  %v2588_v16 = vld [vmem:[%s3587_s0 + $0x18] sm:$0xff]   ;;  %v2590_v18 = vld [vmem:[%s3587_s0 + $0x20] sm:$0xff]  }
   0x5   :  { %2446 = vmatpush3.bf16.msra.mxu0 %v147_v5  ;;  %2579 = vmatpush3.bf16.msra.mxu1 %v147_v5  ;;  %v674_v11 = vand.u32 %v672_v7, %v148_v9  ;;  %v2589_v17 = vld [vmem:[%s3587_s0 + $0x118] sm:$0xff]   ;;  %v2591_v19 = vld [vmem:[%s3587_s0 + $0x120] sm:$0xff]   ;;  %v2592_v20 = vld [vmem:[%s3587_s0 + $0x28] sm:$0xff]  }
   0x6   :  { %2513 = vmatprep.mubr.msk.bf16.mxu1 %vm476_vm2, %v2583_v10  ;;  %v2593_v21 = vld [vmem:[%s3587_s0 + $0x128] sm:$0xff]   ;;  %v2594_v22 = vld [vmem:[%s3587_s0 + $0x30] sm:$0xff]   ;;  %v2596_v24 = vld [vmem:[%s3587_s0 + $0x38] sm:$0xff]  }
   0x7   :  { %2447 = vmatprep.subr.bf16.mxu0 %v674_v11  ;;  %2578 = vmatprep.subr.bf16.mxu1 %v674_v11  ;;  %v2595_v23 = vld [vmem:[%s3587_s0 + $0x130] sm:$0xff]   ;;  %v2597_v25 = vld [vmem:[%s3587_s0 + $0x138] sm:$0xff]   ;;  %v2598_v26 = vld [vmem:[%s3587_s0 + $0x40] sm:$0xff]  }
   0x8   :  { %v2599_v27 = vld [vmem:[%s3587_s0 + $0x140] sm:$0xff]   ;;  %v2600_v28 = vld [vmem:[%s3587_s0 + $0x48] sm:$0xff]   ;;  %v2602_v30 = vld [vmem:[%s3587_s0 + $0x50] sm:$0xff]  }
   0x9   :  { %2448 = vmatpush3.bf16.msra.mxu0 %v674_v11  ;;  %2580 = vmatpush3.bf16.msra.mxu1 %v674_v11  ;;  %v2601_v29 = vld [vmem:[%s3587_s0 + $0x148] sm:$0xff]   ;;  %v2603_v31 = vld [vmem:[%s3587_s0 + $0x150] sm:$0xff]   ;;  %v2604_v32 = vld [vmem:[%s3587_s0 + $0x58] sm:$0xff]  }
   0xa   :  { %v2605_v33 = vld [vmem:[%s3587_s0 + $0x158] sm:$0xff]   ;;  %v2606_v34 = vld [vmem:[%s3587_s0 + $0x60] sm:$0xff]   ;;  %v2608_v36 = vld [vmem:[%s3587_s0 + $0x68] sm:$0xff]  }
   0xb   :  { %v2607_v35 = vld [vmem:[%s3587_s0 + $0x160] sm:$0xff]   ;;  %v2609_v37 = vld [vmem:[%s3587_s0 + $0x168] sm:$0xff]   ;;  %v2610_v38 = vld [vmem:[%s3587_s0 + $0x70] sm:$0xff]  }
   0xc   :  { %2450 = vmatmul.mubr.msk.bf16.vlgmr.msra.gmra.mrb[0].mxu0 %vm476_vm2, %v2584_v12  ;;  %2514 = vmatmul.mubr.msk.bf16.vlgmr.msra.gmra.mrb[0].mxu1 %vm476_vm2, %v2585_v13  ;;  %v2611_v39 = vld [vmem:[%s3587_s0 + $0x170] sm:$0xff]   ;;  %v2612_v40 = vld [vmem:[%s3587_s0 + $0x78] sm:$0xff]   ;;  %v2614_v42 = vld [vmem:[%s3587_s0 + $0x80] sm:$0xff]  }
   0xd   :  { %2453 = vmatprep.mubr.msk.bf16.mxu0 %vm476_vm2, %v2586_v14  ;;  %2517 = vmatprep.mubr.msk.bf16.mxu1 %vm476_vm2, %v2587_v15  ;;  %v2613_v41 = vld [vmem:[%s3587_s0 + $0x178] sm:$0xff]   ;;  %v2615_v43 = vld [vmem:[%s3587_s0 + $0x180] sm:$0xff]   ;;  %v2616_v44 = vld [vmem:[%s3587_s0 + $0x88] sm:$0xff]  }
   0xe   :  { %v2617_v45 = vld [vmem:[%s3587_s0 + $0x188] sm:$0xff]   ;;  %v2618_v46 = vld [vmem:[%s3587_s0 + $0x90] sm:$0xff]   ;;  %v2620_v48 = vld [vmem:[%s3587_s0 + $0x98] sm:$0xff]  }
   0xf   :  { %v2619_v47 = vld [vmem:[%s3587_s0 + $0x190] sm:$0xff]   ;;  %v2621_v49 = vld [vmem:[%s3587_s0 + $0x198] sm:$0xff]   ;;  %v2622_v50 = vld [vmem:[%s3587_s0 + $0xa0] sm:$0xff]  }
  0x10   :  { %v2623_v51 = vld [vmem:[%s3587_s0 + $0x1a0] sm:$0xff]   ;;  %v2624_v52 = vld [vmem:[%s3587_s0 + $0xa8] sm:$0xff]   ;;  %v2626_v54 = vld [vmem:[%s3587_s0 + $0xb0] sm:$0xff]  }
  0x11   :  { %v2625_v53 = vld [vmem:[%s3587_s0 + $0x1a8] sm:$0xff]   ;;  %v2627_v55 = vld [vmem:[%s3587_s0 + $0x1b0] sm:$0xff]   ;;  %v2628_v56 = vld [vmem:[%s3587_s0 + $0xb8] sm:$0xff]  }
  0x12   :  { %v2629_v57 = vld [vmem:[%s3587_s0 + $0x1b8] sm:$0xff]   ;;  %v2630_v58 = vld [vmem:[%s3587_s0 + $0xc0] sm:$0xff]   ;;  %v2632_v60 = vld [vmem:[%s3587_s0 + $0xc8] sm:$0xff]  }
  0x13   :  { %v2631_v59 = vld [vmem:[%s3587_s0 + $0x1c0] sm:$0xff]   ;;  %v2633_v61 = vld [vmem:[%s3587_s0 + $0x1c8] sm:$0xff]   ;;  %v2634_v62 = vld [vmem:[%s3587_s0 + $0xd0] sm:$0xff]  }
  0x14   :  { %2454 = vmatmul.mubr.msk.bf16.gmra.mrb[4].mxu0 %vm476_vm2, %v2588_v16  ;;  %2518 = vmatmul.mubr.msk.bf16.gmra.mrb[4].mxu1 %vm476_vm2, %v2589_v17  ;;  %v2635_v63 = vld [vmem:[%s3587_s0 + $0x1d0] sm:$0xff]   ;;  %v2636_v0 = vld [vmem:[%s3587_s0 + $0xd8] sm:$0xff]   ;;  %v2638_v2 = vld [vmem:[%s3587_s0 + $0xe0] sm:$0xff]  }
  0x15   :  { %2457 = vmatprep.mubr.msk.bf16.mxu0 %vm476_vm2, %v2590_v18  ;;  %2521 = vmatprep.mubr.msk.bf16.mxu1 %vm476_vm2, %v2591_v19  ;;  %v2637_v1 = vld [vmem:[%s3587_s0 + $0x1d8] sm:$0xff]   ;;  %v2639_v3 = vld [vmem:[%s3587_s0 + $0x1e0] sm:$0xff]   ;;  %v2640_v4 = vld [vmem:[%s3587_s0 + $0xe8] sm:$0xff]  }
  0x16   :  { %v2641_v5 = vld [vmem:[%s3587_s0 + $0x1e8] sm:$0xff]   ;;  %v2642_v6 = vld [vmem:[%s3587_s0 + $0xf0] sm:$0xff]   ;;  %v2644_v8 = vld [vmem:[%s3587_s0 + $0xf8] sm:$0xff]  }
  0x17   :  { %v2643_v7 = vld [vmem:[%s3587_s0 + $0x1f0] sm:$0xff]   ;;  %v2645_v9 = vld [vmem:[%s3587_s0 + $0x1f8] sm:$0xff]   ;;  %v2939_v10 = vld [vmem:[%s3588_s2] ss:$0 sm:$0xff] }
  0x1c   :  { %2458 = vmatmul.mubr.msk.bf16.gmra.mrb[8].mxu0 %vm476_vm2, %v2592_v20  ;;  %2522 = vmatmul.mubr.msk.bf16.gmra.mrb[8].mxu1 %vm476_vm2, %v2593_v21 }
  0x1d   :  { %2461 = vmatprep.mubr.msk.bf16.mxu0 %vm476_vm2, %v2594_v22  ;;  %2525 = vmatprep.mubr.msk.bf16.mxu1 %vm476_vm2, %v2595_v23 }
  0x24   :  { %2462 = vmatmul.mubr.msk.bf16.gmra.mrb[12].mxu0 %vm476_vm2, %v2596_v24  ;;  %2526 = vmatmul.mubr.msk.bf16.gmra.mrb[12].mxu1 %vm476_vm2, %v2597_v25 }
  0x25   :  { %2465 = vmatprep.mubr.msk.bf16.mxu0 %vm476_vm2, %v2598_v26  ;;  %2529 = vmatprep.mubr.msk.bf16.mxu1 %vm476_vm2, %v2599_v27 }
  0x2c   :  { %2466 = vmatmul.mubr.msk.bf16.gmra.mrb[16].mxu0 %vm476_vm2, %v2600_v28  ;;  %2530 = vmatmul.mubr.msk.bf16.gmra.mrb[16].mxu1 %vm476_vm2, %v2601_v29 }
  0x2d   :  { %2469 = vmatprep.mubr.msk.bf16.mxu0 %vm476_vm2, %v2602_v30  ;;  %2533 = vmatprep.mubr.msk.bf16.mxu1 %vm476_vm2, %v2603_v31 }
  0x34   :  { %2470 = vmatmul.mubr.msk.bf16.gmra.mrb[20].mxu0 %vm476_vm2, %v2604_v32  ;;  %2534 = vmatmul.mubr.msk.bf16.gmra.mrb[20].mxu1 %vm476_vm2, %v2605_v33 }
  0x35   :  { %2473 = vmatprep.mubr.msk.bf16.mxu0 %vm476_vm2, %v2606_v34  ;;  %2537 = vmatprep.mubr.msk.bf16.mxu1 %vm476_vm2, %v2607_v35 }
  0x3c   :  { %2474 = vmatmul.mubr.msk.bf16.gmra.mrb[24].mxu0 %vm476_vm2, %v2608_v36  ;;  %2538 = vmatmul.mubr.msk.bf16.gmra.mrb[24].mxu1 %vm476_vm2, %v2609_v37 }
  0x3d   :  { %2477 = vmatprep.mubr.msk.bf16.mxu0 %vm476_vm2, %v2610_v38  ;;  %2541 = vmatprep.mubr.msk.bf16.mxu1 %vm476_vm2, %v2611_v39 }
  0x44   :  { %2478 = vmatmul.mubr.msk.bf16.gmra.mrb[28].mxu0 %vm476_vm2, %v2612_v40  ;;  %2542 = vmatmul.mubr.msk.bf16.gmra.mrb[28].mxu1 %vm476_vm2, %v2613_v41 }
  0x45   :  { %2481 = vmatprep.mubr.msk.bf16.mxu0 %vm476_vm2, %v2614_v42  ;;  %2545 = vmatprep.mubr.msk.bf16.mxu1 %vm476_vm2, %v2615_v43 }
  0x4c   :  { %2482 = vmatmul.mubr.msk.bf16.gmra.mrb[32].mxu0 %vm476_vm2, %v2616_v44  ;;  %2546 = vmatmul.mubr.msk.bf16.gmra.mrb[32].mxu1 %vm476_vm2, %v2617_v45 }
  0x4d   :  { %2485 = vmatprep.mubr.msk.bf16.mxu0 %vm476_vm2, %v2618_v46  ;;  %2549 = vmatprep.mubr.msk.bf16.mxu1 %vm476_vm2, %v2619_v47 }
  0x54   :  { %2486 = vmatmul.mubr.msk.bf16.gmra.mrb[36].mxu0 %vm476_vm2, %v2620_v48  ;;  %2550 = vmatmul.mubr.msk.bf16.gmra.mrb[36].mxu1 %vm476_vm2, %v2621_v49 }
  0x55   :  { %2489 = vmatprep.mubr.msk.bf16.mxu0 %vm476_vm2, %v2622_v50  ;;  %2553 = vmatprep.mubr.msk.bf16.mxu1 %vm476_vm2, %v2623_v51 }
  0x5c   :  { %2490 = vmatmul.mubr.msk.bf16.gmra.mrb[40].mxu0 %vm476_vm2, %v2624_v52  ;;  %2554 = vmatmul.mubr.msk.bf16.gmra.mrb[40].mxu1 %vm476_vm2, %v2625_v53 }
  0x5d   :  { %2493 = vmatprep.mubr.msk.bf16.mxu0 %vm476_vm2, %v2626_v54  ;;  %2557 = vmatprep.mubr.msk.bf16.mxu1 %vm476_vm2, %v2627_v55 }
  0x64   :  { %2494 = vmatmul.mubr.msk.bf16.gmra.mrb[44].mxu0 %vm476_vm2, %v2628_v56  ;;  %2558 = vmatmul.mubr.msk.bf16.gmra.mrb[44].mxu1 %vm476_vm2, %v2629_v57 }
  0x65   :  { %2497 = vmatprep.mubr.msk.bf16.mxu0 %vm476_vm2, %v2630_v58  ;;  %2561 = vmatprep.mubr.msk.bf16.mxu1 %vm476_vm2, %v2631_v59 }
  0x6c   :  { %2498 = vmatmul.mubr.msk.bf16.gmra.mrb[48].mxu0 %vm476_vm2, %v2632_v60  ;;  %2562 = vmatmul.mubr.msk.bf16.gmra.mrb[48].mxu1 %vm476_vm2, %v2633_v61 }
  0x6d   :  { %2501 = vmatprep.mubr.msk.bf16.mxu0 %vm476_vm2, %v2634_v62  ;;  %2565 = vmatprep.mubr.msk.bf16.mxu1 %vm476_vm2, %v2635_v63 }
  0x74   :  { %2502 = vmatmul.mubr.msk.bf16.gmra.mrb[52].mxu0 %vm476_vm2, %v2636_v0  ;;  %2566 = vmatmul.mubr.msk.bf16.gmra.mrb[52].mxu1 %vm476_vm2, %v2637_v1 }
  0x75   :  { %2505 = vmatprep.mubr.msk.bf16.mxu0 %vm476_vm2, %v2638_v2  ;;  %2569 = vmatprep.mubr.msk.bf16.mxu1 %vm476_vm2, %v2639_v3 }
  0x7c   :  { %2506 = vmatmul.mubr.msk.bf16.gmra.mrb[56].mxu0 %vm476_vm2, %v2640_v4  ;;  %2570 = vmatmul.mubr.msk.bf16.gmra.mrb[56].mxu1 %vm476_vm2, %v2641_v5 }
  0x7d   :  { %2509 = vmatprep.mubr.msk.bf16.mxu0 %vm476_vm2, %v2642_v6  ;;  %2573 = vmatprep.mubr.msk.bf16.mxu1 %vm476_vm2, %v2643_v7 }
  0x84   :  { %2510 = vmatmul.mubr.msk.bf16.gmra.mrb[60].mxu0 %vm476_vm2, %v2644_v8  ;;  %2574 = vmatmul.mubr.msk.bf16.gmra.mrb[60].mxu1 %vm476_vm2, %v2645_v9 }
  0xdf   :  { %v2451_v11 = vpop.f32.mrb[0].mxu0  ;;  %v2515_v12 = vpop.f32.mrb[0].mxu1 }
  0xe0   :  { %v719_v13 = vadd.f32 %v2451_v11, %v2939_v10  ;;  %v975_v14 = vadd.f32 %v2515_v12, %v2939_v10  ;;  %v710_v15 = vpop.f32.mrb[1].mxu0  ;;  %v966_v16 = vpop.f32.mrb[1].mxu1 }
  0xe1   :  { %v711_v17 = vadd.f32 %v2939_v10, %v710_v15  ;;  %v967_v18 = vadd.f32 %v2939_v10, %v966_v16  ;;  %v2452_v19 = vpop.f32.mrb[2].mxu0  ;;  %v2516_v20 = vpop.f32.mrb[2].mxu1 }
  0xe2   :  { %v1223_v21 = vmax.f32 %v719_v13, 0.0  ;;  %v1287_v22 = vmax.f32 %v975_v14, 0.0  ;;  %v722_v23 = vadd.f32 %v2452_v19, %v2939_v10  ;;  %v978_v24 = vadd.f32 %v2516_v20, %v2939_v10  ;;  %v713_v25 = vpop.f32.mrb[3].mxu0  ;;  %v969_v26 = vpop.f32.mrb[3].mxu1 }
  0xe3   :  { %v1221_v27 = vmax.f32 %v711_v17, 0.0  ;;  %v1285_v28 = vmax.f32 %v967_v18, 0.0  ;;  %v714_v29 = vadd.f32 %v2939_v10, %v713_v25  ;;  %v970_v30 = vadd.f32 %v2939_v10, %v969_v26 }
  0xe4   :  { %v2253_v31 = vpack.c.bf16 %v1223_v21, %v1223_v21  ;;  %v2317_v32 = vpack.c.bf16 %v1287_v22, %v1287_v22  ;;  %v1224_v33 = vmax.f32 %v722_v23, 0.0  ;;  %v1288_v34 = vmax.f32 %v978_v24, 0.0 }
  0xe5   :  { %v2251_v35 = vpack.c.bf16 %v1221_v27, %v1221_v27  ;;  %v2315_v36 = vpack.c.bf16 %v1285_v28, %v1285_v28  ;;  %v1222_v37 = vmax.f32 %v714_v29, 0.0  ;;  %v1286_v38 = vmax.f32 %v970_v30, 0.0 }
  0xe6   :  { %1864 = vst.msk [vmem:[%s3589_s3 + $0x8] sm:$0xf] %vm1861_vm3, %v2253_v31  ;;  %1928 = vst.msk [vmem:[%s3589_s3 + $0x108] sm:$0xf] %vm1861_vm3, %v2317_v32  ;;  %v2254_v39 = vpack.c.bf16 %v1224_v33, %v1224_v33  ;;  %v2318_v40 = vpack.c.bf16 %v1288_v34, %v1288_v34 }
  0xe7   :  { %1862 = vst.msk [vmem:[%s3589_s3] sm:$0xf] %vm1861_vm3, %v2251_v35  ;;  %1926 = vst.msk [vmem:[%s3589_s3 + $0x100] sm:$0xf] %vm1861_vm3, %v2315_v36  ;;  %v2252_v41 = vpack.c.bf16 %v1222_v37, %v1222_v37  ;;  %v2316_v42 = vpack.c.bf16 %v1286_v38, %v1286_v38  ;;  %v2455_v43 = vpop.f32.mrb[4].mxu0  ;;  %v2519_v44 = vpop.f32.mrb[4].mxu1 }
  0xe8   :  { %1865 = vst.msk [vmem:[%s3589_s3 + $0xc] sm:$0xf] %vm1861_vm3, %v2254_v39  ;;  %1929 = vst.msk [vmem:[%s3589_s3 + $0x10c] sm:$0xf] %vm1861_vm3, %v2318_v40  ;;  %v735_v45 = vadd.f32 %v2455_v43, %v2939_v10  ;;  %v991_v46 = vadd.f32 %v2519_v44, %v2939_v10  ;;  %v726_v47 = vpop.f32.mrb[5].mxu0  ;;  %v982_v48 = vpop.f32.mrb[5].mxu1 }
  0xe9   :  { %1863 = vst.msk [vmem:[%s3589_s3 + $0x4] sm:$0xf] %vm1861_vm3, %v2252_v41  ;;  %1927 = vst.msk [vmem:[%s3589_s3 + $0x104] sm:$0xf] %vm1861_vm3, %v2316_v42  ;;  %v727_v49 = vadd.f32 %v2939_v10, %v726_v47  ;;  %v983_v50 = vadd.f32 %v2939_v10, %v982_v48  ;;  %v2456_v51 = vpop.f32.mrb[6].mxu0  ;;  %v2520_v52 = vpop.f32.mrb[6].mxu1 }
  0xea   :  { %v1227_v53 = vmax.f32 %v735_v45, 0.0  ;;  %v1291_v54 = vmax.f32 %v991_v46, 0.0  ;;  %v738_v55 = vadd.f32 %v2456_v51, %v2939_v10  ;;  %v994_v56 = vadd.f32 %v2520_v52, %v2939_v10  ;;  %v729_v57 = vpop.f32.mrb[7].mxu0  ;;  %v985_v58 = vpop.f32.mrb[7].mxu1 }
  0xeb   :  { %v1225_v59 = vmax.f32 %v727_v49, 0.0  ;;  %v1289_v60 = vmax.f32 %v983_v50, 0.0  ;;  %v730_v61 = vadd.f32 %v2939_v10, %v729_v57  ;;  %v986_v62 = vadd.f32 %v2939_v10, %v985_v58 }
  0xec   :  { %v2257_v63 = vpack.c.bf16 %v1227_v53, %v1227_v53  ;;  %v2321_v0 = vpack.c.bf16 %v1291_v54, %v1291_v54  ;;  %v1228_v1 = vmax.f32 %v738_v55, 0.0  ;;  %v1292_v2 = vmax.f32 %v994_v56, 0.0 }
  0xed   :  { %v2255_v3 = vpack.c.bf16 %v1225_v59, %v1225_v59  ;;  %v2319_v4 = vpack.c.bf16 %v1289_v60, %v1289_v60  ;;  %v1226_v5 = vmax.f32 %v730_v61, 0.0  ;;  %v1290_v6 = vmax.f32 %v986_v62, 0.0 }
  0xee   :  { %1868 = vst.msk [vmem:[%s3589_s3 + $0x18] sm:$0xf] %vm1861_vm3, %v2257_v63  ;;  %1932 = vst.msk [vmem:[%s3589_s3 + $0x118] sm:$0xf] %vm1861_vm3, %v2321_v0  ;;  %v2258_v7 = vpack.c.bf16 %v1228_v1, %v1228_v1  ;;  %v2322_v8 = vpack.c.bf16 %v1292_v2, %v1292_v2 }
  0xef   :  { %1866 = vst.msk [vmem:[%s3589_s3 + $0x10] sm:$0xf] %vm1861_vm3, %v2255_v3  ;;  %1930 = vst.msk [vmem:[%s3589_s3 + $0x110] sm:$0xf] %vm1861_vm3, %v2319_v4  ;;  %v2256_v9 = vpack.c.bf16 %v1226_v5, %v1226_v5  ;;  %v2320_v11 = vpack.c.bf16 %v1290_v6, %v1290_v6  ;;  %v2459_v12 = vpop.f32.mrb[8].mxu0  ;;  %v2523_v13 = vpop.f32.mrb[8].mxu1 }
  0xf0   :  { %1869 = vst.msk [vmem:[%s3589_s3 + $0x1c] sm:$0xf] %vm1861_vm3, %v2258_v7  ;;  %1933 = vst.msk [vmem:[%s3589_s3 + $0x11c] sm:$0xf] %vm1861_vm3, %v2322_v8  ;;  %v751_v14 = vadd.f32 %v2459_v12, %v2939_v10  ;;  %v1007_v15 = vadd.f32 %v2523_v13, %v2939_v10  ;;  %v742_v16 = vpop.f32.mrb[9].mxu0  ;;  %v998_v17 = vpop.f32.mrb[9].mxu1 }
  0xf1   :  { %1867 = vst.msk [vmem:[%s3589_s3 + $0x14] sm:$0xf] %vm1861_vm3, %v2256_v9  ;;  %1931 = vst.msk [vmem:[%s3589_s3 + $0x114] sm:$0xf] %vm1861_vm3, %v2320_v11  ;;  %v743_v18 = vadd.f32 %v2939_v10, %v742_v16  ;;  %v999_v19 = vadd.f32 %v2939_v10, %v998_v17  ;;  %v2460_v20 = vpop.f32.mrb[10].mxu0  ;;  %v2524_v21 = vpop.f32.mrb[10].mxu1 }
  0xf2   :  { %v1231_v22 = vmax.f32 %v751_v14, 0.0  ;;  %v1295_v23 = vmax.f32 %v1007_v15, 0.0  ;;  %v754_v24 = vadd.f32 %v2460_v20, %v2939_v10  ;;  %v1010_v25 = vadd.f32 %v2524_v21, %v2939_v10  ;;  %v745_v26 = vpop.f32.mrb[11].mxu0  ;;  %v1001_v27 = vpop.f32.mrb[11].mxu1 }
  0xf3   :  { %v1229_v28 = vmax.f32 %v743_v18, 0.0  ;;  %v1293_v29 = vmax.f32 %v999_v19, 0.0  ;;  %v746_v30 = vadd.f32 %v2939_v10, %v745_v26  ;;  %v1002_v31 = vadd.f32 %v2939_v10, %v1001_v27 }
  0xf4   :  { %v2261_v32 = vpack.c.bf16 %v1231_v22, %v1231_v22  ;;  %v2325_v33 = vpack.c.bf16 %v1295_v23, %v1295_v23  ;;  %v1232_v34 = vmax.f32 %v754_v24, 0.0  ;;  %v1296_v35 = vmax.f32 %v1010_v25, 0.0 }
  0xf5   :  { %v2259_v36 = vpack.c.bf16 %v1229_v28, %v1229_v28  ;;  %v2323_v37 = vpack.c.bf16 %v1293_v29, %v1293_v29  ;;  %v1230_v38 = vmax.f32 %v746_v30, 0.0  ;;  %v1294_v39 = vmax.f32 %v1002_v31, 0.0 }
  0xf6   :  { %1872 = vst.msk [vmem:[%s3589_s3 + $0x28] sm:$0xf] %vm1861_vm3, %v2261_v32  ;;  %1936 = vst.msk [vmem:[%s3589_s3 + $0x128] sm:$0xf] %vm1861_vm3, %v2325_v33  ;;  %v2262_v40 = vpack.c.bf16 %v1232_v34, %v1232_v34  ;;  %v2326_v41 = vpack.c.bf16 %v1296_v35, %v1296_v35 }
  0xf7   :  { %1870 = vst.msk [vmem:[%s3589_s3 + $0x20] sm:$0xf] %vm1861_vm3, %v2259_v36  ;;  %1934 = vst.msk [vmem:[%s3589_s3 + $0x120] sm:$0xf] %vm1861_vm3, %v2323_v37  ;;  %v2260_v42 = vpack.c.bf16 %v1230_v38, %v1230_v38  ;;  %v2324_v43 = vpack.c.bf16 %v1294_v39, %v1294_v39  ;;  %v2463_v44 = vpop.f32.mrb[12].mxu0  ;;  %v2527_v45 = vpop.f32.mrb[12].mxu1 }
  0xf8   :  { %1873 = vst.msk [vmem:[%s3589_s3 + $0x2c] sm:$0xf] %vm1861_vm3, %v2262_v40  ;;  %1937 = vst.msk [vmem:[%s3589_s3 + $0x12c] sm:$0xf] %vm1861_vm3, %v2326_v41  ;;  %v767_v46 = vadd.f32 %v2463_v44, %v2939_v10  ;;  %v1023_v47 = vadd.f32 %v2527_v45, %v2939_v10  ;;  %v758_v48 = vpop.f32.mrb[13].mxu0  ;;  %v1014_v49 = vpop.f32.mrb[13].mxu1 }
  0xf9   :  { %1871 = vst.msk [vmem:[%s3589_s3 + $0x24] sm:$0xf] %vm1861_vm3, %v2260_v42  ;;  %1935 = vst.msk [vmem:[%s3589_s3 + $0x124] sm:$0xf] %vm1861_vm3, %v2324_v43  ;;  %v759_v50 = vadd.f32 %v2939_v10, %v758_v48  ;;  %v1015_v51 = vadd.f32 %v2939_v10, %v1014_v49  ;;  %v2464_v52 = vpop.f32.mrb[14].mxu0  ;;  %v2528_v53 = vpop.f32.mrb[14].mxu1 }
  0xfa   :  { %v1235_v54 = vmax.f32 %v767_v46, 0.0  ;;  %v1299_v55 = vmax.f32 %v1023_v47, 0.0  ;;  %v770_v56 = vadd.f32 %v2464_v52, %v2939_v10  ;;  %v1026_v57 = vadd.f32 %v2528_v53, %v2939_v10  ;;  %v761_v58 = vpop.f32.mrb[15].mxu0  ;;  %v1017_v59 = vpop.f32.mrb[15].mxu1 }
  0xfb   :  { %v1233_v60 = vmax.f32 %v759_v50, 0.0  ;;  %v1297_v61 = vmax.f32 %v1015_v51, 0.0  ;;  %v762_v62 = vadd.f32 %v2939_v10, %v761_v58  ;;  %v1018_v63 = vadd.f32 %v2939_v10, %v1017_v59 }
  0xfc   :  { %v2265_v0 = vpack.c.bf16 %v1235_v54, %v1235_v54  ;;  %v2329_v1 = vpack.c.bf16 %v1299_v55, %v1299_v55  ;;  %v1236_v2 = vmax.f32 %v770_v56, 0.0  ;;  %v1300_v3 = vmax.f32 %v1026_v57, 0.0 }
  0xfd   :  { %v2263_v4 = vpack.c.bf16 %v1233_v60, %v1233_v60  ;;  %v2327_v5 = vpack.c.bf16 %v1297_v61, %v1297_v61  ;;  %v1234_v6 = vmax.f32 %v762_v62, 0.0  ;;  %v1298_v7 = vmax.f32 %v1018_v63, 0.0 }
  0xfe   :  { %1876 = vst.msk [vmem:[%s3589_s3 + $0x38] sm:$0xf] %vm1861_vm3, %v2265_v0  ;;  %1940 = vst.msk [vmem:[%s3589_s3 + $0x138] sm:$0xf] %vm1861_vm3, %v2329_v1  ;;  %v2266_v8 = vpack.c.bf16 %v1236_v2, %v1236_v2  ;;  %v2330_v9 = vpack.c.bf16 %v1300_v3, %v1300_v3 }
  0xff   :  { %1874 = vst.msk [vmem:[%s3589_s3 + $0x30] sm:$0xf] %vm1861_vm3, %v2263_v4  ;;  %1938 = vst.msk [vmem:[%s3589_s3 + $0x130] sm:$0xf] %vm1861_vm3, %v2327_v5  ;;  %v2264_v11 = vpack.c.bf16 %v1234_v6, %v1234_v6  ;;  %v2328_v12 = vpack.c.bf16 %v1298_v7, %v1298_v7  ;;  %v2467_v13 = vpop.f32.mrb[16].mxu0  ;;  %v2531_v14 = vpop.f32.mrb[16].mxu1 }
 0x100   :  { %1877 = vst.msk [vmem:[%s3589_s3 + $0x3c] sm:$0xf] %vm1861_vm3, %v2266_v8  ;;  %1941 = vst.msk [vmem:[%s3589_s3 + $0x13c] sm:$0xf] %vm1861_vm3, %v2330_v9  ;;  %v783_v15 = vadd.f32 %v2467_v13, %v2939_v10  ;;  %v1039_v16 = vadd.f32 %v2531_v14, %v2939_v10  ;;  %v774_v17 = vpop.f32.mrb[17].mxu0  ;;  %v1030_v18 = vpop.f32.mrb[17].mxu1 }
 0x101   :  { %1875 = vst.msk [vmem:[%s3589_s3 + $0x34] sm:$0xf] %vm1861_vm3, %v2264_v11  ;;  %1939 = vst.msk [vmem:[%s3589_s3 + $0x134] sm:$0xf] %vm1861_vm3, %v2328_v12  ;;  %v775_v19 = vadd.f32 %v2939_v10, %v774_v17  ;;  %v1031_v20 = vadd.f32 %v2939_v10, %v1030_v18  ;;  %v2468_v21 = vpop.f32.mrb[18].mxu0  ;;  %v2532_v22 = vpop.f32.mrb[18].mxu1 }
 0x102   :  { %v1239_v23 = vmax.f32 %v783_v15, 0.0  ;;  %v1303_v24 = vmax.f32 %v1039_v16, 0.0  ;;  %v786_v25 = vadd.f32 %v2468_v21, %v2939_v10  ;;  %v1042_v26 = vadd.f32 %v2532_v22, %v2939_v10  ;;  %v777_v27 = vpop.f32.mrb[19].mxu0  ;;  %v1033_v28 = vpop.f32.mrb[19].mxu1 }
 0x103   :  { %v1237_v29 = vmax.f32 %v775_v19, 0.0  ;;  %v1301_v30 = vmax.f32 %v1031_v20, 0.0  ;;  %v778_v31 = vadd.f32 %v2939_v10, %v777_v27  ;;  %v1034_v32 = vadd.f32 %v2939_v10, %v1033_v28 }
 0x104   :  { %v2269_v33 = vpack.c.bf16 %v1239_v23, %v1239_v23  ;;  %v2333_v34 = vpack.c.bf16 %v1303_v24, %v1303_v24  ;;  %v1240_v35 = vmax.f32 %v786_v25, 0.0  ;;  %v1304_v36 = vmax.f32 %v1042_v26, 0.0 }
 0x105   :  { %v2267_v37 = vpack.c.bf16 %v1237_v29, %v1237_v29  ;;  %v2331_v38 = vpack.c.bf16 %v1301_v30, %v1301_v30  ;;  %v1238_v39 = vmax.f32 %v778_v31, 0.0  ;;  %v1302_v40 = vmax.f32 %v1034_v32, 0.0 }
 0x106   :  { %1880 = vst.msk [vmem:[%s3589_s3 + $0x48] sm:$0xf] %vm1861_vm3, %v2269_v33  ;;  %1944 = vst.msk [vmem:[%s3589_s3 + $0x148] sm:$0xf] %vm1861_vm3, %v2333_v34  ;;  %v2270_v41 = vpack.c.bf16 %v1240_v35, %v1240_v35  ;;  %v2334_v42 = vpack.c.bf16 %v1304_v36, %v1304_v36 }
 0x107   :  { %1878 = vst.msk [vmem:[%s3589_s3 + $0x40] sm:$0xf] %vm1861_vm3, %v2267_v37  ;;  %1942 = vst.msk [vmem:[%s3589_s3 + $0x140] sm:$0xf] %vm1861_vm3, %v2331_v38  ;;  %v2268_v43 = vpack.c.bf16 %v1238_v39, %v1238_v39  ;;  %v2332_v44 = vpack.c.bf16 %v1302_v40, %v1302_v40  ;;  %v2471_v45 = vpop.f32.mrb[20].mxu0  ;;  %v2535_v46 = vpop.f32.mrb[20].mxu1 }
 0x108   :  { %1881 = vst.msk [vmem:[%s3589_s3 + $0x4c] sm:$0xf] %vm1861_vm3, %v2270_v41  ;;  %1945 = vst.msk [vmem:[%s3589_s3 + $0x14c] sm:$0xf] %vm1861_vm3, %v2334_v42  ;;  %v799_v47 = vadd.f32 %v2471_v45, %v2939_v10  ;;  %v1055_v48 = vadd.f32 %v2535_v46, %v2939_v10  ;;  %v790_v49 = vpop.f32.mrb[21].mxu0  ;;  %v1046_v50 = vpop.f32.mrb[21].mxu1 }
 0x109   :  { %1879 = vst.msk [vmem:[%s3589_s3 + $0x44] sm:$0xf] %vm1861_vm3, %v2268_v43  ;;  %1943 = vst.msk [vmem:[%s3589_s3 + $0x144] sm:$0xf] %vm1861_vm3, %v2332_v44  ;;  %v791_v51 = vadd.f32 %v2939_v10, %v790_v49  ;;  %v1047_v52 = vadd.f32 %v2939_v10, %v1046_v50  ;;  %v2472_v53 = vpop.f32.mrb[22].mxu0  ;;  %v2536_v54 = vpop.f32.mrb[22].mxu1 }
 0x10a   :  { %v1243_v55 = vmax.f32 %v799_v47, 0.0  ;;  %v1307_v56 = vmax.f32 %v1055_v48, 0.0  ;;  %v802_v57 = vadd.f32 %v2472_v53, %v2939_v10  ;;  %v1058_v58 = vadd.f32 %v2536_v54, %v2939_v10  ;;  %v793_v59 = vpop.f32.mrb[23].mxu0  ;;  %v1049_v60 = vpop.f32.mrb[23].mxu1 }
 0x10b   :  { %v1241_v61 = vmax.f32 %v791_v51, 0.0  ;;  %v1305_v62 = vmax.f32 %v1047_v52, 0.0  ;;  %v794_v63 = vadd.f32 %v2939_v10, %v793_v59  ;;  %v1050_v0 = vadd.f32 %v2939_v10, %v1049_v60 }
 0x10c   :  { %v2273_v1 = vpack.c.bf16 %v1243_v55, %v1243_v55  ;;  %v2337_v2 = vpack.c.bf16 %v1307_v56, %v1307_v56  ;;  %v1244_v3 = vmax.f32 %v802_v57, 0.0  ;;  %v1308_v4 = vmax.f32 %v1058_v58, 0.0 }
 0x10d   :  { %v2271_v5 = vpack.c.bf16 %v1241_v61, %v1241_v61  ;;  %v2335_v6 = vpack.c.bf16 %v1305_v62, %v1305_v62  ;;  %v1242_v7 = vmax.f32 %v794_v63, 0.0  ;;  %v1306_v8 = vmax.f32 %v1050_v0, 0.0 }
 0x10e   :  { %1884 = vst.msk [vmem:[%s3589_s3 + $0x58] sm:$0xf] %vm1861_vm3, %v2273_v1  ;;  %1948 = vst.msk [vmem:[%s3589_s3 + $0x158] sm:$0xf] %vm1861_vm3, %v2337_v2  ;;  %v2274_v9 = vpack.c.bf16 %v1244_v3, %v1244_v3  ;;  %v2338_v11 = vpack.c.bf16 %v1308_v4, %v1308_v4 }
 0x10f   :  { %1882 = vst.msk [vmem:[%s3589_s3 + $0x50] sm:$0xf] %vm1861_vm3, %v2271_v5  ;;  %1946 = vst.msk [vmem:[%s3589_s3 + $0x150] sm:$0xf] %vm1861_vm3, %v2335_v6  ;;  %v2272_v12 = vpack.c.bf16 %v1242_v7, %v1242_v7  ;;  %v2336_v13 = vpack.c.bf16 %v1306_v8, %v1306_v8  ;;  %v2475_v14 = vpop.f32.mrb[24].mxu0  ;;  %v2539_v15 = vpop.f32.mrb[24].mxu1 }
 0x110   :  { %1885 = vst.msk [vmem:[%s3589_s3 + $0x5c] sm:$0xf] %vm1861_vm3, %v2274_v9  ;;  %1949 = vst.msk [vmem:[%s3589_s3 + $0x15c] sm:$0xf] %vm1861_vm3, %v2338_v11  ;;  %v815_v16 = vadd.f32 %v2475_v14, %v2939_v10  ;;  %v1071_v17 = vadd.f32 %v2539_v15, %v2939_v10  ;;  %v806_v18 = vpop.f32.mrb[25].mxu0  ;;  %v1062_v19 = vpop.f32.mrb[25].mxu1 }
 0x111   :  { %1883 = vst.msk [vmem:[%s3589_s3 + $0x54] sm:$0xf] %vm1861_vm3, %v2272_v12  ;;  %1947 = vst.msk [vmem:[%s3589_s3 + $0x154] sm:$0xf] %vm1861_vm3, %v2336_v13  ;;  %v807_v20 = vadd.f32 %v2939_v10, %v806_v18  ;;  %v1063_v21 = vadd.f32 %v2939_v10, %v1062_v19  ;;  %v2476_v22 = vpop.f32.mrb[26].mxu0  ;;  %v2540_v23 = vpop.f32.mrb[26].mxu1 }
 0x112   :  { %v1247_v24 = vmax.f32 %v815_v16, 0.0  ;;  %v1311_v25 = vmax.f32 %v1071_v17, 0.0  ;;  %v818_v26 = vadd.f32 %v2476_v22, %v2939_v10  ;;  %v1074_v27 = vadd.f32 %v2540_v23, %v2939_v10  ;;  %v809_v28 = vpop.f32.mrb[27].mxu0  ;;  %v1065_v29 = vpop.f32.mrb[27].mxu1 }
 0x113   :  { %v1245_v30 = vmax.f32 %v807_v20, 0.0  ;;  %v1309_v31 = vmax.f32 %v1063_v21, 0.0  ;;  %v810_v32 = vadd.f32 %v2939_v10, %v809_v28  ;;  %v1066_v33 = vadd.f32 %v2939_v10, %v1065_v29 }
 0x114   :  { %v2277_v34 = vpack.c.bf16 %v1247_v24, %v1247_v24  ;;  %v2341_v35 = vpack.c.bf16 %v1311_v25, %v1311_v25  ;;  %v1248_v36 = vmax.f32 %v818_v26, 0.0  ;;  %v1312_v37 = vmax.f32 %v1074_v27, 0.0 }
 0x115   :  { %v2275_v38 = vpack.c.bf16 %v1245_v30, %v1245_v30  ;;  %v2339_v39 = vpack.c.bf16 %v1309_v31, %v1309_v31  ;;  %v1246_v40 = vmax.f32 %v810_v32, 0.0  ;;  %v1310_v41 = vmax.f32 %v1066_v33, 0.0 }
 0x116   :  { %1888 = vst.msk [vmem:[%s3589_s3 + $0x68] sm:$0xf] %vm1861_vm3, %v2277_v34  ;;  %1952 = vst.msk [vmem:[%s3589_s3 + $0x168] sm:$0xf] %vm1861_vm3, %v2341_v35  ;;  %v2278_v42 = vpack.c.bf16 %v1248_v36, %v1248_v36  ;;  %v2342_v43 = vpack.c.bf16 %v1312_v37, %v1312_v37 }
 0x117   :  { %1886 = vst.msk [vmem:[%s3589_s3 + $0x60] sm:$0xf] %vm1861_vm3, %v2275_v38  ;;  %1950 = vst.msk [vmem:[%s3589_s3 + $0x160] sm:$0xf] %vm1861_vm3, %v2339_v39  ;;  %v2276_v44 = vpack.c.bf16 %v1246_v40, %v1246_v40  ;;  %v2340_v45 = vpack.c.bf16 %v1310_v41, %v1310_v41  ;;  %v2479_v46 = vpop.f32.mrb[28].mxu0  ;;  %v2543_v47 = vpop.f32.mrb[28].mxu1 }
 0x118   :  { %1889 = vst.msk [vmem:[%s3589_s3 + $0x6c] sm:$0xf] %vm1861_vm3, %v2278_v42  ;;  %1953 = vst.msk [vmem:[%s3589_s3 + $0x16c] sm:$0xf] %vm1861_vm3, %v2342_v43  ;;  %v831_v48 = vadd.f32 %v2479_v46, %v2939_v10  ;;  %v1087_v49 = vadd.f32 %v2543_v47, %v2939_v10  ;;  %v822_v50 = vpop.f32.mrb[29].mxu0  ;;  %v1078_v51 = vpop.f32.mrb[29].mxu1 }
 0x119   :  { %1887 = vst.msk [vmem:[%s3589_s3 + $0x64] sm:$0xf] %vm1861_vm3, %v2276_v44  ;;  %1951 = vst.msk [vmem:[%s3589_s3 + $0x164] sm:$0xf] %vm1861_vm3, %v2340_v45  ;;  %v823_v52 = vadd.f32 %v2939_v10, %v822_v50  ;;  %v1079_v53 = vadd.f32 %v2939_v10, %v1078_v51  ;;  %v2480_v54 = vpop.f32.mrb[30].mxu0  ;;  %v2544_v55 = vpop.f32.mrb[30].mxu1 }
 0x11a   :  { %v1251_v56 = vmax.f32 %v831_v48, 0.0  ;;  %v1315_v57 = vmax.f32 %v1087_v49, 0.0  ;;  %v834_v58 = vadd.f32 %v2480_v54, %v2939_v10  ;;  %v1090_v59 = vadd.f32 %v2544_v55, %v2939_v10  ;;  %v825_v60 = vpop.f32.mrb[31].mxu0  ;;  %v1081_v61 = vpop.f32.mrb[31].mxu1 }
 0x11b   :  { %v1249_v62 = vmax.f32 %v823_v52, 0.0  ;;  %v1313_v63 = vmax.f32 %v1079_v53, 0.0  ;;  %v826_v0 = vadd.f32 %v2939_v10, %v825_v60  ;;  %v1082_v1 = vadd.f32 %v2939_v10, %v1081_v61 }
 0x11c   :  { %v2281_v2 = vpack.c.bf16 %v1251_v56, %v1251_v56  ;;  %v2345_v3 = vpack.c.bf16 %v1315_v57, %v1315_v57  ;;  %v1252_v4 = vmax.f32 %v834_v58, 0.0  ;;  %v1316_v5 = vmax.f32 %v1090_v59, 0.0 }
 0x11d   :  { %v2279_v6 = vpack.c.bf16 %v1249_v62, %v1249_v62  ;;  %v2343_v7 = vpack.c.bf16 %v1313_v63, %v1313_v63  ;;  %v1250_v8 = vmax.f32 %v826_v0, 0.0  ;;  %v1314_v9 = vmax.f32 %v1082_v1, 0.0 }
 0x11e   :  { %1892 = vst.msk [vmem:[%s3589_s3 + $0x78] sm:$0xf] %vm1861_vm3, %v2281_v2  ;;  %1956 = vst.msk [vmem:[%s3589_s3 + $0x178] sm:$0xf] %vm1861_vm3, %v2345_v3  ;;  %v2282_v11 = vpack.c.bf16 %v1252_v4, %v1252_v4  ;;  %v2346_v12 = vpack.c.bf16 %v1316_v5, %v1316_v5 }
 0x11f   :  { %1890 = vst.msk [vmem:[%s3589_s3 + $0x70] sm:$0xf] %vm1861_vm3, %v2279_v6  ;;  %1954 = vst.msk [vmem:[%s3589_s3 + $0x170] sm:$0xf] %vm1861_vm3, %v2343_v7  ;;  %v2280_v13 = vpack.c.bf16 %v1250_v8, %v1250_v8  ;;  %v2344_v14 = vpack.c.bf16 %v1314_v9, %v1314_v9  ;;  %v2483_v15 = vpop.f32.mrb[32].mxu0  ;;  %v2547_v16 = vpop.f32.mrb[32].mxu1 }
 0x120   :  { %1893 = vst.msk [vmem:[%s3589_s3 + $0x7c] sm:$0xf] %vm1861_vm3, %v2282_v11  ;;  %1957 = vst.msk [vmem:[%s3589_s3 + $0x17c] sm:$0xf] %vm1861_vm3, %v2346_v12  ;;  %v847_v17 = vadd.f32 %v2483_v15, %v2939_v10  ;;  %v1103_v18 = vadd.f32 %v2547_v16, %v2939_v10  ;;  %v838_v19 = vpop.f32.mrb[33].mxu0  ;;  %v1094_v20 = vpop.f32.mrb[33].mxu1 }
 0x121   :  { %1891 = vst.msk [vmem:[%s3589_s3 + $0x74] sm:$0xf] %vm1861_vm3, %v2280_v13  ;;  %1955 = vst.msk [vmem:[%s3589_s3 + $0x174] sm:$0xf] %vm1861_vm3, %v2344_v14  ;;  %v839_v21 = vadd.f32 %v2939_v10, %v838_v19  ;;  %v1095_v22 = vadd.f32 %v2939_v10, %v1094_v20  ;;  %v2484_v23 = vpop.f32.mrb[34].mxu0  ;;  %v2548_v24 = vpop.f32.mrb[34].mxu1 }
 0x122   :  { %v1255_v25 = vmax.f32 %v847_v17, 0.0  ;;  %v1319_v26 = vmax.f32 %v1103_v18, 0.0  ;;  %v850_v27 = vadd.f32 %v2484_v23, %v2939_v10  ;;  %v1106_v28 = vadd.f32 %v2548_v24, %v2939_v10  ;;  %v841_v29 = vpop.f32.mrb[35].mxu0  ;;  %v1097_v30 = vpop.f32.mrb[35].mxu1 }
 0x123   :  { %v1253_v31 = vmax.f32 %v839_v21, 0.0  ;;  %v1317_v32 = vmax.f32 %v1095_v22, 0.0  ;;  %v842_v33 = vadd.f32 %v2939_v10, %v841_v29  ;;  %v1098_v34 = vadd.f32 %v2939_v10, %v1097_v30 }
 0x124   :  { %v2285_v35 = vpack.c.bf16 %v1255_v25, %v1255_v25  ;;  %v2349_v36 = vpack.c.bf16 %v1319_v26, %v1319_v26  ;;  %v1256_v37 = vmax.f32 %v850_v27, 0.0  ;;  %v1320_v38 = vmax.f32 %v1106_v28, 0.0 }
 0x125   :  { %v2283_v39 = vpack.c.bf16 %v1253_v31, %v1253_v31  ;;  %v2347_v40 = vpack.c.bf16 %v1317_v32, %v1317_v32  ;;  %v1254_v41 = vmax.f32 %v842_v33, 0.0  ;;  %v1318_v42 = vmax.f32 %v1098_v34, 0.0 }
 0x126   :  { %1896 = vst.msk [vmem:[%s3589_s3 + $0x88] sm:$0xf] %vm1861_vm3, %v2285_v35  ;;  %1960 = vst.msk [vmem:[%s3589_s3 + $0x188] sm:$0xf] %vm1861_vm3, %v2349_v36  ;;  %v2286_v43 = vpack.c.bf16 %v1256_v37, %v1256_v37  ;;  %v2350_v44 = vpack.c.bf16 %v1320_v38, %v1320_v38 }
 0x127   :  { %1894 = vst.msk [vmem:[%s3589_s3 + $0x80] sm:$0xf] %vm1861_vm3, %v2283_v39  ;;  %1958 = vst.msk [vmem:[%s3589_s3 + $0x180] sm:$0xf] %vm1861_vm3, %v2347_v40  ;;  %v2284_v45 = vpack.c.bf16 %v1254_v41, %v1254_v41  ;;  %v2348_v46 = vpack.c.bf16 %v1318_v42, %v1318_v42  ;;  %v2487_v47 = vpop.f32.mrb[36].mxu0  ;;  %v2551_v48 = vpop.f32.mrb[36].mxu1 }
 0x128   :  { %1897 = vst.msk [vmem:[%s3589_s3 + $0x8c] sm:$0xf] %vm1861_vm3, %v2286_v43  ;;  %1961 = vst.msk [vmem:[%s3589_s3 + $0x18c] sm:$0xf] %vm1861_vm3, %v2350_v44  ;;  %v863_v49 = vadd.f32 %v2487_v47, %v2939_v10  ;;  %v1119_v50 = vadd.f32 %v2551_v48, %v2939_v10  ;;  %v854_v51 = vpop.f32.mrb[37].mxu0  ;;  %v1110_v52 = vpop.f32.mrb[37].mxu1 }
 0x129   :  { %1895 = vst.msk [vmem:[%s3589_s3 + $0x84] sm:$0xf] %vm1861_vm3, %v2284_v45  ;;  %1959 = vst.msk [vmem:[%s3589_s3 + $0x184] sm:$0xf] %vm1861_vm3, %v2348_v46  ;;  %v855_v53 = vadd.f32 %v2939_v10, %v854_v51  ;;  %v1111_v54 = vadd.f32 %v2939_v10, %v1110_v52  ;;  %v2488_v55 = vpop.f32.mrb[38].mxu0  ;;  %v2552_v56 = vpop.f32.mrb[38].mxu1 }
 0x12a   :  { %v1259_v57 = vmax.f32 %v863_v49, 0.0  ;;  %v1323_v58 = vmax.f32 %v1119_v50, 0.0  ;;  %v866_v59 = vadd.f32 %v2488_v55, %v2939_v10  ;;  %v1122_v60 = vadd.f32 %v2552_v56, %v2939_v10  ;;  %v857_v61 = vpop.f32.mrb[39].mxu0  ;;  %v1113_v62 = vpop.f32.mrb[39].mxu1 }
 0x12b   :  { %v1257_v63 = vmax.f32 %v855_v53, 0.0  ;;  %v1321_v0 = vmax.f32 %v1111_v54, 0.0  ;;  %v858_v1 = vadd.f32 %v2939_v10, %v857_v61  ;;  %v1114_v2 = vadd.f32 %v2939_v10, %v1113_v62 }
 0x12c   :  { %v2289_v3 = vpack.c.bf16 %v1259_v57, %v1259_v57  ;;  %v2353_v4 = vpack.c.bf16 %v1323_v58, %v1323_v58  ;;  %v1260_v5 = vmax.f32 %v866_v59, 0.0  ;;  %v1324_v6 = vmax.f32 %v1122_v60, 0.0 }
 0x12d   :  { %v2287_v7 = vpack.c.bf16 %v1257_v63, %v1257_v63  ;;  %v2351_v8 = vpack.c.bf16 %v1321_v0, %v1321_v0  ;;  %v1258_v9 = vmax.f32 %v858_v1, 0.0  ;;  %v1322_v11 = vmax.f32 %v1114_v2, 0.0 }
 0x12e   :  { %1900 = vst.msk [vmem:[%s3589_s3 + $0x98] sm:$0xf] %vm1861_vm3, %v2289_v3  ;;  %1964 = vst.msk [vmem:[%s3589_s3 + $0x198] sm:$0xf] %vm1861_vm3, %v2353_v4  ;;  %v2290_v12 = vpack.c.bf16 %v1260_v5, %v1260_v5  ;;  %v2354_v13 = vpack.c.bf16 %v1324_v6, %v1324_v6 }
 0x12f   :  { %1898 = vst.msk [vmem:[%s3589_s3 + $0x90] sm:$0xf] %vm1861_vm3, %v2287_v7  ;;  %1962 = vst.msk [vmem:[%s3589_s3 + $0x190] sm:$0xf] %vm1861_vm3, %v2351_v8  ;;  %v2288_v14 = vpack.c.bf16 %v1258_v9, %v1258_v9  ;;  %v2352_v15 = vpack.c.bf16 %v1322_v11, %v1322_v11  ;;  %v2491_v16 = vpop.f32.mrb[40].mxu0  ;;  %v2555_v17 = vpop.f32.mrb[40].mxu1 }
 0x130   :  { %1901 = vst.msk [vmem:[%s3589_s3 + $0x9c] sm:$0xf] %vm1861_vm3, %v2290_v12  ;;  %1965 = vst.msk [vmem:[%s3589_s3 + $0x19c] sm:$0xf] %vm1861_vm3, %v2354_v13  ;;  %v879_v18 = vadd.f32 %v2491_v16, %v2939_v10  ;;  %v1135_v19 = vadd.f32 %v2555_v17, %v2939_v10  ;;  %v870_v20 = vpop.f32.mrb[41].mxu0  ;;  %v1126_v21 = vpop.f32.mrb[41].mxu1 }
 0x131   :  { %1899 = vst.msk [vmem:[%s3589_s3 + $0x94] sm:$0xf] %vm1861_vm3, %v2288_v14  ;;  %1963 = vst.msk [vmem:[%s3589_s3 + $0x194] sm:$0xf] %vm1861_vm3, %v2352_v15  ;;  %v871_v22 = vadd.f32 %v2939_v10, %v870_v20  ;;  %v1127_v23 = vadd.f32 %v2939_v10, %v1126_v21  ;;  %v2492_v24 = vpop.f32.mrb[42].mxu0  ;;  %v2556_v25 = vpop.f32.mrb[42].mxu1 }
 0x132   :  { %v1263_v26 = vmax.f32 %v879_v18, 0.0  ;;  %v1327_v27 = vmax.f32 %v1135_v19, 0.0  ;;  %v882_v28 = vadd.f32 %v2492_v24, %v2939_v10  ;;  %v1138_v29 = vadd.f32 %v2556_v25, %v2939_v10  ;;  %v873_v30 = vpop.f32.mrb[43].mxu0  ;;  %v1129_v31 = vpop.f32.mrb[43].mxu1 }
 0x133   :  { %v1261_v32 = vmax.f32 %v871_v22, 0.0  ;;  %v1325_v33 = vmax.f32 %v1127_v23, 0.0  ;;  %v874_v34 = vadd.f32 %v2939_v10, %v873_v30  ;;  %v1130_v35 = vadd.f32 %v2939_v10, %v1129_v31 }
 0x134   :  { %v2293_v36 = vpack.c.bf16 %v1263_v26, %v1263_v26  ;;  %v2357_v37 = vpack.c.bf16 %v1327_v27, %v1327_v27  ;;  %v1264_v38 = vmax.f32 %v882_v28, 0.0  ;;  %v1328_v39 = vmax.f32 %v1138_v29, 0.0 }
 0x135   :  { %v2291_v40 = vpack.c.bf16 %v1261_v32, %v1261_v32  ;;  %v2355_v41 = vpack.c.bf16 %v1325_v33, %v1325_v33  ;;  %v1262_v42 = vmax.f32 %v874_v34, 0.0  ;;  %v1326_v43 = vmax.f32 %v1130_v35, 0.0 }
 0x136   :  { %1904 = vst.msk [vmem:[%s3589_s3 + $0xa8] sm:$0xf] %vm1861_vm3, %v2293_v36  ;;  %1968 = vst.msk [vmem:[%s3589_s3 + $0x1a8] sm:$0xf] %vm1861_vm3, %v2357_v37  ;;  %v2294_v44 = vpack.c.bf16 %v1264_v38, %v1264_v38  ;;  %v2358_v45 = vpack.c.bf16 %v1328_v39, %v1328_v39 }
 0x137   :  { %1902 = vst.msk [vmem:[%s3589_s3 + $0xa0] sm:$0xf] %vm1861_vm3, %v2291_v40  ;;  %1966 = vst.msk [vmem:[%s3589_s3 + $0x1a0] sm:$0xf] %vm1861_vm3, %v2355_v41  ;;  %v2292_v46 = vpack.c.bf16 %v1262_v42, %v1262_v42  ;;  %v2356_v47 = vpack.c.bf16 %v1326_v43, %v1326_v43  ;;  %v2495_v48 = vpop.f32.mrb[44].mxu0  ;;  %v2559_v49 = vpop.f32.mrb[44].mxu1 }
 0x138   :  { %1905 = vst.msk [vmem:[%s3589_s3 + $0xac] sm:$0xf] %vm1861_vm3, %v2294_v44  ;;  %1969 = vst.msk [vmem:[%s3589_s3 + $0x1ac] sm:$0xf] %vm1861_vm3, %v2358_v45  ;;  %v895_v50 = vadd.f32 %v2495_v48, %v2939_v10  ;;  %v1151_v51 = vadd.f32 %v2559_v49, %v2939_v10  ;;  %v886_v52 = vpop.f32.mrb[45].mxu0  ;;  %v1142_v53 = vpop.f32.mrb[45].mxu1 }
 0x139   :  { %1903 = vst.msk [vmem:[%s3589_s3 + $0xa4] sm:$0xf] %vm1861_vm3, %v2292_v46  ;;  %1967 = vst.msk [vmem:[%s3589_s3 + $0x1a4] sm:$0xf] %vm1861_vm3, %v2356_v47  ;;  %v887_v54 = vadd.f32 %v2939_v10, %v886_v52  ;;  %v1143_v55 = vadd.f32 %v2939_v10, %v1142_v53  ;;  %v2496_v56 = vpop.f32.mrb[46].mxu0  ;;  %v2560_v57 = vpop.f32.mrb[46].mxu1 }
 0x13a   :  { %v1267_v58 = vmax.f32 %v895_v50, 0.0  ;;  %v1331_v59 = vmax.f32 %v1151_v51, 0.0  ;;  %v898_v60 = vadd.f32 %v2496_v56, %v2939_v10  ;;  %v1154_v61 = vadd.f32 %v2560_v57, %v2939_v10  ;;  %v889_v62 = vpop.f32.mrb[47].mxu0  ;;  %v1145_v63 = vpop.f32.mrb[47].mxu1  ;;  %v3456_v50 = vld [vmem:[%s3588_s2] ss:$0 sm:$0xff] }
 0x13b   :  { %v1265_v0 = vmax.f32 %v887_v54, 0.0  ;;  %v1329_v1 = vmax.f32 %v1143_v55, 0.0  ;;  %v890_v2 = vadd.f32 %v2939_v10, %v889_v62  ;;  %v1146_v3 = vadd.f32 %v2939_v10, %v1145_v63 }
 0x13c   :  { %v2297_v4 = vpack.c.bf16 %v1267_v58, %v1267_v58  ;;  %v2361_v5 = vpack.c.bf16 %v1331_v59, %v1331_v59  ;;  %v1268_v6 = vmax.f32 %v898_v60, 0.0  ;;  %v1332_v7 = vmax.f32 %v1154_v61, 0.0 }
 0x13d   :  { %v2295_v8 = vpack.c.bf16 %v1265_v0, %v1265_v0  ;;  %v2359_v9 = vpack.c.bf16 %v1329_v1, %v1329_v1  ;;  %v1266_v11 = vmax.f32 %v890_v2, 0.0  ;;  %v1330_v12 = vmax.f32 %v1146_v3, 0.0 }
 0x13e   :  { %1908 = vst.msk [vmem:[%s3589_s3 + $0xb8] sm:$0xf] %vm1861_vm3, %v2297_v4  ;;  %1972 = vst.msk [vmem:[%s3589_s3 + $0x1b8] sm:$0xf] %vm1861_vm3, %v2361_v5  ;;  %v2298_v13 = vpack.c.bf16 %v1268_v6, %v1268_v6  ;;  %v2362_v14 = vpack.c.bf16 %v1332_v7, %v1332_v7 }
 0x13f   :  { %1906 = vst.msk [vmem:[%s3589_s3 + $0xb0] sm:$0xf] %vm1861_vm3, %v2295_v8  ;;  %1970 = vst.msk [vmem:[%s3589_s3 + $0x1b0] sm:$0xf] %vm1861_vm3, %v2359_v9  ;;  %v2296_v15 = vpack.c.bf16 %v1266_v11, %v1266_v11  ;;  %v2360_v16 = vpack.c.bf16 %v1330_v12, %v1330_v12  ;;  %v2499_v17 = vpop.f32.mrb[48].mxu0  ;;  %v2563_v18 = vpop.f32.mrb[48].mxu1 }
 0x140   :  { %1909 = vst.msk [vmem:[%s3589_s3 + $0xbc] sm:$0xf] %vm1861_vm3, %v2298_v13  ;;  %1973 = vst.msk [vmem:[%s3589_s3 + $0x1bc] sm:$0xf] %vm1861_vm3, %v2362_v14  ;;  %v911_v19 = vadd.f32 %v2499_v17, %v2939_v10  ;;  %v1167_v20 = vadd.f32 %v2563_v18, %v2939_v10  ;;  %v902_v21 = vpop.f32.mrb[49].mxu0  ;;  %v1158_v22 = vpop.f32.mrb[49].mxu1 }
 0x141   :  { %1907 = vst.msk [vmem:[%s3589_s3 + $0xb4] sm:$0xf] %vm1861_vm3, %v2296_v15  ;;  %1971 = vst.msk [vmem:[%s3589_s3 + $0x1b4] sm:$0xf] %vm1861_vm3, %v2360_v16  ;;  %v903_v23 = vadd.f32 %v2939_v10, %v902_v21  ;;  %v1159_v24 = vadd.f32 %v2939_v10, %v1158_v22  ;;  %v2500_v25 = vpop.f32.mrb[50].mxu0  ;;  %v2564_v26 = vpop.f32.mrb[50].mxu1 }
 0x142   :  { %v1271_v27 = vmax.f32 %v911_v19, 0.0  ;;  %v1335_v28 = vmax.f32 %v1167_v20, 0.0  ;;  %v914_v29 = vadd.f32 %v2500_v25, %v2939_v10  ;;  %v1170_v30 = vadd.f32 %v2564_v26, %v2939_v10  ;;  %v905_v31 = vpop.f32.mrb[51].mxu0  ;;  %v1161_v32 = vpop.f32.mrb[51].mxu1 }
 0x143   :  { %v1269_v33 = vmax.f32 %v903_v23, 0.0  ;;  %v1333_v34 = vmax.f32 %v1159_v24, 0.0  ;;  %v906_v35 = vadd.f32 %v2939_v10, %v905_v31  ;;  %v1162_v36 = vadd.f32 %v2939_v10, %v1161_v32 }
 0x144   :  { %v2301_v37 = vpack.c.bf16 %v1271_v27, %v1271_v27  ;;  %v2365_v38 = vpack.c.bf16 %v1335_v28, %v1335_v28  ;;  %v1272_v39 = vmax.f32 %v914_v29, 0.0  ;;  %v1336_v40 = vmax.f32 %v1170_v30, 0.0 }
 0x145   :  { %v2299_v41 = vpack.c.bf16 %v1269_v33, %v1269_v33  ;;  %v2363_v42 = vpack.c.bf16 %v1333_v34, %v1333_v34  ;;  %v1270_v43 = vmax.f32 %v906_v35, 0.0  ;;  %v1334_v44 = vmax.f32 %v1162_v36, 0.0 }
 0x146   :  { %1912 = vst.msk [vmem:[%s3589_s3 + $0xc8] sm:$0xf] %vm1861_vm3, %v2301_v37  ;;  %1976 = vst.msk [vmem:[%s3589_s3 + $0x1c8] sm:$0xf] %vm1861_vm3, %v2365_v38  ;;  %v2302_v45 = vpack.c.bf16 %v1272_v39, %v1272_v39  ;;  %v2366_v10 = vpack.c.bf16 %v1336_v40, %v1336_v40 }
 0x147   :  { %1910 = vst.msk [vmem:[%s3589_s3 + $0xc0] sm:$0xf] %vm1861_vm3, %v2299_v41  ;;  %1974 = vst.msk [vmem:[%s3589_s3 + $0x1c0] sm:$0xf] %vm1861_vm3, %v2363_v42  ;;  %v2300_v46 = vpack.c.bf16 %v1270_v43, %v1270_v43  ;;  %v2364_v47 = vpack.c.bf16 %v1334_v44, %v1334_v44  ;;  %v2503_v48 = vpop.f32.mrb[52].mxu0  ;;  %v2567_v49 = vpop.f32.mrb[52].mxu1 }
 0x148   :  { %1913 = vst.msk [vmem:[%s3589_s3 + $0xcc] sm:$0xf] %vm1861_vm3, %v2302_v45  ;;  %1977 = vst.msk [vmem:[%s3589_s3 + $0x1cc] sm:$0xf] %vm1861_vm3, %v2366_v10  ;;  %v927_v51 = vadd.f32 %v3456_v50, %v2503_v48  ;;  %v1183_v52 = vadd.f32 %v3456_v50, %v2567_v49  ;;  %v918_v53 = vpop.f32.mrb[53].mxu0  ;;  %v1174_v54 = vpop.f32.mrb[53].mxu1 }
 0x149   :  { %1911 = vst.msk [vmem:[%s3589_s3 + $0xc4] sm:$0xf] %vm1861_vm3, %v2300_v46  ;;  %1975 = vst.msk [vmem:[%s3589_s3 + $0x1c4] sm:$0xf] %vm1861_vm3, %v2364_v47  ;;  %v919_v55 = vadd.f32 %v3456_v50, %v918_v53  ;;  %v1175_v56 = vadd.f32 %v3456_v50, %v1174_v54  ;;  %v2504_v57 = vpop.f32.mrb[54].mxu0  ;;  %v2568_v58 = vpop.f32.mrb[54].mxu1 }
 0x14a   :  { %v1275_v59 = vmax.f32 %v927_v51, 0.0  ;;  %v1339_v60 = vmax.f32 %v1183_v52, 0.0  ;;  %v930_v61 = vadd.f32 %v3456_v50, %v2504_v57  ;;  %v1186_v62 = vadd.f32 %v3456_v50, %v2568_v58  ;;  %v921_v63 = vpop.f32.mrb[55].mxu0  ;;  %v1177_v0 = vpop.f32.mrb[55].mxu1 }
 0x14b   :  { %v1273_v1 = vmax.f32 %v919_v55, 0.0  ;;  %v1337_v2 = vmax.f32 %v1175_v56, 0.0  ;;  %v922_v3 = vadd.f32 %v3456_v50, %v921_v63  ;;  %v1178_v4 = vadd.f32 %v3456_v50, %v1177_v0 }
 0x14c   :  { %v2305_v5 = vpack.c.bf16 %v1275_v59, %v1275_v59  ;;  %v2369_v6 = vpack.c.bf16 %v1339_v60, %v1339_v60  ;;  %v1276_v7 = vmax.f32 %v930_v61, 0.0  ;;  %v1340_v8 = vmax.f32 %v1186_v62, 0.0 }
 0x14d   :  { %v2303_v9 = vpack.c.bf16 %v1273_v1, %v1273_v1  ;;  %v2367_v11 = vpack.c.bf16 %v1337_v2, %v1337_v2  ;;  %v1274_v12 = vmax.f32 %v922_v3, 0.0  ;;  %v1338_v13 = vmax.f32 %v1178_v4, 0.0 }
 0x14e   :  { %1916 = vst.msk [vmem:[%s3589_s3 + $0xd8] sm:$0xf] %vm1861_vm3, %v2305_v5  ;;  %1980 = vst.msk [vmem:[%s3589_s3 + $0x1d8] sm:$0xf] %vm1861_vm3, %v2369_v6  ;;  %v2306_v14 = vpack.c.bf16 %v1276_v7, %v1276_v7  ;;  %v2370_v15 = vpack.c.bf16 %v1340_v8, %v1340_v8 }
 0x14f   :  { %1914 = vst.msk [vmem:[%s3589_s3 + $0xd0] sm:$0xf] %vm1861_vm3, %v2303_v9  ;;  %1978 = vst.msk [vmem:[%s3589_s3 + $0x1d0] sm:$0xf] %vm1861_vm3, %v2367_v11  ;;  %v2304_v16 = vpack.c.bf16 %v1274_v12, %v1274_v12  ;;  %v2368_v17 = vpack.c.bf16 %v1338_v13, %v1338_v13  ;;  %v2507_v18 = vpop.f32.mrb[56].mxu0  ;;  %v2571_v19 = vpop.f32.mrb[56].mxu1 }
 0x150   :  { %1917 = vst.msk [vmem:[%s3589_s3 + $0xdc] sm:$0xf] %vm1861_vm3, %v2306_v14  ;;  %1981 = vst.msk [vmem:[%s3589_s3 + $0x1dc] sm:$0xf] %vm1861_vm3, %v2370_v15  ;;  %v943_v20 = vadd.f32 %v3456_v50, %v2507_v18  ;;  %v1199_v21 = vadd.f32 %v3456_v50, %v2571_v19  ;;  %v934_v22 = vpop.f32.mrb[57].mxu0  ;;  %v1190_v23 = vpop.f32.mrb[57].mxu1 }
 0x151   :  { %1915 = vst.msk [vmem:[%s3589_s3 + $0xd4] sm:$0xf] %vm1861_vm3, %v2304_v16  ;;  %1979 = vst.msk [vmem:[%s3589_s3 + $0x1d4] sm:$0xf] %vm1861_vm3, %v2368_v17  ;;  %v935_v24 = vadd.f32 %v3456_v50, %v934_v22  ;;  %v1191_v25 = vadd.f32 %v3456_v50, %v1190_v23  ;;  %v2508_v26 = vpop.f32.mrb[58].mxu0  ;;  %v2572_v27 = vpop.f32.mrb[58].mxu1 }
 0x152   :  { %v1279_v28 = vmax.f32 %v943_v20, 0.0  ;;  %v1343_v29 = vmax.f32 %v1199_v21, 0.0  ;;  %v946_v30 = vadd.f32 %v3456_v50, %v2508_v26  ;;  %v1202_v31 = vadd.f32 %v3456_v50, %v2572_v27  ;;  %v937_v32 = vpop.f32.mrb[59].mxu0  ;;  %v1193_v33 = vpop.f32.mrb[59].mxu1 }
 0x153   :  { %v1277_v34 = vmax.f32 %v935_v24, 0.0  ;;  %v1341_v35 = vmax.f32 %v1191_v25, 0.0  ;;  %v938_v36 = vadd.f32 %v3456_v50, %v937_v32  ;;  %v1194_v37 = vadd.f32 %v3456_v50, %v1193_v33 }
 0x154   :  { %v2309_v38 = vpack.c.bf16 %v1279_v28, %v1279_v28  ;;  %v2373_v39 = vpack.c.bf16 %v1343_v29, %v1343_v29  ;;  %v1280_v40 = vmax.f32 %v946_v30, 0.0  ;;  %v1344_v41 = vmax.f32 %v1202_v31, 0.0 }
 0x155   :  { %v2307_v42 = vpack.c.bf16 %v1277_v34, %v1277_v34  ;;  %v2371_v43 = vpack.c.bf16 %v1341_v35, %v1341_v35  ;;  %v1278_v44 = vmax.f32 %v938_v36, 0.0  ;;  %v1342_v45 = vmax.f32 %v1194_v37, 0.0 }
 0x156   :  { %1920 = vst.msk [vmem:[%s3589_s3 + $0xe8] sm:$0xf] %vm1861_vm3, %v2309_v38  ;;  %1984 = vst.msk [vmem:[%s3589_s3 + $0x1e8] sm:$0xf] %vm1861_vm3, %v2373_v39  ;;  %v2310_v10 = vpack.c.bf16 %v1280_v40, %v1280_v40  ;;  %v2374_v46 = vpack.c.bf16 %v1344_v41, %v1344_v41 }
 0x157   :  { %1918 = vst.msk [vmem:[%s3589_s3 + $0xe0] sm:$0xf] %vm1861_vm3, %v2307_v42  ;;  %1982 = vst.msk [vmem:[%s3589_s3 + $0x1e0] sm:$0xf] %vm1861_vm3, %v2371_v43  ;;  %v2308_v47 = vpack.c.bf16 %v1278_v44, %v1278_v44  ;;  %v2372_v48 = vpack.c.bf16 %v1342_v45, %v1342_v45  ;;  %v2511_v49 = vpop.f32.mrb[60].mxu0  ;;  %v2575_v51 = vpop.f32.mrb[60].mxu1 }
 0x158   :  { %1921 = vst.msk [vmem:[%s3589_s3 + $0xec] sm:$0xf] %vm1861_vm3, %v2310_v10  ;;  %1985 = vst.msk [vmem:[%s3589_s3 + $0x1ec] sm:$0xf] %vm1861_vm3, %v2374_v46  ;;  %v959_v52 = vadd.f32 %v3456_v50, %v2511_v49  ;;  %v1215_v53 = vadd.f32 %v3456_v50, %v2575_v51  ;;  %v950_v54 = vpop.f32.mrb[61].mxu0  ;;  %v1206_v55 = vpop.f32.mrb[61].mxu1 }
 0x159   :  { %1919 = vst.msk [vmem:[%s3589_s3 + $0xe4] sm:$0xf] %vm1861_vm3, %v2308_v47  ;;  %1983 = vst.msk [vmem:[%s3589_s3 + $0x1e4] sm:$0xf] %vm1861_vm3, %v2372_v48  ;;  %v951_v56 = vadd.f32 %v3456_v50, %v950_v54  ;;  %v1207_v57 = vadd.f32 %v3456_v50, %v1206_v55  ;;  %v2512_v58 = vpop.f32.mrb[62].mxu0  ;;  %v2576_v59 = vpop.f32.mrb[62].mxu1 }
 0x15a   :  { %v1283_v60 = vmax.f32 %v959_v52, 0.0  ;;  %v1347_v61 = vmax.f32 %v1215_v53, 0.0  ;;  %v962_v62 = vadd.f32 %v3456_v50, %v2512_v58  ;;  %v1218_v63 = vadd.f32 %v3456_v50, %v2576_v59  ;;  %v953_v0 = vpop.f32.mrb[63].mxu0  ;;  %v1209_v1 = vpop.f32.mrb[63].mxu1 }
 0x15b   :  { %v1281_v2 = vmax.f32 %v951_v56, 0.0  ;;  %v1345_v3 = vmax.f32 %v1207_v57, 0.0  ;;  %v954_v4 = vadd.f32 %v3456_v50, %v953_v0  ;;  %v1210_v5 = vadd.f32 %v3456_v50, %v1209_v1 }
 0x15c   :  { %v2313_v6 = vpack.c.bf16 %v1283_v60, %v1283_v60  ;;  %v2377_v7 = vpack.c.bf16 %v1347_v61, %v1347_v61  ;;  %v1284_v8 = vmax.f32 %v962_v62, 0.0  ;;  %v1348_v9 = vmax.f32 %v1218_v63, 0.0 }
 0x15d   :  { %v2311_v11 = vpack.c.bf16 %v1281_v2, %v1281_v2  ;;  %v2375_v12 = vpack.c.bf16 %v1345_v3, %v1345_v3  ;;  %v1282_v13 = vmax.f32 %v954_v4, 0.0  ;;  %v1346_v14 = vmax.f32 %v1210_v5, 0.0 }
 0x15e   :  { %1924 = vst.msk [vmem:[%s3589_s3 + $0xf8] sm:$0xf] %vm1861_vm3, %v2313_v6  ;;  %1988 = vst.msk [vmem:[%s3589_s3 + $0x1f8] sm:$0xf] %vm1861_vm3, %v2377_v7  ;;  %v2314_v15 = vpack.c.bf16 %v1284_v8, %v1284_v8  ;;  %v2378_v50 = vpack.c.bf16 %v1348_v9, %v1348_v9 }
 0x15f   :  { %1922 = vst.msk [vmem:[%s3589_s3 + $0xf0] sm:$0xf] %vm1861_vm3, %v2311_v11  ;;  %1986 = vst.msk [vmem:[%s3589_s3 + $0x1f0] sm:$0xf] %vm1861_vm3, %v2375_v12  ;;  %v2312_v16 = vpack.c.bf16 %v1282_v13, %v1282_v13  ;;  %v2376_v17 = vpack.c.bf16 %v1346_v14, %v1346_v14 }
 0x160   :  { %1925 = vst.msk [vmem:[%s3589_s3 + $0xfc] sm:$0xf] %vm1861_vm3, %v2314_v15  ;;  %1989 = vst.msk [vmem:[%s3589_s3 + $0x1fc] sm:$0xf] %vm1861_vm3, %v2378_v50 }
 0x161   :  { %1923 = vst.msk [vmem:[%s3589_s3 + $0xf4] sm:$0xf] %vm1861_vm3, %v2312_v16  ;;  %1987 = vst.msk [vmem:[%s3589_s3 + $0x1f4] sm:$0xf] %vm1861_vm3, %v2376_v17 }

// kernel: jvp__.15
= control target key start
LH: loop header
LB: loop body
LE: loop exit
PB: predicated region body
PF: predicated region fallthrough
CT: control target
= control target key end

     0   :  { %vm380_vm0 = vcmask 261120   ;;  %vm911_vm1 = vcmask 257024   ;;  %s1806_s1 = inlined_call_operand.vmem [shape: f32[288,32], index: 1, kind: input, shape index: {}]   ;;  %s1807_s0 = inlined_call_operand.vmem [shape: bf16[256,288], index: 0, kind: input, shape index: {}]   ;;  %s1808_s2 = inlined_call_operand.vmem [shape: f32[1,32], index: 2, kind: input, shape index: {}]   ;;  %s1809_s3 = inlined_call_operand.vmem [shape: bf16[256,32], index: 3, kind: output, shape index: {}]  }
   0x1   :  { %v95_v0 = vld [vmem:[%s1806_s1 + $0x80] sm:$0xff]  ;;  %v96_v1 = vld [vmem:[%s1806_s1 + $0x88] sm:$0xff]  ;;  %v97_v5 = vld [vmem:[%s1806_s1 + $0x90] sm:$0xff] }
   0x2   :  { %v79_v2 = vld [vmem:[%s1806_s1] sm:$0xff]  ;;  %v123_v3 = vpack.c.bf16 %v96_v1, %v95_v0  ;;  %v80_v4 = vld [vmem:[%s1806_s1 + $0x8] sm:$0xff]  ;;  %v98_v6 = vld [vmem:[%s1806_s1 + $0x98] sm:$0xff] }
   0x3   :  { %v115_v7 = vpack.c.bf16 %v80_v4, %v79_v2  ;;  %v124_v8 = vpack.c.bf16 %v98_v6, %v97_v5  ;;  %v81_v9 = vld [vmem:[%s1806_s1 + $0x10] sm:$0xff]  ;;  %v82_v10 = vld [vmem:[%s1806_s1 + $0x18] sm:$0xff]  ;;  %v99_v11 = vld [vmem:[%s1806_s1 + $0xa0] sm:$0xff] }
   0x4   :  { %1077 = vmatprep.subr.bf16.mxu0 %v123_v3  ;;  %1243 = vmatprep.subr.bf16.mxu1 %v123_v3  ;;  %v100_v12 = vld [vmem:[%s1806_s1 + $0xa8] sm:$0xff]  ;;  %v116_v13 = vpack.c.bf16 %v82_v10, %v81_v9  ;;  %v83_v15 = vld [vmem:[%s1806_s1 + $0x20] sm:$0xff]  ;;  %v101_v17 = vld [vmem:[%s1806_s1 + $0xb0] sm:$0xff] }
   0x5   :  { %1078 = vmatpush3.bf16.msra.mxu0 %v115_v7  ;;  %1251 = vmatpush3.bf16.msra.mxu1 %v115_v7  ;;  %v125_v14 = vpack.c.bf16 %v100_v12, %v99_v11  ;;  %v84_v16 = vld [vmem:[%s1806_s1 + $0x28] sm:$0xff]  ;;  %v102_v18 = vld [vmem:[%s1806_s1 + $0xb8] sm:$0xff]  ;;  %v85_v21 = vld [vmem:[%s1806_s1 + $0x30] sm:$0xff] }
   0x6   :  { %1079 = vmatprep.subr.bf16.mxu0 %v124_v8  ;;  %1244 = vmatprep.subr.bf16.mxu1 %v124_v8  ;;  %v117_v19 = vpack.c.bf16 %v84_v16, %v83_v15  ;;  %v126_v20 = vpack.c.bf16 %v102_v18, %v101_v17  ;;  %v86_v22 = vld [vmem:[%s1806_s1 + $0x38] sm:$0xff]  ;;  %v103_v23 = vld [vmem:[%s1806_s1 + $0xc0] sm:$0xff]  ;;  %v104_v24 = vld [vmem:[%s1806_s1 + $0xc8] sm:$0xff] }
   0x7   :  { %v1261_v25 = vld [vmem:[%s1807_s0 + $0x4] ss:$12 sps:$4 sm:$0xff]   ;;  %v118_v26 = vpack.c.bf16 %v86_v22, %v85_v21  ;;  %v127_v28 = vpack.c.bf16 %v104_v24, %v103_v23  ;;  %v88_v29 = vld [vmem:[%s1806_s1 + $0x48] sm:$0xff]  ;;  %v106_v32 = vld [vmem:[%s1806_s1 + $0xd8] sm:$0xff] }
   0x8   :  { %v87_v27 = vld [vmem:[%s1806_s1 + $0x40] sm:$0xff]  ;;  %v105_v30 = vld [vmem:[%s1806_s1 + $0xd0] sm:$0xff]  ;;  %461 = vmatprep.mubr.bf16.mxu0 %v1261_v25  ;;  %v90_v36 = vld [vmem:[%s1806_s1 + $0x58] sm:$0xff] }
   0x9   :  { %1080 = vmatpush3.bf16.msra.mxu0 %v116_v13  ;;  %1252 = vmatpush3.bf16.msra.mxu1 %v116_v13  ;;  %v1264_v31 = vld [vmem:[%s1807_s0 + $0x124] ss:$12 sps:$4 sm:$0xff]   ;;  %v119_v33 = vpack.c.bf16 %v88_v29, %v87_v27  ;;  %v128_v35 = vpack.c.bf16 %v106_v32, %v105_v30  ;;  %v108_v38 = vld [vmem:[%s1806_s1 + $0xe8] sm:$0xff]  ;;  %v110_v44 = vld [vmem:[%s1806_s1 + $0xf8] sm:$0xff] }
   0xa   :  { %1081 = vmatprep.subr.bf16.mxu0 %v125_v14  ;;  %1245 = vmatprep.subr.bf16.mxu1 %v125_v14  ;;  %v89_v34 = vld [vmem:[%s1806_s1 + $0x50] sm:$0xff]  ;;  %v107_v37 = vld [vmem:[%s1806_s1 + $0xe0] sm:$0xff]  ;;  %v92_v42 = vld [vmem:[%s1806_s1 + $0x68] sm:$0xff] }
   0xb   :  { %557 = vmatprep.mubr.bf16.mxu1 %v1264_v31  ;;  %v120_v39 = vpack.c.bf16 %v90_v36, %v89_v34  ;;  %v91_v40 = vld [vmem:[%s1806_s1 + $0x60] sm:$0xff]  ;;  %v129_v41 = vpack.c.bf16 %v108_v38, %v107_v37  ;;  %v109_v43 = vld [vmem:[%s1806_s1 + $0xf0] sm:$0xff]  ;;  %v94_v47 = vld [vmem:[%s1806_s1 + $0x78] sm:$0xff] }
   0xc   :  { %v121_v45 = vpack.c.bf16 %v92_v42, %v91_v40  ;;  %v93_v46 = vld [vmem:[%s1806_s1 + $0x70] sm:$0xff]  ;;  %v130_v48 = vpack.c.bf16 %v110_v44, %v109_v43  ;;  %v111_v49 = vld [vmem:[%s1806_s1 + $0x100] sm:$0xff]  ;;  %v112_v50 = vld [vmem:[%s1806_s1 + $0x108] sm:$0xff] }
   0xd   :  { %1082 = vmatpush3.bf16.msra.mxu0 %v117_v19  ;;  %1253 = vmatpush3.bf16.msra.mxu1 %v117_v19  ;;  %v122_v51 = vpack.c.bf16 %v94_v47, %v93_v46  ;;  %v131_v52 = vpack.c.bf16 %v112_v50, %v111_v49  ;;  %v113_v53 = vld [vmem:[%s1806_s1 + $0x110] sm:$0xff]  ;;  %v114_v54 = vld [vmem:[%s1806_s1 + $0x118] sm:$0xff]  ;;  %v1259_v55 = vld [vmem:[%s1807_s0] ss:$12 sps:$4 sm:$0xff]  }
   0xe   :  { %1083 = vmatprep.subr.bf16.mxu0 %v126_v20  ;;  %1246 = vmatprep.subr.bf16.mxu1 %v126_v20  ;;  %v1262_v56 = vld [vmem:[%s1807_s0 + $0x120] ss:$12 sps:$4 sm:$0xff]   ;;  %v1265_v57 = vld [vmem:[%s1807_s0 + $0x1c] ss:$12 sps:$4 sm:$0xff]   ;;  %v132_v59 = vpack.c.bf16 %v114_v54, %v113_v53  ;;  %v1269_v60 = vld [vmem:[%s1807_s0 + $0x18] ss:$12 sps:$4 sm:$0xff]  }
   0xf   :  { %v1267_v58 = vld [vmem:[%s1807_s0 + $0x13c] ss:$12 sps:$4 sm:$0xff]   ;;  %v1270_v61 = vld [vmem:[%s1807_s0 + $0x138] ss:$12 sps:$4 sm:$0xff]   ;;  %v1271_v62 = vld [vmem:[%s1807_s0 + $0x34] ss:$12 sps:$4 sm:$0xff]  }
  0x10   :  { %v1273_v63 = vld [vmem:[%s1807_s0 + $0x154] ss:$12 sps:$4 sm:$0xff]   ;;  %v1275_v0 = vld [vmem:[%s1807_s0 + $0x30] ss:$12 sps:$4 sm:$0xff]   ;;  %v1277_v2 = vld [vmem:[%s1807_s0 + $0x4c] ss:$12 sps:$4 sm:$0xff]  }
  0x11   :  { %1084 = vmatpush3.bf16.msra.mxu0 %v118_v26  ;;  %1254 = vmatpush3.bf16.msra.mxu1 %v118_v26  ;;  %v1276_v1 = vld [vmem:[%s1807_s0 + $0x150] ss:$12 sps:$4 sm:$0xff]   ;;  %v1279_v3 = vld [vmem:[%s1807_s0 + $0x16c] ss:$12 sps:$4 sm:$0xff]   ;;  %v1281_v4 = vld [vmem:[%s1807_s0 + $0x48] ss:$12 sps:$4 sm:$0xff]  }
  0x12   :  { %1085 = vmatprep.subr.bf16.mxu0 %v127_v28  ;;  %1247 = vmatprep.subr.bf16.mxu1 %v127_v28  ;;  %v1282_v5 = vld [vmem:[%s1807_s0 + $0x168] ss:$12 sps:$4 sm:$0xff]   ;;  %v1283_v6 = vld [vmem:[%s1807_s0 + $0x64] ss:$12 sps:$4 sm:$0xff]   ;;  %v1286_v8 = vld [vmem:[%s1807_s0 + $0x60] ss:$12 sps:$4 sm:$0xff]  }
  0x13   :  { %v1285_v7 = vld [vmem:[%s1807_s0 + $0x8] ss:$12 sps:$4 sm:$0xff]   ;;  %v1287_v9 = vld [vmem:[%s1807_s0 + $0x20] ss:$12 sps:$4 sm:$0xff]   ;;  %v1290_v11 = vld [vmem:[%s1807_s0 + $0x38] ss:$12 sps:$4 sm:$0xff]  }
  0x14   :  { %v1288_v10 = vld [vmem:[%s1807_s0 + $0x7c] ss:$12 sps:$4 sm:$0xff]   ;;  %v1291_v12 = vld [vmem:[%s1807_s0 + $0x78] ss:$12 sps:$4 sm:$0xff]   ;;  %v1293_v14 = vld [vmem:[%s1807_s0 + $0x94] ss:$12 sps:$4 sm:$0xff]  }
  0x15   :  { %1086 = vmatpush3.bf16.msra.mxu0 %v119_v33  ;;  %1255 = vmatpush3.bf16.msra.mxu1 %v119_v33  ;;  %v1292_v13 = vld [vmem:[%s1807_s0 + $0x50] ss:$12 sps:$4 sm:$0xff]   ;;  %v1295_v15 = vld [vmem:[%s1807_s0 + $0x68] ss:$12 sps:$4 sm:$0xff]   ;;  %v1297_v17 = vld [vmem:[%s1807_s0 + $0x80] ss:$12 sps:$4 sm:$0xff]  }
  0x16   :  { %1087 = vmatprep.subr.bf16.mxu0 %v128_v35  ;;  %1248 = vmatprep.subr.bf16.mxu1 %v128_v35  ;;  %v1296_v16 = vld [vmem:[%s1807_s0 + $0x90] ss:$12 sps:$4 sm:$0xff]   ;;  %v1298_v18 = vld [vmem:[%s1807_s0 + $0xac] ss:$12 sps:$4 sm:$0xff]   ;;  %v1301_v20 = vld [vmem:[%s1807_s0 + $0xa8] ss:$12 sps:$4 sm:$0xff]  }
  0x17   :  { %v1300_v19 = vld [vmem:[%s1807_s0 + $0x98] ss:$12 sps:$4 sm:$0xff]   ;;  %v1302_v21 = vld [vmem:[%s1807_s0 + $0xb0] ss:$12 sps:$4 sm:$0xff]   ;;  %v1305_v23 = vld [vmem:[%s1807_s0 + $0xc8] ss:$12 sps:$4 sm:$0xff]  }
  0x18   :  { %v1303_v22 = vld [vmem:[%s1807_s0 + $0xc4] ss:$12 sps:$4 sm:$0xff]   ;;  %v1306_v24 = vld [vmem:[%s1807_s0 + $0xc0] ss:$12 sps:$4 sm:$0xff]   ;;  %v1308_v26 = vld [vmem:[%s1807_s0 + $0xdc] ss:$12 sps:$4 sm:$0xff]  }
  0x19   :  { %1088 = vmatpush3.bf16.msra.mxu0 %v120_v39  ;;  %1256 = vmatpush3.bf16.msra.mxu1 %v120_v39  ;;  %v1307_v25 = vld [vmem:[%s1807_s0 + $0xe0] ss:$12 sps:$4 sm:$0xff]   ;;  %v1310_v27 = vld [vmem:[%s1807_s0 + $0xf8] ss:$12 sps:$4 sm:$0xff]   ;;  %v1312_v29 = vld [vmem:[%s1807_s0 + $0x110] ss:$12 sps:$4 sm:$0xff]  }
  0x1a   :  { %1089 = vmatprep.subr.bf16.mxu0 %v129_v41  ;;  %1249 = vmatprep.subr.bf16.mxu1 %v129_v41  ;;  %v1311_v28 = vld [vmem:[%s1807_s0 + $0xd8] ss:$12 sps:$4 sm:$0xff]   ;;  %v1313_v30 = vld [vmem:[%s1807_s0 + $0xf4] ss:$12 sps:$4 sm:$0xff]   ;;  %v1316_v32 = vld [vmem:[%s1807_s0 + $0xf0] ss:$12 sps:$4 sm:$0xff]  }
  0x1b   :  { %v1315_v31 = vld [vmem:[%s1807_s0 + $0x128] ss:$12 sps:$4 sm:$0xff]   ;;  %v1317_v33 = vld [vmem:[%s1807_s0 + $0x140] ss:$12 sps:$4 sm:$0xff]   ;;  %v1320_v35 = vld [vmem:[%s1807_s0 + $0x158] ss:$12 sps:$4 sm:$0xff]  }
  0x1c   :  { %v1318_v34 = vld [vmem:[%s1807_s0 + $0x10c] ss:$12 sps:$4 sm:$0xff]   ;;  %v1321_v36 = vld [vmem:[%s1807_s0 + $0x108] ss:$12 sps:$4 sm:$0xff]   ;;  %v1322_v37 = vld [vmem:[%s1807_s0 + $0x170] ss:$12 sps:$4 sm:$0xff]  }
  0x1d   :  { %1090 = vmatpush3.bf16.msra.mxu0 %v121_v45  ;;  %1257 = vmatpush3.bf16.msra.mxu1 %v121_v45 }
  0x1e   :  { %1091 = vmatprep.subr.bf16.mxu0 %v130_v48  ;;  %1250 = vmatprep.subr.bf16.mxu1 %v130_v48 }
  0x21   :  { %1092 = vmatpush3.bf16.msra.mxu0 %v122_v51  ;;  %1258 = vmatpush3.bf16.msra.mxu1 %v122_v51 }
  0x22   :  { %1207 = vmatprep.subr.bf16.mxu1 %v131_v52 }
  0x24   :  { %462 = vmatmul.mubr.bf16.vlgmr.msra.gmra.mrb[0].mxu0 %v1259_v55  ;;  %558 = vmatmul.mubr.bf16.vlgmr.msra.gmra.mrb[0].mxu1 %v1262_v56 }
  0x25   :  { %1208 = vmatpush3.bf16.msra.mxu1 %v131_v52  ;;  %469 = vmatprep.mubr.bf16.mxu0 %v1265_v57 }
  0x26   :  { %565 = vmatprep.mubr.bf16.mxu1 %v1267_v58  ;;  %1209 = vmatprep.subr.bf16.mxu1 %v132_v59 }
  0x29   :  { %1210 = vmatpush3.bf16.msra.mxu1 %v132_v59 }
  0x2c   :  { %470 = vmatmul.mubr.bf16.gmra.mrb[4].mxu0 %v1269_v60  ;;  %566 = vmatmul.mubr.bf16.gmra.mrb[4].mxu1 %v1270_v61 }
  0x2d   :  { %477 = vmatprep.mubr.bf16.mxu0 %v1271_v62  ;;  %573 = vmatprep.mubr.bf16.mxu1 %v1273_v63 }
  0x34   :  { %478 = vmatmul.mubr.bf16.gmra.mrb[8].mxu0 %v1275_v0  ;;  %574 = vmatmul.mubr.bf16.gmra.mrb[8].mxu1 %v1276_v1 }
  0x35   :  { %485 = vmatprep.mubr.bf16.mxu0 %v1277_v2  ;;  %581 = vmatprep.mubr.bf16.mxu1 %v1279_v3 }
  0x3c   :  { %486 = vmatmul.mubr.bf16.gmra.mrb[12].mxu0 %v1281_v4  ;;  %582 = vmatmul.mubr.bf16.gmra.mrb[12].mxu1 %v1282_v5 }
  0x3d   :  { %493 = vmatprep.mubr.bf16.mxu0 %v1283_v6  ;;  %1211 = vmatprep.mubr.msk.bf16.mxu1 %vm380_vm0, %v1285_v7 }
  0x44   :  { %494 = vmatmul.mubr.bf16.gmra.mrb[16].mxu0 %v1286_v8  ;;  %1212 = vmatmul.mubr.msk.bf16.vlgmr.msra.gmra.mrb[16].mxu1 %vm380_vm0, %v1287_v9 }
  0x45   :  { %501 = vmatprep.mubr.bf16.mxu0 %v1288_v10  ;;  %1215 = vmatprep.mubr.msk.bf16.mxu1 %vm380_vm0, %v1290_v11 }
  0x4c   :  { %502 = vmatmul.mubr.bf16.gmra.mrb[20].mxu0 %v1291_v12  ;;  %1216 = vmatmul.mubr.msk.bf16.gmra.mrb[20].mxu1 %vm380_vm0, %v1292_v13 }
  0x4d   :  { %509 = vmatprep.mubr.bf16.mxu0 %v1293_v14  ;;  %1219 = vmatprep.mubr.msk.bf16.mxu1 %vm380_vm0, %v1295_v15 }
  0x54   :  { %510 = vmatmul.mubr.bf16.gmra.mrb[24].mxu0 %v1296_v16  ;;  %1220 = vmatmul.mubr.msk.bf16.gmra.mrb[24].mxu1 %vm380_vm0, %v1297_v17 }
  0x55   :  { %517 = vmatprep.mubr.bf16.mxu0 %v1298_v18  ;;  %1223 = vmatprep.mubr.msk.bf16.mxu1 %vm380_vm0, %v1300_v19 }
  0x5c   :  { %518 = vmatmul.mubr.bf16.gmra.mrb[28].mxu0 %v1301_v20  ;;  %1224 = vmatmul.mubr.msk.bf16.gmra.mrb[28].mxu1 %vm380_vm0, %v1302_v21 }
  0x5d   :  { %525 = vmatprep.mubr.bf16.mxu0 %v1303_v22  ;;  %1227 = vmatprep.mubr.msk.bf16.mxu1 %vm380_vm0, %v1305_v23  ;;  %v1630_v22 = vld [vmem:[%s1808_s2] ss:$0 sm:$0xff] }
  0x64   :  { %526 = vmatmul.mubr.bf16.gmra.mrb[32].mxu0 %v1306_v24  ;;  %1228 = vmatmul.mubr.msk.bf16.gmra.mrb[32].mxu1 %vm380_vm0, %v1307_v25 }
  0x65   :  { %533 = vmatprep.mubr.bf16.mxu0 %v1308_v26  ;;  %1231 = vmatprep.mubr.msk.bf16.mxu1 %vm380_vm0, %v1310_v27 }
  0x6c   :  { %534 = vmatmul.mubr.bf16.gmra.mrb[36].mxu0 %v1311_v28  ;;  %1232 = vmatmul.mubr.msk.bf16.gmra.mrb[36].mxu1 %vm380_vm0, %v1312_v29 }
  0x6d   :  { %541 = vmatprep.mubr.bf16.mxu0 %v1313_v30  ;;  %1235 = vmatprep.mubr.msk.bf16.mxu1 %vm380_vm0, %v1315_v31 }
  0x74   :  { %542 = vmatmul.mubr.bf16.gmra.mrb[40].mxu0 %v1316_v32  ;;  %1236 = vmatmul.mubr.msk.bf16.gmra.mrb[40].mxu1 %vm380_vm0, %v1317_v33 }
  0x75   :  { %549 = vmatprep.mubr.bf16.mxu0 %v1318_v34  ;;  %1239 = vmatprep.mubr.msk.bf16.mxu1 %vm380_vm0, %v1320_v35 }
  0x7c   :  { %550 = vmatmul.mubr.bf16.gmra.mrb[44].mxu0 %v1321_v36  ;;  %1240 = vmatmul.mubr.msk.bf16.gmra.mrb[44].mxu1 %vm380_vm0, %v1322_v37 }
  0xf7   :  { %v1093_v38 = vpop.f32.mrb[0].mxu0  ;;  %v1165_v39 = vpop.f32.mrb[0].mxu1 }
  0xf8   :  { %v1094_v40 = vpop.f32.mrb[1].mxu0  ;;  %v1166_v41 = vpop.f32.mrb[1].mxu1 }
  0xf9   :  { %v1095_v42 = vadd.f32 %v1094_v40, %v1093_v38  ;;  %v1096_v43 = vpop.f32.mrb[2].mxu0  ;;  %v1611_v44 = vadd.f32 %v1166_v41, %v1165_v39  ;;  %v1168_v45 = vpop.f32.mrb[2].mxu1 }
  0xfa   :  { %v1097_v46 = vpop.f32.mrb[3].mxu0  ;;  %v1169_v47 = vpop.f32.mrb[3].mxu1 }
  0xfb   :  { %v1098_v48 = vadd.f32 %v1097_v46, %v1096_v43  ;;  %v1613_v49 = vadd.f32 %v1169_v47, %v1168_v45  ;;  %v464_v26 = vadd.f32 %v1095_v42, %v1630_v22 }
  0xfd   :  { %v467_v35 = vadd.f32 %v1098_v48, %v1630_v22 }
  0xff   :  { %v1099_v50 = vpop.f32.mrb[4].mxu0  ;;  %v1171_v51 = vpop.f32.mrb[4].mxu1 }
 0x100   :  { %v1100_v52 = vpop.f32.mrb[5].mxu0  ;;  %v1172_v53 = vpop.f32.mrb[5].mxu1 }
 0x101   :  { %v1101_v54 = vadd.f32 %v1100_v52, %v1099_v50  ;;  %v1102_v55 = vpop.f32.mrb[6].mxu0  ;;  %v1615_v56 = vadd.f32 %v1172_v53, %v1171_v51  ;;  %v1174_v57 = vpop.f32.mrb[6].mxu1 }
 0x102   :  { %v1103_v58 = vpop.f32.mrb[7].mxu0  ;;  %v1175_v59 = vpop.f32.mrb[7].mxu1 }
 0x103   :  { %v1104_v60 = vadd.f32 %v1103_v58, %v1102_v55  ;;  %v1617_v61 = vadd.f32 %v1175_v59, %v1174_v57  ;;  %v472_v23 = vadd.f32 %v1101_v54, %v1630_v22 }
 0x105   :  { %v475_v30 = vadd.f32 %v1104_v60, %v1630_v22 }
 0x107   :  { %v1105_v62 = vpop.f32.mrb[8].mxu0  ;;  %v1177_v63 = vpop.f32.mrb[8].mxu1 }
 0x108   :  { %v1106_v0 = vpop.f32.mrb[9].mxu0  ;;  %v1178_v1 = vpop.f32.mrb[9].mxu1 }
 0x109   :  { %v1107_v2 = vadd.f32 %v1106_v0, %v1105_v62  ;;  %v1108_v3 = vpop.f32.mrb[10].mxu0  ;;  %v1619_v4 = vadd.f32 %v1178_v1, %v1177_v63  ;;  %v1180_v5 = vpop.f32.mrb[10].mxu1 }
 0x10a   :  { %v1109_v6 = vpop.f32.mrb[11].mxu0  ;;  %v1181_v7 = vpop.f32.mrb[11].mxu1 }
 0x10b   :  { %v1110_v8 = vadd.f32 %v1109_v6, %v1108_v3  ;;  %v1621_v9 = vadd.f32 %v1181_v7, %v1180_v5  ;;  %v480_v54 = vadd.f32 %v1107_v2, %v1630_v22 }
 0x10d   :  { %v483_v1 = vadd.f32 %v1110_v8, %v1630_v22 }
 0x10f   :  { %v1111_v10 = vpop.f32.mrb[12].mxu0  ;;  %v1183_v11 = vpop.f32.mrb[12].mxu1 }
 0x110   :  { %v1112_v12 = vpop.f32.mrb[13].mxu0  ;;  %v1184_v13 = vpop.f32.mrb[13].mxu1 }
 0x111   :  { %v1113_v14 = vadd.f32 %v1112_v12, %v1111_v10  ;;  %v1114_v15 = vpop.f32.mrb[14].mxu0  ;;  %v1623_v16 = vadd.f32 %v1184_v13, %v1183_v11  ;;  %v1186_v17 = vpop.f32.mrb[14].mxu1 }
 0x112   :  { %v1115_v18 = vpop.f32.mrb[15].mxu0  ;;  %v1187_v19 = vpop.f32.mrb[15].mxu1 }
 0x113   :  { %v1116_v20 = vadd.f32 %v1115_v18, %v1114_v15  ;;  %v1625_v21 = vadd.f32 %v1187_v19, %v1186_v17  ;;  %v488_v48 = vadd.f32 %v1113_v14, %v1630_v22 }
 0x115   :  { %v491_v59 = vadd.f32 %v1116_v20, %v1630_v22 }
 0x117   :  { %v1117_v24 = vpop.f32.mrb[16].mxu0  ;;  %v1213_v25 = vpop.f32.mrb[16].mxu1 }
 0x118   :  { %v633_v27 = vadd.f32 %v1213_v25, %v472_v23  ;;  %v1118_v28 = vpop.f32.mrb[17].mxu0  ;;  %v624_v29 = vpop.f32.mrb[17].mxu1 }
 0x119   :  { %v1119_v31 = vadd.f32 %v1118_v28, %v1117_v24  ;;  %v625_v32 = vadd.f32 %v624_v29, %v464_v26  ;;  %v1120_v33 = vpop.f32.mrb[18].mxu0  ;;  %v1214_v34 = vpop.f32.mrb[18].mxu1 }
 0x11a   :  { %v753_v36 = vmax.f32 %v633_v27, 0.0  ;;  %v636_v37 = vadd.f32 %v1214_v34, %v475_v30  ;;  %v1121_v38 = vpop.f32.mrb[19].mxu0  ;;  %v627_v39 = vpop.f32.mrb[19].mxu1 }
 0x11b   :  { %v751_v40 = vmax.f32 %v625_v32, 0.0  ;;  %v1122_v41 = vadd.f32 %v1121_v38, %v1120_v33  ;;  %v628_v43 = vadd.f32 %v627_v39, %v467_v35  ;;  %v496_v23 = vadd.f32 %v1119_v31, %v1630_v22 }
 0x11c   :  { %v1047_v42 = vpack.c.bf16 %v753_v36, %v753_v36  ;;  %v754_v45 = vmax.f32 %v636_v37, 0.0 }
 0x11d   :  { %v1045_v46 = vpack.c.bf16 %v751_v40, %v751_v40  ;;  %v752_v47 = vmax.f32 %v628_v43, 0.0  ;;  %v499_v31 = vadd.f32 %v1122_v41, %v1630_v22 }
 0x11e   :  { %914 = vst.msk [vmem:[%s1809_s3 + $0x8] sm:$0xf] %vm911_vm1, %v1047_v42  ;;  %v1048_v50 = vpack.c.bf16 %v754_v45, %v754_v45 }
 0x11f   :  { %912 = vst.msk [vmem:[%s1809_s3] sm:$0xf] %vm911_vm1, %v1045_v46  ;;  %v1046_v51 = vpack.c.bf16 %v752_v47, %v752_v47  ;;  %v1123_v52 = vpop.f32.mrb[20].mxu0  ;;  %v1217_v53 = vpop.f32.mrb[20].mxu1 }
 0x120   :  { %915 = vst.msk [vmem:[%s1809_s3 + $0xc] sm:$0xf] %vm911_vm1, %v1048_v50  ;;  %v649_v55 = vadd.f32 %v1217_v53, %v488_v48  ;;  %v1124_v57 = vpop.f32.mrb[21].mxu0  ;;  %v640_v58 = vpop.f32.mrb[21].mxu1 }
 0x121   :  { %913 = vst.msk [vmem:[%s1809_s3 + $0x4] sm:$0xf] %vm911_vm1, %v1046_v51  ;;  %v1125_v60 = vadd.f32 %v1124_v57, %v1123_v52  ;;  %v641_v62 = vadd.f32 %v640_v58, %v480_v54  ;;  %v1126_v63 = vpop.f32.mrb[22].mxu0  ;;  %v1218_v0 = vpop.f32.mrb[22].mxu1 }
 0x122   :  { %v757_v2 = vmax.f32 %v649_v55, 0.0  ;;  %v652_v3 = vadd.f32 %v1218_v0, %v491_v59  ;;  %v1127_v5 = vpop.f32.mrb[23].mxu0  ;;  %v643_v6 = vpop.f32.mrb[23].mxu1 }
 0x123   :  { %v755_v7 = vmax.f32 %v641_v62, 0.0  ;;  %v1128_v10 = vadd.f32 %v1127_v5, %v1126_v63  ;;  %v644_v11 = vadd.f32 %v643_v6, %v483_v1  ;;  %v504_v18 = vadd.f32 %v1125_v60, %v1630_v22 }
 0x124   :  { %v1051_v12 = vpack.c.bf16 %v757_v2, %v757_v2  ;;  %v758_v13 = vmax.f32 %v652_v3, 0.0 }
 0x125   :  { %v1049_v14 = vpack.c.bf16 %v755_v7, %v755_v7  ;;  %v756_v15 = vmax.f32 %v644_v11, 0.0  ;;  %v507_v27 = vadd.f32 %v1128_v10, %v1630_v22 }
 0x126   :  { %918 = vst.msk [vmem:[%s1809_s3 + $0x18] sm:$0xf] %vm911_vm1, %v1051_v12  ;;  %v1052_v17 = vpack.c.bf16 %v758_v13, %v758_v13 }
 0x127   :  { %916 = vst.msk [vmem:[%s1809_s3 + $0x10] sm:$0xf] %vm911_vm1, %v1049_v14  ;;  %v1050_v8 = vpack.c.bf16 %v756_v15, %v756_v15  ;;  %v1129_v19 = vpop.f32.mrb[24].mxu0  ;;  %v1221_v20 = vpop.f32.mrb[24].mxu1 }
 0x128   :  { %919 = vst.msk [vmem:[%s1809_s3 + $0x1c] sm:$0xf] %vm911_vm1, %v1052_v17  ;;  %v665_v24 = vadd.f32 %v1221_v20, %v504_v18  ;;  %v1130_v25 = vpop.f32.mrb[25].mxu0  ;;  %v656_v26 = vpop.f32.mrb[25].mxu1 }
 0x129   :  { %917 = vst.msk [vmem:[%s1809_s3 + $0x14] sm:$0xf] %vm911_vm1, %v1050_v8  ;;  %v1131_v28 = vadd.f32 %v1130_v25, %v1129_v19  ;;  %v657_v29 = vadd.f32 %v656_v26, %v496_v23  ;;  %v1132_v30 = vpop.f32.mrb[26].mxu0  ;;  %v1222_v32 = vpop.f32.mrb[26].mxu1 }
 0x12a   :  { %v761_v33 = vmax.f32 %v665_v24, 0.0  ;;  %v668_v34 = vadd.f32 %v1222_v32, %v507_v27  ;;  %v1133_v35 = vpop.f32.mrb[27].mxu0  ;;  %v659_v36 = vpop.f32.mrb[27].mxu1 }
 0x12b   :  { %v759_v37 = vmax.f32 %v657_v29, 0.0  ;;  %v1134_v38 = vadd.f32 %v1133_v35, %v1132_v30  ;;  %v660_v39 = vadd.f32 %v659_v36, %v499_v31  ;;  %v512_v48 = vadd.f32 %v1131_v28, %v1630_v22 }
 0x12c   :  { %v1055_v40 = vpack.c.bf16 %v761_v33, %v761_v33  ;;  %v762_v43 = vmax.f32 %v668_v34, 0.0 }
 0x12d   :  { %v1053_v42 = vpack.c.bf16 %v759_v37, %v759_v37  ;;  %v760_v45 = vmax.f32 %v660_v39, 0.0  ;;  %v515_v58 = vadd.f32 %v1134_v38, %v1630_v22 }
 0x12e   :  { %922 = vst.msk [vmem:[%s1809_s3 + $0x28] sm:$0xf] %vm911_vm1, %v1055_v40  ;;  %v1056_v46 = vpack.c.bf16 %v762_v43, %v762_v43 }
 0x12f   :  { %920 = vst.msk [vmem:[%s1809_s3 + $0x20] sm:$0xf] %vm911_vm1, %v1053_v42  ;;  %v1054_v41 = vpack.c.bf16 %v760_v45, %v760_v45  ;;  %v1135_v47 = vpop.f32.mrb[28].mxu0  ;;  %v1225_v50 = vpop.f32.mrb[28].mxu1 }
 0x130   :  { %923 = vst.msk [vmem:[%s1809_s3 + $0x2c] sm:$0xf] %vm911_vm1, %v1056_v46  ;;  %v1136_v51 = vpop.f32.mrb[29].mxu0  ;;  %v672_v52 = vpop.f32.mrb[29].mxu1 }
 0x131   :  { %921 = vst.msk [vmem:[%s1809_s3 + $0x24] sm:$0xf] %vm911_vm1, %v1054_v41  ;;  %v1137_v53 = vadd.f32 %v1136_v51, %v1135_v47  ;;  %v673_v54 = vadd.f32 %v672_v52, %v512_v48  ;;  %v1138_v55 = vpop.f32.mrb[30].mxu0  ;;  %v1226_v57 = vpop.f32.mrb[30].mxu1  ;;  %v568_v48 = vadd.f32 %v1615_v56, %v1630_v22 }
 0x132   :  { %v1139_v59 = vpop.f32.mrb[31].mxu0  ;;  %v675_v60 = vpop.f32.mrb[31].mxu1 }
 0x133   :  { %v520_v62 = vadd.f32 %v1137_v53, %v1630_v22  ;;  %v763_v63 = vmax.f32 %v673_v54, 0.0  ;;  %v1140_v0 = vadd.f32 %v1139_v59, %v1138_v55  ;;  %v676_v1 = vadd.f32 %v675_v60, %v515_v58 }
 0x134   :  { %v560_v55 = vadd.f32 %v1611_v44, %v1630_v22  ;;  %v571_v60 = vadd.f32 %v1617_v61, %v1630_v22 }
 0x135   :  { %v681_v2 = vadd.f32 %v1225_v50, %v520_v62  ;;  %v1057_v3 = vpack.c.bf16 %v763_v63, %v763_v63  ;;  %v523_v5 = vadd.f32 %v1140_v0, %v1630_v22  ;;  %v764_v6 = vmax.f32 %v676_v1, 0.0 }
 0x137   :  { %v765_v7 = vmax.f32 %v681_v2, 0.0  ;;  %924 = vst.msk [vmem:[%s1809_s3 + $0x30] sm:$0xf] %vm911_vm1, %v1057_v3  ;;  %v684_v10 = vadd.f32 %v1226_v57, %v523_v5  ;;  %v1058_v11 = vpack.c.bf16 %v764_v6, %v764_v6  ;;  %v1141_v12 = vpop.f32.mrb[32].mxu0  ;;  %v1229_v13 = vpop.f32.mrb[32].mxu1 }
 0x138   :  { %v1142_v14 = vpop.f32.mrb[33].mxu0  ;;  %v688_v15 = vpop.f32.mrb[33].mxu1 }
 0x139   :  { %v1059_v17 = vpack.c.bf16 %v765_v7, %v765_v7  ;;  %v766_v18 = vmax.f32 %v684_v10, 0.0  ;;  %925 = vst.msk [vmem:[%s1809_s3 + $0x34] sm:$0xf] %vm911_vm1, %v1058_v11  ;;  %v1143_v8 = vadd.f32 %v1142_v14, %v1141_v12  ;;  %v1144_v19 = vpop.f32.mrb[34].mxu0  ;;  %v1230_v20 = vpop.f32.mrb[34].mxu1  ;;  %v563_v7 = vadd.f32 %v1613_v49, %v1630_v22 }
 0x13a   :  { %v1145_v23 = vpop.f32.mrb[35].mxu0  ;;  %v691_v24 = vpop.f32.mrb[35].mxu1 }
 0x13b   :  { %926 = vst.msk [vmem:[%s1809_s3 + $0x38] sm:$0xf] %vm911_vm1, %v1059_v17  ;;  %v1060_v25 = vpack.c.bf16 %v766_v18, %v766_v18  ;;  %v528_v26 = vadd.f32 %v1143_v8, %v1630_v22  ;;  %v1146_v27 = vadd.f32 %v1145_v23, %v1144_v19 }
 0x13d   :  { %927 = vst.msk [vmem:[%s1809_s3 + $0x3c] sm:$0xf] %vm911_vm1, %v1060_v25  ;;  %v689_v28 = vadd.f32 %v688_v15, %v528_v26  ;;  %v531_v29 = vadd.f32 %v1146_v27, %v1630_v22  ;;  %v576_v27 = vadd.f32 %v1619_v4, %v1630_v22 }
 0x13f   :  { %v767_v30 = vmax.f32 %v689_v28, 0.0  ;;  %v692_v32 = vadd.f32 %v691_v24, %v531_v29  ;;  %v1147_v31 = vpop.f32.mrb[36].mxu0  ;;  %v1714_v33 = vpop.f32.mrb[36].mxu1 }
 0x140   :  { %v1148_v34 = vpop.f32.mrb[37].mxu0  ;;  %v704_v35 = vpop.f32.mrb[37].mxu1 }
 0x141   :  { %v1061_v36 = vpack.c.bf16 %v767_v30, %v767_v30  ;;  %v768_v37 = vmax.f32 %v692_v32, 0.0  ;;  %v1149_v38 = vadd.f32 %v1148_v34, %v1147_v31  ;;  %v1150_v39 = vpop.f32.mrb[38].mxu0  ;;  %v1716_v40 = vpop.f32.mrb[38].mxu1  ;;  %v587_v32 = vadd.f32 %v1625_v21, %v1630_v22 }
 0x142   :  { %v1151_v43 = vpop.f32.mrb[39].mxu0  ;;  %v707_v42 = vpop.f32.mrb[39].mxu1 }
 0x143   :  { %928 = vst.msk [vmem:[%s1809_s3 + $0x40] sm:$0xf] %vm911_vm1, %v1061_v36  ;;  %v1062_v45 = vpack.c.bf16 %v768_v37, %v768_v37  ;;  %v536_v46 = vadd.f32 %v1149_v38, %v1630_v22  ;;  %v1152_v41 = vadd.f32 %v1151_v43, %v1150_v39 }
 0x145   :  { %929 = vst.msk [vmem:[%s1809_s3 + $0x44] sm:$0xf] %vm911_vm1, %v1062_v45  ;;  %v697_v47 = vadd.f32 %v1229_v13, %v536_v46  ;;  %v539_v50 = vadd.f32 %v1152_v41, %v1630_v22 }
 0x147   :  { %v769_v51 = vmax.f32 %v697_v47, 0.0  ;;  %v700_v52 = vadd.f32 %v1230_v20, %v539_v50  ;;  %v1153_v53 = vpop.f32.mrb[40].mxu0  ;;  %v1237_v54 = vpop.f32.mrb[40].mxu1  ;;  %v584_v20 = vadd.f32 %v1623_v16, %v1630_v22 }
 0x148   :  { %v729_v57 = vadd.f32 %v1237_v54, %v568_v48  ;;  %v1154_v58 = vpop.f32.mrb[41].mxu0  ;;  %v720_v59 = vpop.f32.mrb[41].mxu1 }
 0x149   :  { %v1063_v62 = vpack.c.bf16 %v769_v51, %v769_v51  ;;  %v770_v63 = vmax.f32 %v700_v52, 0.0  ;;  %v1155_v0 = vadd.f32 %v1154_v58, %v1153_v53  ;;  %v721_v1 = vadd.f32 %v720_v59, %v560_v55  ;;  %v1156_v2 = vpop.f32.mrb[42].mxu0  ;;  %v1238_v3 = vpop.f32.mrb[42].mxu1 }
 0x14a   :  { %v777_v56 = vmax.f32 %v729_v57, 0.0  ;;  %v732_v5 = vadd.f32 %v1238_v3, %v571_v60  ;;  %v1157_v6 = vpop.f32.mrb[43].mxu0  ;;  %v723_v10 = vpop.f32.mrb[43].mxu1 }
 0x14b   :  { %930 = vst.msk [vmem:[%s1809_s3 + $0x48] sm:$0xf] %vm911_vm1, %v1063_v62  ;;  %v1064_v44 = vpack.c.bf16 %v770_v63, %v770_v63  ;;  %v544_v61 = vadd.f32 %v1155_v0, %v1630_v22  ;;  %v775_v11 = vmax.f32 %v721_v1, 0.0  ;;  %v1158_v12 = vadd.f32 %v1157_v6, %v1156_v2 }
 0x14c   :  { %v1071_v13 = vpack.c.bf16 %v777_v56, %v777_v56  ;;  %v778_v14 = vmax.f32 %v732_v5, 0.0  ;;  %v724_v15 = vadd.f32 %v723_v10, %v563_v7 }
 0x14d   :  { %931 = vst.msk [vmem:[%s1809_s3 + $0x4c] sm:$0xf] %vm911_vm1, %v1064_v44  ;;  %v705_v49 = vadd.f32 %v704_v35, %v544_v61  ;;  %v1069_v17 = vpack.c.bf16 %v775_v11, %v775_v11  ;;  %v547_v18 = vadd.f32 %v1158_v12, %v1630_v22 }
 0x14e   :  { %938 = vst.msk [vmem:[%s1809_s3 + $0x68] sm:$0xf] %vm911_vm1, %v1071_v13  ;;  %v1072_v8 = vpack.c.bf16 %v778_v14, %v778_v14  ;;  %v776_v19 = vmax.f32 %v724_v15, 0.0 }
 0x14f   :  { %v771_v23 = vmax.f32 %v705_v49, 0.0  ;;  %936 = vst.msk [vmem:[%s1809_s3 + $0x60] sm:$0xf] %vm911_vm1, %v1069_v17  ;;  %v708_v24 = vadd.f32 %v707_v42, %v547_v18  ;;  %v1159_v25 = vpop.f32.mrb[44].mxu0  ;;  %v1241_v26 = vpop.f32.mrb[44].mxu1  ;;  %v579_v42 = vadd.f32 %v1621_v9, %v1630_v22 }
 0x150   :  { %939 = vst.msk [vmem:[%s1809_s3 + $0x6c] sm:$0xf] %vm911_vm1, %v1072_v8  ;;  %v1070_v28 = vpack.c.bf16 %v776_v19, %v776_v19  ;;  %v745_v29 = vadd.f32 %v1241_v26, %v584_v20  ;;  %v1160_v16 = vpop.f32.mrb[45].mxu0  ;;  %v736_v30 = vpop.f32.mrb[45].mxu1 }
 0x151   :  { %v1065_v31 = vpack.c.bf16 %v771_v23, %v771_v23  ;;  %v772_v34 = vmax.f32 %v708_v24, 0.0  ;;  %v1161_v35 = vadd.f32 %v1160_v16, %v1159_v25  ;;  %v737_v36 = vadd.f32 %v736_v30, %v576_v27  ;;  %v1162_v37 = vpop.f32.mrb[46].mxu0  ;;  %v1242_v38 = vpop.f32.mrb[46].mxu1 }
 0x152   :  { %937 = vst.msk [vmem:[%s1809_s3 + $0x64] sm:$0xf] %vm911_vm1, %v1070_v28  ;;  %v781_v4 = vmax.f32 %v745_v29, 0.0  ;;  %v748_v39 = vadd.f32 %v1242_v38, %v587_v32  ;;  %v1163_v43 = vpop.f32.mrb[47].mxu0  ;;  %v739_v45 = vpop.f32.mrb[47].mxu1 }
 0x153   :  { %932 = vst.msk [vmem:[%s1809_s3 + $0x50] sm:$0xf] %vm911_vm1, %v1065_v31  ;;  %v1066_v21 = vpack.c.bf16 %v772_v34, %v772_v34  ;;  %v552_v46 = vadd.f32 %v1161_v35, %v1630_v22  ;;  %v779_v41 = vmax.f32 %v737_v36, 0.0  ;;  %v1164_v47 = vadd.f32 %v1163_v43, %v1162_v37 }
 0x154   :  { %v1075_v50 = vpack.c.bf16 %v781_v4, %v781_v4  ;;  %v782_v48 = vmax.f32 %v748_v39, 0.0  ;;  %v740_v51 = vadd.f32 %v739_v45, %v579_v42 }
 0x155   :  { %933 = vst.msk [vmem:[%s1809_s3 + $0x54] sm:$0xf] %vm911_vm1, %v1066_v21  ;;  %v713_v9 = vadd.f32 %v1714_v33, %v552_v46  ;;  %v1073_v52 = vpack.c.bf16 %v779_v41, %v779_v41  ;;  %v555_v53 = vadd.f32 %v1164_v47, %v1630_v22 }
 0x156   :  { %942 = vst.msk [vmem:[%s1809_s3 + $0x78] sm:$0xf] %vm911_vm1, %v1075_v50  ;;  %v1076_v54 = vpack.c.bf16 %v782_v48, %v782_v48  ;;  %v780_v55 = vmax.f32 %v740_v51, 0.0 }
 0x157   :  { %v773_v57 = vmax.f32 %v713_v9, 0.0  ;;  %940 = vst.msk [vmem:[%s1809_s3 + $0x70] sm:$0xf] %vm911_vm1, %v1073_v52  ;;  %v716_v58 = vadd.f32 %v1716_v40, %v555_v53 }
 0x158   :  { %943 = vst.msk [vmem:[%s1809_s3 + $0x7c] sm:$0xf] %vm911_vm1, %v1076_v54  ;;  %v1074_v22 = vpack.c.bf16 %v780_v55, %v780_v55 }
 0x159   :  { %v1067_v33 = vpack.c.bf16 %v773_v57, %v773_v57  ;;  %v774_v59 = vmax.f32 %v716_v58, 0.0 }
 0x15a   :  { %941 = vst.msk [vmem:[%s1809_s3 + $0x74] sm:$0xf] %vm911_vm1, %v1074_v22 }
 0x15b   :  { %934 = vst.msk [vmem:[%s1809_s3 + $0x58] sm:$0xf] %vm911_vm1, %v1067_v33  ;;  %v1068_v60 = vpack.c.bf16 %v774_v59, %v774_v59 }
 0x15d   :  { %935 = vst.msk [vmem:[%s1809_s3 + $0x5c] sm:$0xf] %vm911_vm1, %v1068_v60 }

// kernel: _distill_forward_impl.2
= control target key start
LH: loop header
LB: loop body
LE: loop exit
PB: predicated region body
PF: predicated region fallthrough
CT: control target
= control target key end

     0   :  { %vm349_vm0 = vcmask 1044480   ;;  %vm350_vm1 = vcmask 1045504   ;;  %v1366_v3 = vmov 65535   ;;  %vm252_vm2 = vcmask 220160   ;;  %s1852_s1 = inlined_call_operand.vmem [shape: f32[27,32], index: 1, kind: input, shape index: {}]   ;;  %s1853_s0 = inlined_call_operand.vmem [shape: bf16[512,27], index: 0, kind: input, shape index: {}]   ;;  %s1854_s2 = inlined_call_operand.vmem [shape: f32[1,32], index: 2, kind: input, shape index: {}]   ;;  %s1855_s3 = inlined_call_operand.vmem [shape: bf16[512,32], index: 3, kind: output, shape index: {}]  }
   0x1   :  { %v79_v0 = vld [vmem:[%s1852_s1] sm:$0xff]  ;;  %v80_v1 = vld [vmem:[%s1852_s1 + $0x8] sm:$0xff]  ;;  %v81_v2 = vld [vmem:[%s1852_s1 + $0x10] sm:$0xff]  ;;  %v351_v4 = vsel %vm349_vm0, 4294967295, %v1366_v3  ;;  %vm965_vm3 = vcmask 257024  }
   0x2   :  { %v83_v5 = vpack.c.bf16 %v80_v1, %v79_v0  ;;  %v82_v6 = vld [vmem:[%s1852_s1 + $0x18] sm:$0x7]  ;;  %v352_v7 = vsel %vm350_vm1, %v351_v4, 0  ;;  %v1334_v8 = vld [vmem:[%s1853_s0] sm:$0xff]   ;;  %v1336_v12 = vld [vmem:[%s1853_s0 + $0x8] sm:$0xff]  }
   0x3   :  { %v84_v9 = vpack.c.bf16 %v82_v6, %v81_v2  ;;  %v1335_v10 = vld [vmem:[%s1853_s0 + $0x80] sm:$0xff]   ;;  %1265 = vmatprep.mubr.msk.bf16.mxu0 %vm252_vm2, %v1334_v8  ;;  %v1337_v13 = vld [vmem:[%s1853_s0 + $0x88] sm:$0xff]   ;;  %v1338_v14 = vld [vmem:[%s1853_s0 + $0x10] sm:$0xff]  }
   0x4   :  { %1261 = vmatprep.subr.bf16.mxu0 %v83_v5  ;;  %1329 = vmatprep.subr.bf16.mxu1 %v83_v5  ;;  %v1339_v15 = vld [vmem:[%s1853_s0 + $0x90] sm:$0xff]   ;;  %v1340_v16 = vld [vmem:[%s1853_s0 + $0x18] sm:$0xff]   ;;  %v1342_v18 = vld [vmem:[%s1853_s0 + $0x20] sm:$0xff]  }
   0x5   :  { %1262 = vmatpush3.bf16.msra.mxu0 %v83_v5  ;;  %1331 = vmatpush3.bf16.msra.mxu1 %v83_v5  ;;  %v354_v11 = vand.u32 %v352_v7, %v84_v9  ;;  %v1341_v17 = vld [vmem:[%s1853_s0 + $0x98] sm:$0xff]   ;;  %v1343_v19 = vld [vmem:[%s1853_s0 + $0xa0] sm:$0xff]   ;;  %v1344_v20 = vld [vmem:[%s1853_s0 + $0x28] sm:$0xff]  }
   0x6   :  { %1297 = vmatprep.mubr.msk.bf16.mxu1 %vm252_vm2, %v1335_v10  ;;  %v1345_v21 = vld [vmem:[%s1853_s0 + $0xa8] sm:$0xff]   ;;  %v1346_v22 = vld [vmem:[%s1853_s0 + $0x30] sm:$0xff]   ;;  %v1348_v24 = vld [vmem:[%s1853_s0 + $0x38] sm:$0xff]  }
   0x7   :  { %1263 = vmatprep.subr.bf16.mxu0 %v354_v11  ;;  %1330 = vmatprep.subr.bf16.mxu1 %v354_v11  ;;  %v1347_v23 = vld [vmem:[%s1853_s0 + $0xb0] sm:$0xff]   ;;  %v1349_v25 = vld [vmem:[%s1853_s0 + $0xb8] sm:$0xff]   ;;  %v1350_v26 = vld [vmem:[%s1853_s0 + $0x40] sm:$0xff]  }
   0x8   :  { %v1351_v27 = vld [vmem:[%s1853_s0 + $0xc0] sm:$0xff]   ;;  %v1352_v28 = vld [vmem:[%s1853_s0 + $0x48] sm:$0xff]   ;;  %v1354_v30 = vld [vmem:[%s1853_s0 + $0x50] sm:$0xff]  }
   0x9   :  { %1264 = vmatpush3.bf16.msra.mxu0 %v354_v11  ;;  %1332 = vmatpush3.bf16.msra.mxu1 %v354_v11  ;;  %v1353_v29 = vld [vmem:[%s1853_s0 + $0xc8] sm:$0xff]   ;;  %v1355_v31 = vld [vmem:[%s1853_s0 + $0xd0] sm:$0xff]   ;;  %v1356_v32 = vld [vmem:[%s1853_s0 + $0x58] sm:$0xff]  }
   0xa   :  { %v1357_v33 = vld [vmem:[%s1853_s0 + $0xd8] sm:$0xff]   ;;  %v1358_v34 = vld [vmem:[%s1853_s0 + $0x60] sm:$0xff]   ;;  %v1360_v36 = vld [vmem:[%s1853_s0 + $0x68] sm:$0xff]  }
   0xb   :  { %v1359_v35 = vld [vmem:[%s1853_s0 + $0xe0] sm:$0xff]   ;;  %v1361_v37 = vld [vmem:[%s1853_s0 + $0xe8] sm:$0xff]   ;;  %v1362_v38 = vld [vmem:[%s1853_s0 + $0x70] sm:$0xff]  }
   0xc   :  { %1266 = vmatmul.mubr.msk.bf16.vlgmr.msra.gmra.mrb[0].mxu0 %vm252_vm2, %v1336_v12  ;;  %1298 = vmatmul.mubr.msk.bf16.vlgmr.msra.gmra.mrb[0].mxu1 %vm252_vm2, %v1337_v13  ;;  %v1363_v39 = vld [vmem:[%s1853_s0 + $0xf0] sm:$0xff]   ;;  %v1364_v40 = vld [vmem:[%s1853_s0 + $0x78] sm:$0xff]   ;;  %v1530_v42 = vld [vmem:[%s1854_s2] ss:$0 sm:$0xff] }
   0xd   :  { %1269 = vmatprep.mubr.msk.bf16.mxu0 %vm252_vm2, %v1338_v14  ;;  %1301 = vmatprep.mubr.msk.bf16.mxu1 %vm252_vm2, %v1339_v15  ;;  %v1365_v41 = vld [vmem:[%s1853_s0 + $0xf8] sm:$0xff]  }
  0x14   :  { %1270 = vmatmul.mubr.msk.bf16.gmra.mrb[4].mxu0 %vm252_vm2, %v1340_v16  ;;  %1302 = vmatmul.mubr.msk.bf16.gmra.mrb[4].mxu1 %vm252_vm2, %v1341_v17 }
  0x15   :  { %1273 = vmatprep.mubr.msk.bf16.mxu0 %vm252_vm2, %v1342_v18  ;;  %1305 = vmatprep.mubr.msk.bf16.mxu1 %vm252_vm2, %v1343_v19 }
  0x1c   :  { %1274 = vmatmul.mubr.msk.bf16.gmra.mrb[8].mxu0 %vm252_vm2, %v1344_v20  ;;  %1306 = vmatmul.mubr.msk.bf16.gmra.mrb[8].mxu1 %vm252_vm2, %v1345_v21 }
  0x1d   :  { %1277 = vmatprep.mubr.msk.bf16.mxu0 %vm252_vm2, %v1346_v22  ;;  %1309 = vmatprep.mubr.msk.bf16.mxu1 %vm252_vm2, %v1347_v23 }
  0x24   :  { %1278 = vmatmul.mubr.msk.bf16.gmra.mrb[12].mxu0 %vm252_vm2, %v1348_v24  ;;  %1310 = vmatmul.mubr.msk.bf16.gmra.mrb[12].mxu1 %vm252_vm2, %v1349_v25 }
  0x25   :  { %1281 = vmatprep.mubr.msk.bf16.mxu0 %vm252_vm2, %v1350_v26  ;;  %1313 = vmatprep.mubr.msk.bf16.mxu1 %vm252_vm2, %v1351_v27 }
  0x2c   :  { %1282 = vmatmul.mubr.msk.bf16.gmra.mrb[16].mxu0 %vm252_vm2, %v1352_v28  ;;  %1314 = vmatmul.mubr.msk.bf16.gmra.mrb[16].mxu1 %vm252_vm2, %v1353_v29 }
  0x2d   :  { %1285 = vmatprep.mubr.msk.bf16.mxu0 %vm252_vm2, %v1354_v30  ;;  %1317 = vmatprep.mubr.msk.bf16.mxu1 %vm252_vm2, %v1355_v31 }
  0x34   :  { %1286 = vmatmul.mubr.msk.bf16.gmra.mrb[20].mxu0 %vm252_vm2, %v1356_v32  ;;  %1318 = vmatmul.mubr.msk.bf16.gmra.mrb[20].mxu1 %vm252_vm2, %v1357_v33 }
  0x35   :  { %1289 = vmatprep.mubr.msk.bf16.mxu0 %vm252_vm2, %v1358_v34  ;;  %1321 = vmatprep.mubr.msk.bf16.mxu1 %vm252_vm2, %v1359_v35 }
  0x3c   :  { %1290 = vmatmul.mubr.msk.bf16.gmra.mrb[24].mxu0 %vm252_vm2, %v1360_v36  ;;  %1322 = vmatmul.mubr.msk.bf16.gmra.mrb[24].mxu1 %vm252_vm2, %v1361_v37 }
  0x3d   :  { %1293 = vmatprep.mubr.msk.bf16.mxu0 %vm252_vm2, %v1362_v38  ;;  %1325 = vmatprep.mubr.msk.bf16.mxu1 %vm252_vm2, %v1363_v39 }
  0x44   :  { %1294 = vmatmul.mubr.msk.bf16.gmra.mrb[28].mxu0 %vm252_vm2, %v1364_v40  ;;  %1326 = vmatmul.mubr.msk.bf16.gmra.mrb[28].mxu1 %vm252_vm2, %v1365_v41 }
  0xdf   :  { %v1267_v43 = vpop.f32.mrb[0].mxu0  ;;  %v1299_v44 = vpop.f32.mrb[0].mxu1 }
  0xe0   :  { %v399_v45 = vadd.f32 %v1267_v43, %v1530_v42  ;;  %v527_v46 = vadd.f32 %v1299_v44, %v1530_v42  ;;  %v390_v47 = vpop.f32.mrb[1].mxu0  ;;  %v518_v48 = vpop.f32.mrb[1].mxu1 }
  0xe1   :  { %v391_v49 = vadd.f32 %v1530_v42, %v390_v47  ;;  %v519_v50 = vadd.f32 %v1530_v42, %v518_v48  ;;  %v1268_v51 = vpop.f32.mrb[2].mxu0  ;;  %v1300_v52 = vpop.f32.mrb[2].mxu1 }
  0xe2   :  { %v647_v53 = vmax.f32 %v399_v45, 0.0  ;;  %v679_v54 = vmax.f32 %v527_v46, 0.0  ;;  %v402_v55 = vadd.f32 %v1268_v51, %v1530_v42  ;;  %v530_v56 = vadd.f32 %v1300_v52, %v1530_v42  ;;  %v393_v57 = vpop.f32.mrb[3].mxu0  ;;  %v521_v58 = vpop.f32.mrb[3].mxu1 }
  0xe3   :  { %v645_v59 = vmax.f32 %v391_v49, 0.0  ;;  %v677_v60 = vmax.f32 %v519_v50, 0.0  ;;  %v394_v61 = vadd.f32 %v1530_v42, %v393_v57  ;;  %v522_v62 = vadd.f32 %v1530_v42, %v521_v58 }
  0xe4   :  { %v1165_v63 = vpack.c.bf16 %v647_v53, %v647_v53  ;;  %v1197_v0 = vpack.c.bf16 %v679_v54, %v679_v54  ;;  %v648_v1 = vmax.f32 %v402_v55, 0.0  ;;  %v680_v2 = vmax.f32 %v530_v56, 0.0 }
  0xe5   :  { %v1163_v3 = vpack.c.bf16 %v645_v59, %v645_v59  ;;  %v1195_v4 = vpack.c.bf16 %v677_v60, %v677_v60  ;;  %v646_v5 = vmax.f32 %v394_v61, 0.0  ;;  %v678_v6 = vmax.f32 %v522_v62, 0.0 }
  0xe6   :  { %968 = vst.msk [vmem:[%s1855_s3 + $0x8] sm:$0xf] %vm965_vm3, %v1165_v63  ;;  %1000 = vst.msk [vmem:[%s1855_s3 + $0x88] sm:$0xf] %vm965_vm3, %v1197_v0  ;;  %v1166_v7 = vpack.c.bf16 %v648_v1, %v648_v1  ;;  %v1198_v8 = vpack.c.bf16 %v680_v2, %v680_v2 }
  0xe7   :  { %966 = vst.msk [vmem:[%s1855_s3] sm:$0xf] %vm965_vm3, %v1163_v3  ;;  %998 = vst.msk [vmem:[%s1855_s3 + $0x80] sm:$0xf] %vm965_vm3, %v1195_v4  ;;  %v1164_v9 = vpack.c.bf16 %v646_v5, %v646_v5  ;;  %v1196_v10 = vpack.c.bf16 %v678_v6, %v678_v6  ;;  %v1271_v11 = vpop.f32.mrb[4].mxu0  ;;  %v1303_v12 = vpop.f32.mrb[4].mxu1 }
  0xe8   :  { %969 = vst.msk [vmem:[%s1855_s3 + $0xc] sm:$0xf] %vm965_vm3, %v1166_v7  ;;  %1001 = vst.msk [vmem:[%s1855_s3 + $0x8c] sm:$0xf] %vm965_vm3, %v1198_v8  ;;  %v415_v13 = vadd.f32 %v1271_v11, %v1530_v42  ;;  %v543_v14 = vadd.f32 %v1303_v12, %v1530_v42  ;;  %v406_v15 = vpop.f32.mrb[5].mxu0  ;;  %v534_v16 = vpop.f32.mrb[5].mxu1 }
  0xe9   :  { %967 = vst.msk [vmem:[%s1855_s3 + $0x4] sm:$0xf] %vm965_vm3, %v1164_v9  ;;  %999 = vst.msk [vmem:[%s1855_s3 + $0x84] sm:$0xf] %vm965_vm3, %v1196_v10  ;;  %v407_v17 = vadd.f32 %v1530_v42, %v406_v15  ;;  %v535_v18 = vadd.f32 %v1530_v42, %v534_v16  ;;  %v1272_v19 = vpop.f32.mrb[6].mxu0  ;;  %v1304_v20 = vpop.f32.mrb[6].mxu1 }
  0xea   :  { %v651_v21 = vmax.f32 %v415_v13, 0.0  ;;  %v683_v22 = vmax.f32 %v543_v14, 0.0  ;;  %v418_v23 = vadd.f32 %v1272_v19, %v1530_v42  ;;  %v546_v24 = vadd.f32 %v1304_v20, %v1530_v42  ;;  %v409_v25 = vpop.f32.mrb[7].mxu0  ;;  %v537_v26 = vpop.f32.mrb[7].mxu1 }
  0xeb   :  { %v649_v27 = vmax.f32 %v407_v17, 0.0  ;;  %v681_v28 = vmax.f32 %v535_v18, 0.0  ;;  %v410_v29 = vadd.f32 %v1530_v42, %v409_v25  ;;  %v538_v30 = vadd.f32 %v1530_v42, %v537_v26 }
  0xec   :  { %v1169_v31 = vpack.c.bf16 %v651_v21, %v651_v21  ;;  %v1201_v32 = vpack.c.bf16 %v683_v22, %v683_v22  ;;  %v652_v33 = vmax.f32 %v418_v23, 0.0  ;;  %v684_v34 = vmax.f32 %v546_v24, 0.0 }
  0xed   :  { %v1167_v35 = vpack.c.bf16 %v649_v27, %v649_v27  ;;  %v1199_v36 = vpack.c.bf16 %v681_v28, %v681_v28  ;;  %v650_v37 = vmax.f32 %v410_v29, 0.0  ;;  %v682_v38 = vmax.f32 %v538_v30, 0.0 }
  0xee   :  { %972 = vst.msk [vmem:[%s1855_s3 + $0x18] sm:$0xf] %vm965_vm3, %v1169_v31  ;;  %1004 = vst.msk [vmem:[%s1855_s3 + $0x98] sm:$0xf] %vm965_vm3, %v1201_v32  ;;  %v1170_v39 = vpack.c.bf16 %v652_v33, %v652_v33  ;;  %v1202_v40 = vpack.c.bf16 %v684_v34, %v684_v34 }
  0xef   :  { %970 = vst.msk [vmem:[%s1855_s3 + $0x10] sm:$0xf] %vm965_vm3, %v1167_v35  ;;  %1002 = vst.msk [vmem:[%s1855_s3 + $0x90] sm:$0xf] %vm965_vm3, %v1199_v36  ;;  %v1168_v41 = vpack.c.bf16 %v650_v37, %v650_v37  ;;  %v1200_v43 = vpack.c.bf16 %v682_v38, %v682_v38  ;;  %v1275_v44 = vpop.f32.mrb[8].mxu0  ;;  %v1307_v45 = vpop.f32.mrb[8].mxu1 }
  0xf0   :  { %973 = vst.msk [vmem:[%s1855_s3 + $0x1c] sm:$0xf] %vm965_vm3, %v1170_v39  ;;  %1005 = vst.msk [vmem:[%s1855_s3 + $0x9c] sm:$0xf] %vm965_vm3, %v1202_v40  ;;  %v431_v46 = vadd.f32 %v1275_v44, %v1530_v42  ;;  %v559_v47 = vadd.f32 %v1307_v45, %v1530_v42  ;;  %v422_v48 = vpop.f32.mrb[9].mxu0  ;;  %v550_v49 = vpop.f32.mrb[9].mxu1 }
  0xf1   :  { %971 = vst.msk [vmem:[%s1855_s3 + $0x14] sm:$0xf] %vm965_vm3, %v1168_v41  ;;  %1003 = vst.msk [vmem:[%s1855_s3 + $0x94] sm:$0xf] %vm965_vm3, %v1200_v43  ;;  %v423_v50 = vadd.f32 %v1530_v42, %v422_v48  ;;  %v551_v51 = vadd.f32 %v1530_v42, %v550_v49  ;;  %v1276_v52 = vpop.f32.mrb[10].mxu0  ;;  %v1308_v53 = vpop.f32.mrb[10].mxu1 }
  0xf2   :  { %v655_v54 = vmax.f32 %v431_v46, 0.0  ;;  %v687_v55 = vmax.f32 %v559_v47, 0.0  ;;  %v434_v56 = vadd.f32 %v1276_v52, %v1530_v42  ;;  %v562_v57 = vadd.f32 %v1308_v53, %v1530_v42  ;;  %v425_v58 = vpop.f32.mrb[11].mxu0  ;;  %v553_v59 = vpop.f32.mrb[11].mxu1 }
  0xf3   :  { %v653_v60 = vmax.f32 %v423_v50, 0.0  ;;  %v685_v61 = vmax.f32 %v551_v51, 0.0  ;;  %v426_v62 = vadd.f32 %v1530_v42, %v425_v58  ;;  %v554_v63 = vadd.f32 %v1530_v42, %v553_v59 }
  0xf4   :  { %v1173_v0 = vpack.c.bf16 %v655_v54, %v655_v54  ;;  %v1205_v1 = vpack.c.bf16 %v687_v55, %v687_v55  ;;  %v656_v2 = vmax.f32 %v434_v56, 0.0  ;;  %v688_v3 = vmax.f32 %v562_v57, 0.0 }
  0xf5   :  { %v1171_v4 = vpack.c.bf16 %v653_v60, %v653_v60  ;;  %v1203_v5 = vpack.c.bf16 %v685_v61, %v685_v61  ;;  %v654_v6 = vmax.f32 %v426_v62, 0.0  ;;  %v686_v7 = vmax.f32 %v554_v63, 0.0 }
  0xf6   :  { %976 = vst.msk [vmem:[%s1855_s3 + $0x28] sm:$0xf] %vm965_vm3, %v1173_v0  ;;  %1008 = vst.msk [vmem:[%s1855_s3 + $0xa8] sm:$0xf] %vm965_vm3, %v1205_v1  ;;  %v1174_v8 = vpack.c.bf16 %v656_v2, %v656_v2  ;;  %v1206_v9 = vpack.c.bf16 %v688_v3, %v688_v3 }
  0xf7   :  { %974 = vst.msk [vmem:[%s1855_s3 + $0x20] sm:$0xf] %vm965_vm3, %v1171_v4  ;;  %1006 = vst.msk [vmem:[%s1855_s3 + $0xa0] sm:$0xf] %vm965_vm3, %v1203_v5  ;;  %v1172_v10 = vpack.c.bf16 %v654_v6, %v654_v6  ;;  %v1204_v11 = vpack.c.bf16 %v686_v7, %v686_v7  ;;  %v1279_v12 = vpop.f32.mrb[12].mxu0  ;;  %v1311_v13 = vpop.f32.mrb[12].mxu1 }
  0xf8   :  { %977 = vst.msk [vmem:[%s1855_s3 + $0x2c] sm:$0xf] %vm965_vm3, %v1174_v8  ;;  %1009 = vst.msk [vmem:[%s1855_s3 + $0xac] sm:$0xf] %vm965_vm3, %v1206_v9  ;;  %v447_v14 = vadd.f32 %v1279_v12, %v1530_v42  ;;  %v575_v15 = vadd.f32 %v1311_v13, %v1530_v42  ;;  %v438_v16 = vpop.f32.mrb[13].mxu0  ;;  %v566_v17 = vpop.f32.mrb[13].mxu1 }
  0xf9   :  { %975 = vst.msk [vmem:[%s1855_s3 + $0x24] sm:$0xf] %vm965_vm3, %v1172_v10  ;;  %1007 = vst.msk [vmem:[%s1855_s3 + $0xa4] sm:$0xf] %vm965_vm3, %v1204_v11  ;;  %v439_v18 = vadd.f32 %v1530_v42, %v438_v16  ;;  %v567_v19 = vadd.f32 %v1530_v42, %v566_v17  ;;  %v1280_v20 = vpop.f32.mrb[14].mxu0  ;;  %v1312_v21 = vpop.f32.mrb[14].mxu1 }
  0xfa   :  { %v659_v22 = vmax.f32 %v447_v14, 0.0  ;;  %v691_v23 = vmax.f32 %v575_v15, 0.0  ;;  %v450_v24 = vadd.f32 %v1280_v20, %v1530_v42  ;;  %v578_v25 = vadd.f32 %v1312_v21, %v1530_v42  ;;  %v441_v26 = vpop.f32.mrb[15].mxu0  ;;  %v569_v27 = vpop.f32.mrb[15].mxu1 }
  0xfb   :  { %v657_v28 = vmax.f32 %v439_v18, 0.0  ;;  %v689_v29 = vmax.f32 %v567_v19, 0.0  ;;  %v442_v30 = vadd.f32 %v1530_v42, %v441_v26  ;;  %v570_v31 = vadd.f32 %v1530_v42, %v569_v27 }
  0xfc   :  { %v1177_v32 = vpack.c.bf16 %v659_v22, %v659_v22  ;;  %v1209_v33 = vpack.c.bf16 %v691_v23, %v691_v23  ;;  %v660_v34 = vmax.f32 %v450_v24, 0.0  ;;  %v692_v35 = vmax.f32 %v578_v25, 0.0 }
  0xfd   :  { %v1175_v36 = vpack.c.bf16 %v657_v28, %v657_v28  ;;  %v1207_v37 = vpack.c.bf16 %v689_v29, %v689_v29  ;;  %v658_v38 = vmax.f32 %v442_v30, 0.0  ;;  %v690_v39 = vmax.f32 %v570_v31, 0.0 }
  0xfe   :  { %980 = vst.msk [vmem:[%s1855_s3 + $0x38] sm:$0xf] %vm965_vm3, %v1177_v32  ;;  %1012 = vst.msk [vmem:[%s1855_s3 + $0xb8] sm:$0xf] %vm965_vm3, %v1209_v33  ;;  %v1178_v40 = vpack.c.bf16 %v660_v34, %v660_v34  ;;  %v1210_v41 = vpack.c.bf16 %v692_v35, %v692_v35 }
  0xff   :  { %978 = vst.msk [vmem:[%s1855_s3 + $0x30] sm:$0xf] %vm965_vm3, %v1175_v36  ;;  %1010 = vst.msk [vmem:[%s1855_s3 + $0xb0] sm:$0xf] %vm965_vm3, %v1207_v37  ;;  %v1176_v43 = vpack.c.bf16 %v658_v38, %v658_v38  ;;  %v1208_v44 = vpack.c.bf16 %v690_v39, %v690_v39  ;;  %v1283_v45 = vpop.f32.mrb[16].mxu0  ;;  %v1315_v46 = vpop.f32.mrb[16].mxu1 }
 0x100   :  { %981 = vst.msk [vmem:[%s1855_s3 + $0x3c] sm:$0xf] %vm965_vm3, %v1178_v40  ;;  %1013 = vst.msk [vmem:[%s1855_s3 + $0xbc] sm:$0xf] %vm965_vm3, %v1210_v41  ;;  %v463_v47 = vadd.f32 %v1283_v45, %v1530_v42  ;;  %v591_v48 = vadd.f32 %v1315_v46, %v1530_v42  ;;  %v454_v49 = vpop.f32.mrb[17].mxu0  ;;  %v582_v50 = vpop.f32.mrb[17].mxu1 }
 0x101   :  { %979 = vst.msk [vmem:[%s1855_s3 + $0x34] sm:$0xf] %vm965_vm3, %v1176_v43  ;;  %1011 = vst.msk [vmem:[%s1855_s3 + $0xb4] sm:$0xf] %vm965_vm3, %v1208_v44  ;;  %v455_v51 = vadd.f32 %v1530_v42, %v454_v49  ;;  %v583_v52 = vadd.f32 %v1530_v42, %v582_v50  ;;  %v1284_v53 = vpop.f32.mrb[18].mxu0  ;;  %v1316_v54 = vpop.f32.mrb[18].mxu1 }
 0x102   :  { %v663_v55 = vmax.f32 %v463_v47, 0.0  ;;  %v695_v56 = vmax.f32 %v591_v48, 0.0  ;;  %v466_v57 = vadd.f32 %v1284_v53, %v1530_v42  ;;  %v594_v58 = vadd.f32 %v1316_v54, %v1530_v42  ;;  %v457_v59 = vpop.f32.mrb[19].mxu0  ;;  %v585_v60 = vpop.f32.mrb[19].mxu1 }
 0x103   :  { %v661_v61 = vmax.f32 %v455_v51, 0.0  ;;  %v693_v62 = vmax.f32 %v583_v52, 0.0  ;;  %v458_v63 = vadd.f32 %v1530_v42, %v457_v59  ;;  %v586_v0 = vadd.f32 %v1530_v42, %v585_v60 }
 0x104   :  { %v1181_v1 = vpack.c.bf16 %v663_v55, %v663_v55  ;;  %v1213_v2 = vpack.c.bf16 %v695_v56, %v695_v56  ;;  %v664_v3 = vmax.f32 %v466_v57, 0.0  ;;  %v696_v4 = vmax.f32 %v594_v58, 0.0 }
 0x105   :  { %v1179_v5 = vpack.c.bf16 %v661_v61, %v661_v61  ;;  %v1211_v6 = vpack.c.bf16 %v693_v62, %v693_v62  ;;  %v662_v7 = vmax.f32 %v458_v63, 0.0  ;;  %v694_v8 = vmax.f32 %v586_v0, 0.0 }
 0x106   :  { %984 = vst.msk [vmem:[%s1855_s3 + $0x48] sm:$0xf] %vm965_vm3, %v1181_v1  ;;  %1016 = vst.msk [vmem:[%s1855_s3 + $0xc8] sm:$0xf] %vm965_vm3, %v1213_v2  ;;  %v1182_v9 = vpack.c.bf16 %v664_v3, %v664_v3  ;;  %v1214_v10 = vpack.c.bf16 %v696_v4, %v696_v4 }
 0x107   :  { %982 = vst.msk [vmem:[%s1855_s3 + $0x40] sm:$0xf] %vm965_vm3, %v1179_v5  ;;  %1014 = vst.msk [vmem:[%s1855_s3 + $0xc0] sm:$0xf] %vm965_vm3, %v1211_v6  ;;  %v1180_v11 = vpack.c.bf16 %v662_v7, %v662_v7  ;;  %v1212_v12 = vpack.c.bf16 %v694_v8, %v694_v8  ;;  %v1287_v13 = vpop.f32.mrb[20].mxu0  ;;  %v1319_v14 = vpop.f32.mrb[20].mxu1 }
 0x108   :  { %985 = vst.msk [vmem:[%s1855_s3 + $0x4c] sm:$0xf] %vm965_vm3, %v1182_v9  ;;  %1017 = vst.msk [vmem:[%s1855_s3 + $0xcc] sm:$0xf] %vm965_vm3, %v1214_v10  ;;  %v479_v15 = vadd.f32 %v1287_v13, %v1530_v42  ;;  %v607_v16 = vadd.f32 %v1319_v14, %v1530_v42  ;;  %v470_v17 = vpop.f32.mrb[21].mxu0  ;;  %v598_v18 = vpop.f32.mrb[21].mxu1 }
 0x109   :  { %983 = vst.msk [vmem:[%s1855_s3 + $0x44] sm:$0xf] %vm965_vm3, %v1180_v11  ;;  %1015 = vst.msk [vmem:[%s1855_s3 + $0xc4] sm:$0xf] %vm965_vm3, %v1212_v12  ;;  %v471_v19 = vadd.f32 %v1530_v42, %v470_v17  ;;  %v599_v20 = vadd.f32 %v1530_v42, %v598_v18  ;;  %v1288_v21 = vpop.f32.mrb[22].mxu0  ;;  %v1320_v22 = vpop.f32.mrb[22].mxu1 }
 0x10a   :  { %v667_v23 = vmax.f32 %v479_v15, 0.0  ;;  %v699_v24 = vmax.f32 %v607_v16, 0.0  ;;  %v482_v25 = vadd.f32 %v1288_v21, %v1530_v42  ;;  %v610_v26 = vadd.f32 %v1320_v22, %v1530_v42  ;;  %v473_v27 = vpop.f32.mrb[23].mxu0  ;;  %v601_v28 = vpop.f32.mrb[23].mxu1 }
 0x10b   :  { %v665_v29 = vmax.f32 %v471_v19, 0.0  ;;  %v697_v30 = vmax.f32 %v599_v20, 0.0  ;;  %v474_v31 = vadd.f32 %v1530_v42, %v473_v27  ;;  %v602_v32 = vadd.f32 %v1530_v42, %v601_v28 }
 0x10c   :  { %v1185_v33 = vpack.c.bf16 %v667_v23, %v667_v23  ;;  %v1217_v34 = vpack.c.bf16 %v699_v24, %v699_v24  ;;  %v668_v35 = vmax.f32 %v482_v25, 0.0  ;;  %v700_v36 = vmax.f32 %v610_v26, 0.0 }
 0x10d   :  { %v1183_v37 = vpack.c.bf16 %v665_v29, %v665_v29  ;;  %v1215_v38 = vpack.c.bf16 %v697_v30, %v697_v30  ;;  %v666_v39 = vmax.f32 %v474_v31, 0.0  ;;  %v698_v40 = vmax.f32 %v602_v32, 0.0 }
 0x10e   :  { %988 = vst.msk [vmem:[%s1855_s3 + $0x58] sm:$0xf] %vm965_vm3, %v1185_v33  ;;  %1020 = vst.msk [vmem:[%s1855_s3 + $0xd8] sm:$0xf] %vm965_vm3, %v1217_v34  ;;  %v1186_v41 = vpack.c.bf16 %v668_v35, %v668_v35  ;;  %v1218_v43 = vpack.c.bf16 %v700_v36, %v700_v36 }
 0x10f   :  { %986 = vst.msk [vmem:[%s1855_s3 + $0x50] sm:$0xf] %vm965_vm3, %v1183_v37  ;;  %1018 = vst.msk [vmem:[%s1855_s3 + $0xd0] sm:$0xf] %vm965_vm3, %v1215_v38  ;;  %v1184_v44 = vpack.c.bf16 %v666_v39, %v666_v39  ;;  %v1216_v45 = vpack.c.bf16 %v698_v40, %v698_v40  ;;  %v1291_v46 = vpop.f32.mrb[24].mxu0  ;;  %v1323_v47 = vpop.f32.mrb[24].mxu1 }
 0x110   :  { %989 = vst.msk [vmem:[%s1855_s3 + $0x5c] sm:$0xf] %vm965_vm3, %v1186_v41  ;;  %1021 = vst.msk [vmem:[%s1855_s3 + $0xdc] sm:$0xf] %vm965_vm3, %v1218_v43  ;;  %v495_v48 = vadd.f32 %v1291_v46, %v1530_v42  ;;  %v623_v49 = vadd.f32 %v1323_v47, %v1530_v42  ;;  %v486_v50 = vpop.f32.mrb[25].mxu0  ;;  %v614_v51 = vpop.f32.mrb[25].mxu1 }
 0x111   :  { %987 = vst.msk [vmem:[%s1855_s3 + $0x54] sm:$0xf] %vm965_vm3, %v1184_v44  ;;  %1019 = vst.msk [vmem:[%s1855_s3 + $0xd4] sm:$0xf] %vm965_vm3, %v1216_v45  ;;  %v487_v52 = vadd.f32 %v1530_v42, %v486_v50  ;;  %v615_v53 = vadd.f32 %v1530_v42, %v614_v51  ;;  %v1292_v54 = vpop.f32.mrb[26].mxu0  ;;  %v1324_v55 = vpop.f32.mrb[26].mxu1 }
 0x112   :  { %v671_v56 = vmax.f32 %v495_v48, 0.0  ;;  %v703_v57 = vmax.f32 %v623_v49, 0.0  ;;  %v498_v58 = vadd.f32 %v1292_v54, %v1530_v42  ;;  %v626_v59 = vadd.f32 %v1324_v55, %v1530_v42  ;;  %v489_v60 = vpop.f32.mrb[27].mxu0  ;;  %v617_v61 = vpop.f32.mrb[27].mxu1 }
 0x113   :  { %v669_v62 = vmax.f32 %v487_v52, 0.0  ;;  %v701_v63 = vmax.f32 %v615_v53, 0.0  ;;  %v490_v0 = vadd.f32 %v1530_v42, %v489_v60  ;;  %v618_v1 = vadd.f32 %v1530_v42, %v617_v61 }
 0x114   :  { %v1189_v2 = vpack.c.bf16 %v671_v56, %v671_v56  ;;  %v1221_v3 = vpack.c.bf16 %v703_v57, %v703_v57  ;;  %v672_v4 = vmax.f32 %v498_v58, 0.0  ;;  %v704_v5 = vmax.f32 %v626_v59, 0.0 }
 0x115   :  { %v1187_v6 = vpack.c.bf16 %v669_v62, %v669_v62  ;;  %v1219_v7 = vpack.c.bf16 %v701_v63, %v701_v63  ;;  %v670_v8 = vmax.f32 %v490_v0, 0.0  ;;  %v702_v9 = vmax.f32 %v618_v1, 0.0 }
 0x116   :  { %992 = vst.msk [vmem:[%s1855_s3 + $0x68] sm:$0xf] %vm965_vm3, %v1189_v2  ;;  %1024 = vst.msk [vmem:[%s1855_s3 + $0xe8] sm:$0xf] %vm965_vm3, %v1221_v3  ;;  %v1190_v10 = vpack.c.bf16 %v672_v4, %v672_v4  ;;  %v1222_v11 = vpack.c.bf16 %v704_v5, %v704_v5 }
 0x117   :  { %990 = vst.msk [vmem:[%s1855_s3 + $0x60] sm:$0xf] %vm965_vm3, %v1187_v6  ;;  %1022 = vst.msk [vmem:[%s1855_s3 + $0xe0] sm:$0xf] %vm965_vm3, %v1219_v7  ;;  %v1188_v12 = vpack.c.bf16 %v670_v8, %v670_v8  ;;  %v1220_v13 = vpack.c.bf16 %v702_v9, %v702_v9  ;;  %v1295_v14 = vpop.f32.mrb[28].mxu0  ;;  %v1327_v15 = vpop.f32.mrb[28].mxu1 }
 0x118   :  { %993 = vst.msk [vmem:[%s1855_s3 + $0x6c] sm:$0xf] %vm965_vm3, %v1190_v10  ;;  %1025 = vst.msk [vmem:[%s1855_s3 + $0xec] sm:$0xf] %vm965_vm3, %v1222_v11  ;;  %v511_v16 = vadd.f32 %v1295_v14, %v1530_v42  ;;  %v639_v17 = vadd.f32 %v1327_v15, %v1530_v42  ;;  %v502_v18 = vpop.f32.mrb[29].mxu0  ;;  %v630_v19 = vpop.f32.mrb[29].mxu1 }
 0x119   :  { %991 = vst.msk [vmem:[%s1855_s3 + $0x64] sm:$0xf] %vm965_vm3, %v1188_v12  ;;  %1023 = vst.msk [vmem:[%s1855_s3 + $0xe4] sm:$0xf] %vm965_vm3, %v1220_v13  ;;  %v503_v20 = vadd.f32 %v1530_v42, %v502_v18  ;;  %v631_v21 = vadd.f32 %v1530_v42, %v630_v19  ;;  %v1296_v22 = vpop.f32.mrb[30].mxu0  ;;  %v1328_v23 = vpop.f32.mrb[30].mxu1 }
 0x11a   :  { %v675_v24 = vmax.f32 %v511_v16, 0.0  ;;  %v707_v25 = vmax.f32 %v639_v17, 0.0  ;;  %v514_v26 = vadd.f32 %v1296_v22, %v1530_v42  ;;  %v642_v27 = vadd.f32 %v1328_v23, %v1530_v42  ;;  %v505_v28 = vpop.f32.mrb[31].mxu0  ;;  %v633_v29 = vpop.f32.mrb[31].mxu1 }
 0x11b   :  { %v673_v30 = vmax.f32 %v503_v20, 0.0  ;;  %v705_v31 = vmax.f32 %v631_v21, 0.0  ;;  %v506_v32 = vadd.f32 %v1530_v42, %v505_v28  ;;  %v634_v33 = vadd.f32 %v1530_v42, %v633_v29 }
 0x11c   :  { %v1193_v34 = vpack.c.bf16 %v675_v24, %v675_v24  ;;  %v1225_v35 = vpack.c.bf16 %v707_v25, %v707_v25  ;;  %v676_v36 = vmax.f32 %v514_v26, 0.0  ;;  %v708_v37 = vmax.f32 %v642_v27, 0.0 }
 0x11d   :  { %v1191_v38 = vpack.c.bf16 %v673_v30, %v673_v30  ;;  %v1223_v39 = vpack.c.bf16 %v705_v31, %v705_v31  ;;  %v674_v40 = vmax.f32 %v506_v32, 0.0  ;;  %v706_v41 = vmax.f32 %v634_v33, 0.0 }
 0x11e   :  { %996 = vst.msk [vmem:[%s1855_s3 + $0x78] sm:$0xf] %vm965_vm3, %v1193_v34  ;;  %1028 = vst.msk [vmem:[%s1855_s3 + $0xf8] sm:$0xf] %vm965_vm3, %v1225_v35  ;;  %v1194_v43 = vpack.c.bf16 %v676_v36, %v676_v36  ;;  %v1226_v42 = vpack.c.bf16 %v708_v37, %v708_v37 }
 0x11f   :  { %994 = vst.msk [vmem:[%s1855_s3 + $0x70] sm:$0xf] %vm965_vm3, %v1191_v38  ;;  %1026 = vst.msk [vmem:[%s1855_s3 + $0xf0] sm:$0xf] %vm965_vm3, %v1223_v39  ;;  %v1192_v44 = vpack.c.bf16 %v674_v40, %v674_v40  ;;  %v1224_v45 = vpack.c.bf16 %v706_v41, %v706_v41 }
 0x120   :  { %997 = vst.msk [vmem:[%s1855_s3 + $0x7c] sm:$0xf] %vm965_vm3, %v1194_v43  ;;  %1029 = vst.msk [vmem:[%s1855_s3 + $0xfc] sm:$0xf] %vm965_vm3, %v1226_v42 }
 0x121   :  { %995 = vst.msk [vmem:[%s1855_s3 + $0x74] sm:$0xf] %vm965_vm3, %v1192_v44  ;;  %1027 = vst.msk [vmem:[%s1855_s3 + $0xf4] sm:$0xf] %vm965_vm3, %v1224_v45 }

// kernel: _distill_forward_impl.3
= control target key start
LH: loop header
LB: loop body
LE: loop exit
PB: predicated region body
PF: predicated region fallthrough
CT: control target
= control target key end

     0   :  { %vm228_vm0 = vcmask 261120   ;;  %vm527_vm1 = vcmask 257024   ;;  %s1060_s1 = inlined_call_operand.vmem [shape: f32[288,32], index: 1, kind: input, shape index: {}]   ;;  %s1061_s0 = inlined_call_operand.vmem [shape: bf16[128,288], index: 0, kind: input, shape index: {}]   ;;  %s1062_s2 = inlined_call_operand.vmem [shape: f32[1,32], index: 2, kind: input, shape index: {}]   ;;  %s1063_s3 = inlined_call_operand.vmem [shape: bf16[128,32], index: 3, kind: output, shape index: {}]  }
   0x1   :  { %v63_v0 = vld [vmem:[%s1060_s1 + $0x80] sm:$0xff]  ;;  %v64_v1 = vld [vmem:[%s1060_s1 + $0x88] sm:$0xff]  ;;  %v65_v5 = vld [vmem:[%s1060_s1 + $0x90] sm:$0xff] }
   0x2   :  { %v47_v2 = vld [vmem:[%s1060_s1] sm:$0xff]  ;;  %v91_v3 = vpack.c.bf16 %v64_v1, %v63_v0  ;;  %v48_v4 = vld [vmem:[%s1060_s1 + $0x8] sm:$0xff]  ;;  %v66_v6 = vld [vmem:[%s1060_s1 + $0x98] sm:$0xff] }
   0x3   :  { %v83_v7 = vpack.c.bf16 %v48_v4, %v47_v2  ;;  %v92_v8 = vpack.c.bf16 %v66_v6, %v65_v5  ;;  %v49_v9 = vld [vmem:[%s1060_s1 + $0x10] sm:$0xff]  ;;  %v50_v10 = vld [vmem:[%s1060_s1 + $0x18] sm:$0xff]  ;;  %v67_v11 = vld [vmem:[%s1060_s1 + $0xa0] sm:$0xff] }
   0x4   :  { %613 = vmatprep.subr.bf16.mxu0 %v91_v3  ;;  %707 = vmatprep.subr.bf16.mxu1 %v91_v3  ;;  %v68_v12 = vld [vmem:[%s1060_s1 + $0xa8] sm:$0xff]  ;;  %v84_v13 = vpack.c.bf16 %v50_v10, %v49_v9  ;;  %v51_v15 = vld [vmem:[%s1060_s1 + $0x20] sm:$0xff]  ;;  %v69_v17 = vld [vmem:[%s1060_s1 + $0xb0] sm:$0xff] }
   0x5   :  { %614 = vmatpush3.bf16.msra.mxu0 %v83_v7  ;;  %715 = vmatpush3.bf16.msra.mxu1 %v83_v7  ;;  %v93_v14 = vpack.c.bf16 %v68_v12, %v67_v11  ;;  %v52_v16 = vld [vmem:[%s1060_s1 + $0x28] sm:$0xff]  ;;  %v70_v18 = vld [vmem:[%s1060_s1 + $0xb8] sm:$0xff]  ;;  %v53_v21 = vld [vmem:[%s1060_s1 + $0x30] sm:$0xff] }
   0x6   :  { %615 = vmatprep.subr.bf16.mxu0 %v92_v8  ;;  %708 = vmatprep.subr.bf16.mxu1 %v92_v8  ;;  %v85_v19 = vpack.c.bf16 %v52_v16, %v51_v15  ;;  %v94_v20 = vpack.c.bf16 %v70_v18, %v69_v17  ;;  %v54_v22 = vld [vmem:[%s1060_s1 + $0x38] sm:$0xff]  ;;  %v71_v23 = vld [vmem:[%s1060_s1 + $0xc0] sm:$0xff]  ;;  %v72_v24 = vld [vmem:[%s1060_s1 + $0xc8] sm:$0xff] }
   0x7   :  { %v725_v25 = vld [vmem:[%s1061_s0 + $0x4] ss:$12 sps:$4 sm:$0xff]   ;;  %v86_v26 = vpack.c.bf16 %v54_v22, %v53_v21  ;;  %v95_v28 = vpack.c.bf16 %v72_v24, %v71_v23  ;;  %v56_v29 = vld [vmem:[%s1060_s1 + $0x48] sm:$0xff]  ;;  %v728_v31 = vld [vmem:[%s1061_s0 + $0x94] ss:$12 sps:$4 sm:$0xff]  }
   0x8   :  { %v55_v27 = vld [vmem:[%s1060_s1 + $0x40] sm:$0xff]  ;;  %v73_v30 = vld [vmem:[%s1060_s1 + $0xd0] sm:$0xff]  ;;  %v74_v32 = vld [vmem:[%s1060_s1 + $0xd8] sm:$0xff]  ;;  %285 = vmatprep.mubr.bf16.mxu0 %v725_v25  ;;  %333 = vmatprep.mubr.bf16.mxu1 %v728_v31 }
   0x9   :  { %616 = vmatpush3.bf16.msra.mxu0 %v84_v13  ;;  %716 = vmatpush3.bf16.msra.mxu1 %v84_v13  ;;  %v87_v33 = vpack.c.bf16 %v56_v29, %v55_v27  ;;  %v57_v34 = vld [vmem:[%s1060_s1 + $0x50] sm:$0xff]  ;;  %v58_v35 = vld [vmem:[%s1060_s1 + $0x58] sm:$0xff]  ;;  %v96_v36 = vpack.c.bf16 %v74_v32, %v73_v30  ;;  %v75_v37 = vld [vmem:[%s1060_s1 + $0xe0] sm:$0xff] }
   0xa   :  { %617 = vmatprep.subr.bf16.mxu0 %v93_v14  ;;  %709 = vmatprep.subr.bf16.mxu1 %v93_v14  ;;  %v76_v38 = vld [vmem:[%s1060_s1 + $0xe8] sm:$0xff]  ;;  %v88_v39 = vpack.c.bf16 %v58_v35, %v57_v34  ;;  %v59_v40 = vld [vmem:[%s1060_s1 + $0x60] sm:$0xff]  ;;  %v77_v43 = vld [vmem:[%s1060_s1 + $0xf0] sm:$0xff] }
   0xb   :  { %v97_v41 = vpack.c.bf16 %v76_v38, %v75_v37  ;;  %v60_v42 = vld [vmem:[%s1060_s1 + $0x68] sm:$0xff]  ;;  %v78_v44 = vld [vmem:[%s1060_s1 + $0xf8] sm:$0xff]  ;;  %v61_v45 = vld [vmem:[%s1060_s1 + $0x70] sm:$0xff] }
   0xc   :  { %v89_v46 = vpack.c.bf16 %v60_v42, %v59_v40  ;;  %v62_v47 = vld [vmem:[%s1060_s1 + $0x78] sm:$0xff]  ;;  %v98_v48 = vpack.c.bf16 %v78_v44, %v77_v43  ;;  %v79_v49 = vld [vmem:[%s1060_s1 + $0x100] sm:$0xff]  ;;  %v80_v50 = vld [vmem:[%s1060_s1 + $0x108] sm:$0xff] }
   0xd   :  { %618 = vmatpush3.bf16.msra.mxu0 %v85_v19  ;;  %717 = vmatpush3.bf16.msra.mxu1 %v85_v19  ;;  %v90_v51 = vpack.c.bf16 %v62_v47, %v61_v45  ;;  %v99_v52 = vpack.c.bf16 %v80_v50, %v79_v49  ;;  %v81_v53 = vld [vmem:[%s1060_s1 + $0x110] sm:$0xff]  ;;  %v82_v54 = vld [vmem:[%s1060_s1 + $0x118] sm:$0xff]  ;;  %v723_v55 = vld [vmem:[%s1061_s0] ss:$12 sps:$4 sm:$0xff]  }
   0xe   :  { %619 = vmatprep.subr.bf16.mxu0 %v94_v20  ;;  %710 = vmatprep.subr.bf16.mxu1 %v94_v20  ;;  %v726_v56 = vld [vmem:[%s1061_s0 + $0x90] ss:$12 sps:$4 sm:$0xff]   ;;  %v731_v58 = vld [vmem:[%s1061_s0 + $0xac] ss:$12 sps:$4 sm:$0xff]   ;;  %v100_v59 = vpack.c.bf16 %v82_v54, %v81_v53  ;;  %v734_v61 = vld [vmem:[%s1061_s0 + $0xa8] ss:$12 sps:$4 sm:$0xff]  }
   0xf   :  { %v729_v57 = vld [vmem:[%s1061_s0 + $0x1c] ss:$12 sps:$4 sm:$0xff]   ;;  %v733_v60 = vld [vmem:[%s1061_s0 + $0x18] ss:$12 sps:$4 sm:$0xff]   ;;  %v735_v62 = vld [vmem:[%s1061_s0 + $0x34] ss:$12 sps:$4 sm:$0xff]  }
  0x10   :  { %v737_v63 = vld [vmem:[%s1061_s0 + $0x8] ss:$12 sps:$4 sm:$0xff]   ;;  %v738_v0 = vld [vmem:[%s1061_s0 + $0x30] ss:$12 sps:$4 sm:$0xff]   ;;  %v739_v1 = vld [vmem:[%s1061_s0 + $0x20] ss:$12 sps:$4 sm:$0xff]  }
  0x11   :  { %620 = vmatpush3.bf16.msra.mxu0 %v86_v26  ;;  %718 = vmatpush3.bf16.msra.mxu1 %v86_v26  ;;  %v740_v2 = vld [vmem:[%s1061_s0 + $0x4c] ss:$12 sps:$4 sm:$0xff]   ;;  %v743_v4 = vld [vmem:[%s1061_s0 + $0x48] ss:$12 sps:$4 sm:$0xff]   ;;  %v744_v5 = vld [vmem:[%s1061_s0 + $0x50] ss:$12 sps:$4 sm:$0xff]  }
  0x12   :  { %621 = vmatprep.subr.bf16.mxu0 %v95_v28  ;;  %711 = vmatprep.subr.bf16.mxu1 %v95_v28  ;;  %v742_v3 = vld [vmem:[%s1061_s0 + $0x38] ss:$12 sps:$4 sm:$0xff]   ;;  %v747_v7 = vld [vmem:[%s1061_s0 + $0x68] ss:$12 sps:$4 sm:$0xff]   ;;  %v748_v8 = vld [vmem:[%s1061_s0 + $0x60] ss:$12 sps:$4 sm:$0xff]  }
  0x13   :  { %v745_v6 = vld [vmem:[%s1061_s0 + $0x64] ss:$12 sps:$4 sm:$0xff]   ;;  %v749_v9 = vld [vmem:[%s1061_s0 + $0x80] ss:$12 sps:$4 sm:$0xff]   ;;  %v750_v10 = vld [vmem:[%s1061_s0 + $0x7c] ss:$12 sps:$4 sm:$0xff]  }
  0x14   :  { %v752_v11 = vld [vmem:[%s1061_s0 + $0x98] ss:$12 sps:$4 sm:$0xff]   ;;  %v754_v13 = vld [vmem:[%s1061_s0 + $0xb0] ss:$12 sps:$4 sm:$0xff]   ;;  %v974_v38 = vld [vmem:[%s1062_s2] ss:$0 sm:$0xff] }
  0x15   :  { %622 = vmatpush3.bf16.msra.mxu0 %v87_v33  ;;  %719 = vmatpush3.bf16.msra.mxu1 %v87_v33  ;;  %v753_v12 = vld [vmem:[%s1061_s0 + $0x78] ss:$12 sps:$4 sm:$0xff]  }
  0x16   :  { %623 = vmatprep.subr.bf16.mxu0 %v96_v36  ;;  %712 = vmatprep.subr.bf16.mxu1 %v96_v36 }
  0x19   :  { %624 = vmatpush3.bf16.msra.mxu0 %v88_v39  ;;  %720 = vmatpush3.bf16.msra.mxu1 %v88_v39 }
  0x1a   :  { %625 = vmatprep.subr.bf16.mxu0 %v97_v41  ;;  %713 = vmatprep.subr.bf16.mxu1 %v97_v41 }
  0x1d   :  { %626 = vmatpush3.bf16.msra.mxu0 %v89_v46  ;;  %721 = vmatpush3.bf16.msra.mxu1 %v89_v46 }
  0x1e   :  { %627 = vmatprep.subr.bf16.mxu0 %v98_v48  ;;  %714 = vmatprep.subr.bf16.mxu1 %v98_v48 }
  0x21   :  { %628 = vmatpush3.bf16.msra.mxu0 %v90_v51  ;;  %722 = vmatpush3.bf16.msra.mxu1 %v90_v51 }
  0x22   :  { %687 = vmatprep.subr.bf16.mxu1 %v99_v52 }
  0x24   :  { %286 = vmatmul.mubr.bf16.vlgmr.msra.gmra.mrb[0].mxu0 %v723_v55  ;;  %334 = vmatmul.mubr.bf16.vlgmr.msra.gmra.mrb[0].mxu1 %v726_v56 }
  0x25   :  { %688 = vmatpush3.bf16.msra.mxu1 %v99_v52  ;;  %293 = vmatprep.mubr.bf16.mxu0 %v729_v57 }
  0x26   :  { %341 = vmatprep.mubr.bf16.mxu1 %v731_v58  ;;  %689 = vmatprep.subr.bf16.mxu1 %v100_v59 }
  0x29   :  { %690 = vmatpush3.bf16.msra.mxu1 %v100_v59 }
  0x2c   :  { %294 = vmatmul.mubr.bf16.gmra.mrb[4].mxu0 %v733_v60  ;;  %342 = vmatmul.mubr.bf16.gmra.mrb[4].mxu1 %v734_v61 }
  0x2d   :  { %301 = vmatprep.mubr.bf16.mxu0 %v735_v62  ;;  %691 = vmatprep.mubr.msk.bf16.mxu1 %vm228_vm0, %v737_v63 }
  0x34   :  { %302 = vmatmul.mubr.bf16.gmra.mrb[8].mxu0 %v738_v0  ;;  %692 = vmatmul.mubr.msk.bf16.vlgmr.msra.gmra.mrb[8].mxu1 %vm228_vm0, %v739_v1 }
  0x35   :  { %309 = vmatprep.mubr.bf16.mxu0 %v740_v2  ;;  %695 = vmatprep.mubr.msk.bf16.mxu1 %vm228_vm0, %v742_v3 }
  0x3c   :  { %310 = vmatmul.mubr.bf16.gmra.mrb[12].mxu0 %v743_v4  ;;  %696 = vmatmul.mubr.msk.bf16.gmra.mrb[12].mxu1 %vm228_vm0, %v744_v5 }
  0x3d   :  { %317 = vmatprep.mubr.bf16.mxu0 %v745_v6  ;;  %699 = vmatprep.mubr.msk.bf16.mxu1 %vm228_vm0, %v747_v7 }
  0x44   :  { %318 = vmatmul.mubr.bf16.gmra.mrb[16].mxu0 %v748_v8  ;;  %700 = vmatmul.mubr.msk.bf16.gmra.mrb[16].mxu1 %vm228_vm0, %v749_v9 }
  0x45   :  { %325 = vmatprep.mubr.bf16.mxu0 %v750_v10  ;;  %703 = vmatprep.mubr.msk.bf16.mxu1 %vm228_vm0, %v752_v11 }
  0x4c   :  { %326 = vmatmul.mubr.bf16.gmra.mrb[20].mxu0 %v753_v12  ;;  %704 = vmatmul.mubr.msk.bf16.gmra.mrb[20].mxu1 %vm228_vm0, %v754_v13 }
  0xf7   :  { %v629_v14 = vpop.f32.mrb[0].mxu0  ;;  %v665_v15 = vpop.f32.mrb[0].mxu1 }
  0xf8   :  { %v630_v16 = vpop.f32.mrb[1].mxu0  ;;  %v666_v17 = vpop.f32.mrb[1].mxu1 }
  0xf9   :  { %v631_v18 = vadd.f32 %v630_v16, %v629_v14  ;;  %v632_v19 = vpop.f32.mrb[2].mxu0  ;;  %v963_v20 = vadd.f32 %v666_v17, %v665_v15  ;;  %v668_v21 = vpop.f32.mrb[2].mxu1 }
  0xfa   :  { %v633_v22 = vpop.f32.mrb[3].mxu0  ;;  %v669_v23 = vpop.f32.mrb[3].mxu1 }
  0xfb   :  { %v634_v24 = vadd.f32 %v633_v22, %v632_v19  ;;  %v965_v25 = vadd.f32 %v669_v23, %v668_v21  ;;  %v288_v42 = vadd.f32 %v631_v18, %v974_v38 }
  0xfd   :  { %v291_v51 = vadd.f32 %v634_v24, %v974_v38 }
  0xff   :  { %v635_v26 = vpop.f32.mrb[4].mxu0  ;;  %v671_v27 = vpop.f32.mrb[4].mxu1 }
 0x100   :  { %v636_v28 = vpop.f32.mrb[5].mxu0  ;;  %v672_v29 = vpop.f32.mrb[5].mxu1 }
 0x101   :  { %v637_v30 = vadd.f32 %v636_v28, %v635_v26  ;;  %v638_v31 = vpop.f32.mrb[6].mxu0  ;;  %v967_v32 = vadd.f32 %v672_v29, %v671_v27  ;;  %v674_v33 = vpop.f32.mrb[6].mxu1 }
 0x102   :  { %v639_v34 = vpop.f32.mrb[7].mxu0  ;;  %v675_v35 = vpop.f32.mrb[7].mxu1 }
 0x103   :  { %v640_v36 = vadd.f32 %v639_v34, %v638_v31  ;;  %v969_v37 = vadd.f32 %v675_v35, %v674_v33  ;;  %v296_v39 = vadd.f32 %v637_v30, %v974_v38 }
 0x105   :  { %v299_v46 = vadd.f32 %v640_v36, %v974_v38 }
 0x107   :  { %v641_v40 = vpop.f32.mrb[8].mxu0  ;;  %v693_v41 = vpop.f32.mrb[8].mxu1 }
 0x108   :  { %v393_v43 = vadd.f32 %v693_v41, %v296_v39  ;;  %v642_v44 = vpop.f32.mrb[9].mxu0  ;;  %v384_v45 = vpop.f32.mrb[9].mxu1 }
 0x109   :  { %v643_v47 = vadd.f32 %v642_v44, %v641_v40  ;;  %v385_v48 = vadd.f32 %v384_v45, %v288_v42  ;;  %v644_v49 = vpop.f32.mrb[10].mxu0  ;;  %v694_v50 = vpop.f32.mrb[10].mxu1  ;;  %v344_v45 = vadd.f32 %v967_v32, %v974_v38 }
 0x10a   :  { %v449_v52 = vmax.f32 %v393_v43, 0.0  ;;  %v396_v53 = vadd.f32 %v694_v50, %v299_v46  ;;  %v645_v54 = vpop.f32.mrb[11].mxu0  ;;  %v387_v55 = vpop.f32.mrb[11].mxu1  ;;  %v336_v50 = vadd.f32 %v963_v20, %v974_v38 }
 0x10b   :  { %v447_v56 = vmax.f32 %v385_v48, 0.0  ;;  %v646_v57 = vadd.f32 %v645_v54, %v644_v49  ;;  %v388_v58 = vadd.f32 %v387_v55, %v291_v51  ;;  %v304_v3 = vadd.f32 %v643_v47, %v974_v38 }
 0x10c   :  { %v599_v59 = vpack.c.bf16 %v449_v52, %v449_v52  ;;  %v450_v60 = vmax.f32 %v396_v53, 0.0  ;;  %v347_v54 = vadd.f32 %v969_v37, %v974_v38 }
 0x10d   :  { %v597_v61 = vpack.c.bf16 %v447_v56, %v447_v56  ;;  %v448_v62 = vmax.f32 %v388_v58, 0.0  ;;  %v307_v10 = vadd.f32 %v646_v57, %v974_v38 }
 0x10e   :  { %530 = vst.msk [vmem:[%s1063_s3 + $0x8] sm:$0xf] %vm527_vm1, %v599_v59  ;;  %v600_v63 = vpack.c.bf16 %v450_v60, %v450_v60 }
 0x10f   :  { %528 = vst.msk [vmem:[%s1063_s3] sm:$0xf] %vm527_vm1, %v597_v61  ;;  %v598_v0 = vpack.c.bf16 %v448_v62, %v448_v62  ;;  %v647_v1 = vpop.f32.mrb[12].mxu0  ;;  %v697_v2 = vpop.f32.mrb[12].mxu1 }
 0x110   :  { %531 = vst.msk [vmem:[%s1063_s3 + $0xc] sm:$0xf] %vm527_vm1, %v600_v63  ;;  %v648_v4 = vpop.f32.mrb[13].mxu0  ;;  %v400_v5 = vpop.f32.mrb[13].mxu1  ;;  %v339_v63 = vadd.f32 %v965_v25, %v974_v38 }
 0x111   :  { %529 = vst.msk [vmem:[%s1063_s3 + $0x4] sm:$0xf] %vm527_vm1, %v598_v0  ;;  %v649_v6 = vadd.f32 %v648_v4, %v647_v1  ;;  %v401_v7 = vadd.f32 %v400_v5, %v304_v3  ;;  %v650_v8 = vpop.f32.mrb[14].mxu0  ;;  %v698_v9 = vpop.f32.mrb[14].mxu1 }
 0x112   :  { %v651_v11 = vpop.f32.mrb[15].mxu0  ;;  %v403_v12 = vpop.f32.mrb[15].mxu1 }
 0x113   :  { %v312_v13 = vadd.f32 %v649_v6, %v974_v38  ;;  %v451_v14 = vmax.f32 %v401_v7, 0.0  ;;  %v652_v15 = vadd.f32 %v651_v11, %v650_v8  ;;  %v404_v16 = vadd.f32 %v403_v12, %v307_v10 }
 0x115   :  { %v409_v17 = vadd.f32 %v697_v2, %v312_v13  ;;  %v601_v18 = vpack.c.bf16 %v451_v14, %v451_v14  ;;  %v315_v19 = vadd.f32 %v652_v15, %v974_v38  ;;  %v452_v21 = vmax.f32 %v404_v16, 0.0 }
 0x117   :  { %v453_v22 = vmax.f32 %v409_v17, 0.0  ;;  %532 = vst.msk [vmem:[%s1063_s3 + $0x10] sm:$0xf] %vm527_vm1, %v601_v18  ;;  %v412_v23 = vadd.f32 %v698_v9, %v315_v19  ;;  %v602_v24 = vpack.c.bf16 %v452_v21, %v452_v21  ;;  %v653_v26 = vpop.f32.mrb[16].mxu0  ;;  %v701_v27 = vpop.f32.mrb[16].mxu1 }
 0x118   :  { %v654_v28 = vpop.f32.mrb[17].mxu0  ;;  %v416_v29 = vpop.f32.mrb[17].mxu1 }
 0x119   :  { %v603_v30 = vpack.c.bf16 %v453_v22, %v453_v22  ;;  %v454_v31 = vmax.f32 %v412_v23, 0.0  ;;  %533 = vst.msk [vmem:[%s1063_s3 + $0x14] sm:$0xf] %vm527_vm1, %v602_v24  ;;  %v655_v33 = vadd.f32 %v654_v28, %v653_v26  ;;  %v656_v34 = vpop.f32.mrb[18].mxu0  ;;  %v702_v35 = vpop.f32.mrb[18].mxu1 }
 0x11a   :  { %v657_v36 = vpop.f32.mrb[19].mxu0  ;;  %v419_v39 = vpop.f32.mrb[19].mxu1 }
 0x11b   :  { %534 = vst.msk [vmem:[%s1063_s3 + $0x18] sm:$0xf] %vm527_vm1, %v603_v30  ;;  %v604_v40 = vpack.c.bf16 %v454_v31, %v454_v31  ;;  %v320_v41 = vadd.f32 %v655_v33, %v974_v38  ;;  %v658_v42 = vadd.f32 %v657_v36, %v656_v34 }
 0x11d   :  { %535 = vst.msk [vmem:[%s1063_s3 + $0x1c] sm:$0xf] %vm527_vm1, %v604_v40  ;;  %v417_v43 = vadd.f32 %v416_v29, %v320_v41  ;;  %v323_v44 = vadd.f32 %v658_v42, %v974_v38 }
 0x11f   :  { %v455_v46 = vmax.f32 %v417_v43, 0.0  ;;  %v420_v47 = vadd.f32 %v419_v39, %v323_v44  ;;  %v659_v48 = vpop.f32.mrb[20].mxu0  ;;  %v705_v49 = vpop.f32.mrb[20].mxu1 }
 0x120   :  { %v441_v51 = vadd.f32 %v705_v49, %v344_v45  ;;  %v660_v52 = vpop.f32.mrb[21].mxu0  ;;  %v432_v53 = vpop.f32.mrb[21].mxu1 }
 0x121   :  { %v605_v55 = vpack.c.bf16 %v455_v46, %v455_v46  ;;  %v456_v56 = vmax.f32 %v420_v47, 0.0  ;;  %v661_v57 = vadd.f32 %v660_v52, %v659_v48  ;;  %v433_v58 = vadd.f32 %v432_v53, %v336_v50  ;;  %v662_v59 = vpop.f32.mrb[22].mxu0  ;;  %v706_v60 = vpop.f32.mrb[22].mxu1 }
 0x122   :  { %v461_v32 = vmax.f32 %v441_v51, 0.0  ;;  %v444_v61 = vadd.f32 %v706_v60, %v347_v54  ;;  %v663_v62 = vpop.f32.mrb[23].mxu0  ;;  %v435_v0 = vpop.f32.mrb[23].mxu1 }
 0x123   :  { %536 = vst.msk [vmem:[%s1063_s3 + $0x20] sm:$0xf] %vm527_vm1, %v605_v55  ;;  %v606_v20 = vpack.c.bf16 %v456_v56, %v456_v56  ;;  %v328_v37 = vadd.f32 %v661_v57, %v974_v38  ;;  %v459_v1 = vmax.f32 %v433_v58, 0.0  ;;  %v664_v2 = vadd.f32 %v663_v62, %v662_v59 }
 0x124   :  { %v611_v3 = vpack.c.bf16 %v461_v32, %v461_v32  ;;  %v462_v4 = vmax.f32 %v444_v61, 0.0  ;;  %v436_v5 = vadd.f32 %v435_v0, %v339_v63 }
 0x125   :  { %537 = vst.msk [vmem:[%s1063_s3 + $0x24] sm:$0xf] %vm527_vm1, %v606_v20  ;;  %v425_v25 = vadd.f32 %v701_v27, %v328_v37  ;;  %v609_v6 = vpack.c.bf16 %v459_v1, %v459_v1  ;;  %v331_v7 = vadd.f32 %v664_v2, %v974_v38 }
 0x126   :  { %542 = vst.msk [vmem:[%s1063_s3 + $0x38] sm:$0xf] %vm527_vm1, %v611_v3  ;;  %v612_v8 = vpack.c.bf16 %v462_v4, %v462_v4  ;;  %v460_v9 = vmax.f32 %v436_v5, 0.0 }
 0x127   :  { %v457_v10 = vmax.f32 %v425_v25, 0.0  ;;  %540 = vst.msk [vmem:[%s1063_s3 + $0x30] sm:$0xf] %vm527_vm1, %v609_v6  ;;  %v428_v11 = vadd.f32 %v702_v35, %v331_v7 }
 0x128   :  { %543 = vst.msk [vmem:[%s1063_s3 + $0x3c] sm:$0xf] %vm527_vm1, %v612_v8  ;;  %v610_v38 = vpack.c.bf16 %v460_v9, %v460_v9 }
 0x129   :  { %v607_v12 = vpack.c.bf16 %v457_v10, %v457_v10  ;;  %v458_v13 = vmax.f32 %v428_v11, 0.0 }
 0x12a   :  { %541 = vst.msk [vmem:[%s1063_s3 + $0x34] sm:$0xf] %vm527_vm1, %v610_v38 }
 0x12b   :  { %538 = vst.msk [vmem:[%s1063_s3 + $0x28] sm:$0xf] %vm527_vm1, %v607_v12  ;;  %v608_v14 = vpack.c.bf16 %v458_v13, %v458_v13 }
 0x12d   :  { %539 = vst.msk [vmem:[%s1063_s3 + $0x2c] sm:$0xf] %vm527_vm1, %v608_v14 }

</bundles_post_ra>
